<compile_context>
chip_gen: v7x
topology: tpu7x:2x2x1
jax: 0.10.0
libtpu: 0.0.40
codegen_flags: <defaults>
</compile_context>

<pallas_src>
import math
from functools import partial

import jax
import jax.numpy as jnp
from jax.experimental import pallas as pl
from jax.experimental.pallas import tpu as pltpu


# --------------------------------------------------------------------------
# Trace-time helpers used inside kernel bodies
# --------------------------------------------------------------------------
def _mm(a, b):
    return jnp.dot(a, b, preferred_element_type=jnp.float32)


def _dot_c(a, b, ca, cb):
    # a . b contracting a's axis `ca` with b's axis `cb` (no explicit transposes)
    return jax.lax.dot_general(a, b, (((ca,), (cb,)), ((), ())),
                               preferred_element_type=jnp.float32)


def _eye(n):
    r = jax.lax.broadcasted_iota(jnp.int32, (n, n), 0)
    c = jax.lax.broadcasted_iota(jnp.int32, (n, n), 1)
    return (r == c).astype(jnp.float32)


def _sym_norm(a):
    # D_r^{-1/2} A D_c^{-1/2}  (dense analog of gcn_norm; rsqrt runs on the EUP)
    deg_r = jnp.sum(a, axis=1, keepdims=True)
    deg_c = jnp.sum(a, axis=0, keepdims=True)
    dr = jnp.where(deg_r > 0.0, jax.lax.rsqrt(deg_r), 0.0)
    dc = jnp.where(deg_c > 0.0, jax.lax.rsqrt(deg_c), 0.0)
    return dr * a * dc


def _appnp(a_norm, h0, k, alpha):
    # APPNP(k, alpha, add_self_loops=False), statically unrolled (k known)
    x = h0
    for _ in range(k):
        x = (1.0 - alpha) * _mm(a_norm, x) + alpha * h0
    return x


def _stable_sigmoid(s):
    # numerically stable sigmoid; the divide goes to the EUP via pl.reciprocal
    r = pl.reciprocal(1.0 + jnp.exp(-jnp.abs(s)), approx=True)
    return jnp.where(s >= 0.0, r, 1.0 - r)


# --------------------------------------------------------------------------
# Stage 1: down_convs[0] on graph 1  +  TransPool score layer
# --------------------------------------------------------------------------
def _stage1_kernel(k_appnp, alpha,
                   x_ref, a1_ref, gcn_w_ref, score_w_ref, score_b_ref,
                   out_x_ref, score_ref):
    a1 = a1_ref[...]
    n = a1.shape[0]
    eye = _eye(n)

    # GCN(in, hid): (x @ W) then APPNP propagation (no self loops), unrolled.
    out_x = _appnp(_sym_norm(a1), _mm(x_ref[...], gcn_w_ref[...]), k_appnp, alpha)
    out_x_ref[...] = out_x

    # TransPool.score_layer = GCNConv(hid, 1) on A1 \ diag (+ self loops in norm)
    h = jnp.maximum(out_x, 0.0)                              # self.act
    a = a1 * (1.0 - eye)                                     # remove_self_loops
    score = _mm(_sym_norm(a + eye), _mm(h, score_w_ref[...])) + score_b_ref[...]
    # lane-dense output: broadcast the [n,1] score across 128 lanes (col 0 used)
    score_ref[...] = jnp.broadcast_to(score, score_ref.shape)


# --------------------------------------------------------------------------
# Stage 2: TransPool + down_convs[1] + MLP1 + Q = P1 @ L
# --------------------------------------------------------------------------
def _stage2_kernel(threshold,
                   a1_ref, outx_ref, psel_ref, pselT_ref,
                   aggr_w_ref, aggr_b_ref, down1_w_ref, down1_b_ref,
                   mlp1_w_ref, mlp1_b_ref, l_ref, t_ref,
                   sup1_ref, sup2_ref, s_ref, q_ref):
    a1 = a1_ref[...]
    psel = psel_ref[...]                 # [m, n] one-hot supernode selection
    pselT = pselT_ref[...]               # [n, m]
    n = a1.shape[0]
    m = psel.shape[0]
    eye_n = _eye(n)
    eye_m = _eye(m)

    a = a1 * (1.0 - eye_n)               # remove_self_loops
    h = jnp.maximum(outx_ref[...], 0.0)  # self.act on out_x

    # --- supAggr_layer = GCNConv(hid, hid) over target-filtered adjacency ---
    sel = jnp.sum(pselT, axis=1, keepdims=True)        # [n,1] supernode indicator
    a_tgt = a * sel                                     # filter_target (rows)
    temp_x = _mm(_sym_norm(a_tgt + eye_n), _mm(h, aggr_w_ref[...])) + aggr_b_ref[...]
    sup_x = jnp.maximum(_mm(psel, temp_x), 0.0)         # temp_x[super_nodes], relu

    # --- candidate (node -> supernode) edges ---
    # TODO(synk): cadicate_selection helper source unavailable; adjacency-to-
    #             supernode edges plus self-candidates are used instead.
    cand = _dot_c(a, pselT, 0, 0)                       # cand[i,j] = A[sn_j, i]
    cand = jnp.maximum(cand, pselT)                     # self-candidates

    # --- assignment weights: sigmoid(<temp_x_i, sup_x_j>) * cand, row-normalized
    scores = _dot_c(temp_x, sup_x, 1, 1)                # [n, m]
    mask = cand > 0.0
    w = _stable_sigmoid(scores) * cand
    rowsum = jnp.sum(w, axis=1, keepdims=True)
    w = jnp.where(rowsum > 0.0,
                  w * pl.reciprocal(jnp.maximum(rowsum, 1e-20), approx=True), 0.0)

    # --- tempered softmax over candidates + threshold pruning ---
    # TODO(synk): sparse_gumbel_softmax adds stochastic Gumbel noise; a
    #             deterministic tempered softmax over the same support is used.
    t = t_ref[0]
    logits = jnp.where(mask, jnp.log(jnp.maximum(w, 1e-20)) / t, -1e30)
    mx = jnp.max(logits, axis=1, keepdims=True)
    e = jnp.where(mask, jnp.exp(logits - mx), 0.0)
    s = e * pl.reciprocal(jnp.maximum(jnp.sum(e, axis=1, keepdims=True), 1e-20),
                          approx=True)
    s = jnp.where(s >= threshold, s, 0.0)               # remove_by_threshold
    s_ref[...] = s

    # --- layer_agg == 'avg':  x_pool = (sup_x + S^T @ temp_x) / 2 ---
    x_pool = 0.5 * (sup_x + _dot_c(s, temp_x, 0, 0))

    # --- supernode graph (filter_source + remap, self loops removed) ---
    # TODO(synk): connect_isolated_nodes not reproduced (helper source unavailable).
    a_sup = _dot_c(_mm(psel, a), psel, 1, 1) * (1.0 - eye_m)

    # --- down_convs[1] = GCNConv(hid, hid) + ReLU ---
    sup1 = jnp.maximum(
        _mm(_sym_norm(a_sup + eye_m), _mm(x_pool, down1_w_ref[...])) + down1_b_ref[...],
        0.0)
    sup1_ref[...] = sup1

    # --- MLP1 + ReLU ---
    sup2 = jnp.maximum(_mm(sup1, mlp1_w_ref[...]) + mlp1_b_ref[...], 0.0)
    sup2_ref[...] = sup2

    # --- Q = P1 @ L = S^T @ L ---
    q_ref[...] = _dot_c(s, l_ref[...], 0, 0)


# --------------------------------------------------------------------------
# Stage 3: down_convs[0] on graph 2 + LastLayer (two BiConvs) + MLP2
# --------------------------------------------------------------------------
def _stage3_kernel(k_appnp, alpha,
                   y_ref, a2_ref, gcn_w_ref, out_x_ref, sup2_ref, l_ref, q_ref,
                   bi1_w_ref, bi2_w_ref, mlp2_w_ref, mlp2_b_ref,
                   out_y_ref, recon_ref):
    out_y = _appnp(_sym_norm(a2_ref[...]), _mm(y_ref[...], gcn_w_ref[...]),
                   k_appnp, alpha)

    # last_layer: BiConv2((out_x, None), anchors L) + BiConv1((sup2, None), Q)
    z = _mm(_dot_c(l_ref[...], out_x_ref[...], 0, 0), bi2_w_ref[...])   # (L^T out_x) W2
    z = z + _mm(_dot_c(q_ref[...], sup2_ref[...], 0, 0), bi1_w_ref[...])  # (Q^T sup2) W1
    out_y = out_y + z
    out_y_ref[...] = out_y

    # MLP2
    recon_ref[...] = _mm(out_y, mlp2_w_ref[...]) + mlp2_b_ref[...]


# --------------------------------------------------------------------------
# pallas_call wrappers (whole arrays resident in VMEM; temperature in SMEM)
# --------------------------------------------------------------------------
_VMEM = pl.BlockSpec(memory_space=pltpu.MemorySpace.VMEM)
_SMEM = pl.BlockSpec(memory_space=pltpu.MemorySpace.SMEM)


def stage1(x, A1, gcn_w, score_w, score_b, k_appnp, alpha):
    n1, hid = x.shape[0], gcn_w.shape[1]
    out_x, score_pad = pl.pallas_call(
        partial(_stage1_kernel, k_appnp, alpha),
        out_shape=(jax.ShapeDtypeStruct((n1, hid), jnp.float32),
                   jax.ShapeDtypeStruct((n1, 128), jnp.float32)),
        in_specs=[_VMEM] * 5,
        out_specs=(_VMEM, _VMEM),
    )(x, A1, gcn_w, score_w, score_b)
    return out_x, score_pad[:, 0]


def stage2(A1, out_x, P_sel, P_selT, aggr_w, aggr_b, down1_w, down1_b,
           mlp1_w, mlp1_b, L, temperature):
    n1 = A1.shape[0]
    m, hid = P_sel.shape[0], aggr_w.shape[1]
    n2 = L.shape[1]
    thr = 0.5 / m                                       # remove_by_threshold bound
    t = jnp.asarray(temperature, jnp.float32).reshape((1,))
    return pl.pallas_call(
        partial(_stage2_kernel, thr),
        out_shape=(jax.ShapeDtypeStruct((m, hid), jnp.float32),   # sup1
                   jax.ShapeDtypeStruct((m, hid), jnp.float32),   # sup2
                   jax.ShapeDtypeStruct((n1, m), jnp.float32),    # S
                   jax.ShapeDtypeStruct((m, n2), jnp.float32)),   # Q
        in_specs=[_VMEM] * 11 + [_SMEM],
        out_specs=(_VMEM,) * 4,
    )(A1, out_x, P_sel, P_selT, aggr_w, aggr_b, down1_w, down1_b,
      mlp1_w, mlp1_b, L, t)


def stage3(y, A2, gcn_w, out_x, sup2, L, Q, bi1_w, bi2_w, mlp2_w, mlp2_b,
           k_appnp, alpha):
    n2, hid = y.shape[0], gcn_w.shape[1]
    out_dim = mlp2_w.shape[1]
    return pl.pallas_call(
        partial(_stage3_kernel, k_appnp, alpha),
        out_shape=(jax.ShapeDtypeStruct((n2, hid), jnp.float32),
                   jax.ShapeDtypeStruct((n2, out_dim), jnp.float32)),
        in_specs=[_VMEM] * 11,
        out_specs=(_VMEM, _VMEM),
    )(y, A2, gcn_w, out_x, sup2, L, Q, bi1_w, bi2_w, mlp2_w, mlp2_b)


# --------------------------------------------------------------------------
# Parameter construction (deterministic, shapes from NetTransModel.__init__)
# --------------------------------------------------------------------------
def _glorot(key, shape):
    limit = math.sqrt(6.0 / (shape[0] + shape[1]))
    return jax.random.uniform(key, shape, jnp.float32, -limit, limit)


def init_params(key, in_dim, hid_dim, out_dim):
    ks = jax.random.split(key, 12)
    s = math.sqrt(hid_dim)
    return {
        # down_convs[0] = GCN(in_dim, hid): weight ~ U(-sqrt(hid), sqrt(hid))
        "gcn_w": jax.random.uniform(ks[0], (in_dim, hid_dim), jnp.float32, -s, s),
        # TransPool.score_layer = GCNConv(hid, 1)
        "score_w": _glorot(ks[1], (hid_dim, 1)),
        "score_b": jnp.zeros((1, 1), jnp.float32),
        # TransPool.supAggr_layer = GCNConv(hid, hid)
        "aggr_w": _glorot(ks[2], (hid_dim, hid_dim)),
        "aggr_b": jnp.zeros((1, hid_dim), jnp.float32),
        # down_convs[1] = GCNConv(hid, hid)
        "down1_w": _glorot(ks[3], (hid_dim, hid_dim)),
        "down1_b": jnp.zeros((1, hid_dim), jnp.float32),
        # MLP1 = Linear(hid, hid)
        "mlp1_w": _glorot(ks[4], (hid_dim, hid_dim)),
        "mlp1_b": jax.random.uniform(ks[5], (1, hid_dim), jnp.float32, -1.0 / s, 1.0 / s),
        # last_layer BiConv1 / BiConv2 = GraphConv((hid, hid), hid, bias=False)
        "bi1_w": _glorot(ks[6], (hid_dim, hid_dim)),
        "bi2_w": _glorot(ks[7], (hid_dim, hid_dim)),
        # MLP2 = Linear(hid, out_dim)
        "mlp2_w": _glorot(ks[8], (hid_dim, out_dim)),
        "mlp2_b": jax.random.uniform(ks[9], (1, out_dim), jnp.float32, -1.0 / s, 1.0 / s),
    }


# --------------------------------------------------------------------------
# NetTransModel.forward  (depth = 1, layer_agg = 'avg', act = ReLU)
# --------------------------------------------------------------------------
def nettrans_forward(params, x, A1, y, A2, L, temperature,
                     k_appnp=10, alpha=0.5, ratio=0.85):
    n1 = x.shape[0]

    # ---- stage 1 (fused): down_convs[0] on graph 1 + TransPool score ----
    out_x, score = stage1(x, A1, params["gcn_w"], params["score_w"],
                          params["score_b"], k_appnp, alpha)

    # ---- TransPool.topk: dynamic node selection stays in plain JAX glue ----
    num_sup = int(math.ceil(ratio * n1))
    _, super_nodes = jax.lax.top_k(score, num_sup)
    P_sel = jax.nn.one_hot(super_nodes, n1, dtype=jnp.float32)   # [num_sup, n1]
    P_selT = jnp.swapaxes(P_sel, 0, 1)                           # [n1, num_sup]

    # ---- stage 2 (fused): TransPool + down_convs[1] + MLP1 + Q = P1 @ L ----
    sup1, sup2, S, Q = stage2(A1, out_x, P_sel, P_selT,
                              params["aggr_w"], params["aggr_b"],
                              params["down1_w"], params["down1_b"],
                              params["mlp1_w"], params["mlp1_b"],
                              L, temperature)

    # ---- stage 3 (fused): down_convs[0] on graph 2 + last_layer + MLP2 ----
    out_y, recon_y = stage3(y, A2, params["gcn_w"], out_x, sup2, L, Q,
                            params["bi1_w"], params["bi2_w"],
                            params["mlp2_w"], params["mlp2_b"],
                            k_appnp, alpha)

    P1 = jnp.swapaxes(S, 0, 1)           # dense analog of (assign_index, assign_weight)
    assign_mats = [(P1, S)]
    return out_x, sup1, out_y, sup2, assign_mats, recon_y


# --------------------------------------------------------------------------
if __name__ == "__main__":
    key = jax.random.PRNGKey(0)
    ks = jax.random.split(key, 8)

    in_dim, hid_dim, out_dim = 16, 32, 16
    n1, n2 = 32, 24
    temperature = 0.5

    def rand_adj(k, n, p=0.3):
        u = jax.random.uniform(k, (n, n))
        a = (u < p).astype(jnp.float32)
        a = jnp.maximum(a, a.T)                      # symmetric
        return a * (1.0 - jnp.eye(n, dtype=jnp.float32))

    x = jax.random.normal(ks[0], (n1, in_dim), jnp.float32)
    y = jax.random.normal(ks[1], (n2, in_dim), jnp.float32)
    A1 = rand_adj(ks[2], n1)
    A2 = rand_adj(ks[3], n2)

    num_anchor = 8                                   # anchor_links: node i <-> node i
    L = jnp.zeros((n1, n2), jnp.float32).at[
        jnp.arange(num_anchor), jnp.arange(num_anchor)].set(1.0)

    params = init_params(ks[4], in_dim, hid_dim, out_dim)

    fwd = jax.jit(lambda p, x_, a1_, y_, a2_, l_, t_:
                  nettrans_forward(p, x_, a1_, y_, a2_, l_, t_))
    out_x, sup1, out_y, sup2, assign_mats, recon_y = fwd(
        params, x, A1, y, A2, L, temperature)

    jax.block_until_ready((out_x, sup1, out_y, sup2, recon_y))
    num_sup = int(math.ceil(0.85 * n1))
    assert out_x.shape == (n1, hid_dim)
    assert out_y.shape == (n2, hid_dim)
    assert recon_y.shape == (n2, out_dim)
    assert sup1.shape == (num_sup, hid_dim) and sup2.shape == (num_sup, hid_dim)
    assert bool(jnp.isfinite(recon_y).all())
    print("KERNEL_OK")
</pallas_src>

<mosaic_0001>
module attributes {stable_mosaic.version = 11 : i64} {
  func.func @_stage1_kernel(%arg0: memref<32x16xf32, #tpu.memory_space<vmem>>, %arg1: memref<32x32xf32, #tpu.memory_space<vmem>>, %arg2: memref<16x32xf32, #tpu.memory_space<vmem>>, %arg3: memref<32x1xf32, #tpu.memory_space<vmem>>, %arg4: memref<1x1xf32, #tpu.memory_space<vmem>>, %arg5: memref<32x32xf32, #tpu.memory_space<vmem>>, %arg6: memref<32x128xf32, #tpu.memory_space<vmem>>) attributes {dimension_semantics = [], scalar_prefetch = 0 : i64, scratch_operands = 0 : i64, tpu.core_type = #tpu.core_type<tc>} {
    %c0 = arith.constant 0 : index
    %c0_0 = arith.constant 0 : index
    %0 = vector.load %arg1[%c0, %c0_0] : memref<32x32xf32, #tpu.memory_space<vmem>>, vector<32x32xf32>
    %1 = tpu.iota {dimensions = array<i32: 0>} : vector<32x32xi32>
    %2 = tpu.iota {dimensions = array<i32: 1>} : vector<32x32xi32>
    %3 = arith.cmpi eq, %1, %2 : vector<32x32xi32>
    %4 = arith.extui %3 : vector<32x32xi1> to vector<32x32xi32>
    %5 = arith.sitofp %4 : vector<32x32xi32> to vector<32x32xf32>
    %cst = arith.constant dense<0.000000e+00> : vector<32xf32>
    %6 = vector.multi_reduction <add>, %0, %cst [1] : vector<32x32xf32> to vector<32xf32>
    %7 = vector.shape_cast %6 : vector<32xf32> to vector<32x1xf32>
    %cst_1 = arith.constant dense<0.000000e+00> : vector<32xf32>
    %8 = vector.multi_reduction <add>, %0, %cst_1 [0] : vector<32x32xf32> to vector<32xf32>
    %9 = vector.shape_cast %8 : vector<32xf32> to vector<1x32xf32>
    %cst_2 = arith.constant 0.000000e+00 : f32
    %10 = vector.broadcast %cst_2 : f32 to vector<32x1xf32>
    %11 = arith.cmpf ogt, %7, %10 : vector<32x1xf32>
    %12 = math.rsqrt %7 : vector<32x1xf32>
    %cst_3 = arith.constant 0.000000e+00 : f32
    %13 = vector.broadcast %cst_3 : f32 to vector<32x1xf32>
    %14 = arith.select %11, %12, %13 : vector<32x1xi1>, vector<32x1xf32>
    %cst_4 = arith.constant 0.000000e+00 : f32
    %15 = vector.broadcast %cst_4 : f32 to vector<1x32xf32>
    %16 = arith.cmpf ogt, %9, %15 : vector<1x32xf32>
    %17 = math.rsqrt %9 : vector<1x32xf32>
    %cst_5 = arith.constant 0.000000e+00 : f32
    %18 = vector.broadcast %cst_5 : f32 to vector<1x32xf32>
    %19 = arith.select %16, %17, %18 : vector<1x32xi1>, vector<1x32xf32>
    %20 = vector.broadcast %14 : vector<32x1xf32> to vector<32x32xf32>
    %21 = arith.mulf %20, %0 : vector<32x32xf32>
    %22 = vector.broadcast %19 : vector<1x32xf32> to vector<32x32xf32>
    %23 = arith.mulf %21, %22 : vector<32x32xf32>
    %c0_6 = arith.constant 0 : index
    %c0_7 = arith.constant 0 : index
    %24 = vector.load %arg0[%c0_6, %c0_7] : memref<32x16xf32, #tpu.memory_space<vmem>>, vector<32x16xf32>
    %c0_8 = arith.constant 0 : index
    %c0_9 = arith.constant 0 : index
    %25 = vector.load %arg2[%c0_8, %c0_9] : memref<16x32xf32, #tpu.memory_space<vmem>>, vector<16x32xf32>
    %cst_10 = arith.constant dense<0.000000e+00> : vector<32x32xf32>
    %26 = tpu.matmul %24, %25, %cst_10 {dimension_numbers = #tpu.dot_dimension_numbers<[1], [0], [0], [1], [0, 0, 1, 1], [], []>} : vector<32x16xf32>, vector<16x32xf32>, vector<32x32xf32> -> vector<32x32xf32>
    %cst_11 = arith.constant dense<0.000000e+00> : vector<32x32xf32>
    %27 = tpu.matmul %23, %26, %cst_11 {dimension_numbers = #tpu.dot_dimension_numbers<[1], [0], [0], [1], [0, 0, 1, 1], [], []>} : vector<32x32xf32>, vector<32x32xf32>, vector<32x32xf32> -> vector<32x32xf32>
    %cst_12 = arith.constant 5.000000e-01 : f32
    %28 = vector.broadcast %cst_12 : f32 to vector<32x32xf32>
    %29 = arith.mulf %28, %27 : vector<32x32xf32>
    %cst_13 = arith.constant 5.000000e-01 : f32
    %30 = vector.broadcast %cst_13 : f32 to vector<32x32xf32>
    %31 = arith.mulf %30, %26 : vector<32x32xf32>
    %32 = arith.addf %29, %31 : vector<32x32xf32>
    %cst_14 = arith.constant dense<0.000000e+00> : vector<32x32xf32>
    %33 = tpu.matmul %23, %32, %cst_14 {dimension_numbers = #tpu.dot_dimension_numbers<[1], [0], [0], [1], [0, 0, 1, 1], [], []>} : vector<32x32xf32>, vector<32x32xf32>, vector<32x32xf32> -> vector<32x32xf32>
    %cst_15 = arith.constant 5.000000e-01 : f32
    %34 = vector.broadcast %cst_15 : f32 to vector<32x32xf32>
    %35 = arith.mulf %34, %33 : vector<32x32xf32>
    %cst_16 = arith.constant 5.000000e-01 : f32
    %36 = vector.broadcast %cst_16 : f32 to vector<32x32xf32>
    %37 = arith.mulf %36, %26 : vector<32x32xf32>
    %38 = arith.addf %35, %37 : vector<32x32xf32>
    %cst_17 = arith.constant dense<0.000000e+00> : vector<32x32xf32>
    %39 = tpu.matmul %23, %38, %cst_17 {dimension_numbers = #tpu.dot_dimension_numbers<[1], [0], [0], [1], [0, 0, 1, 1], [], []>} : vector<32x32xf32>, vector<32x32xf32>, vector<32x32xf32> -> vector<32x32xf32>
    %cst_18 = arith.constant 5.000000e-01 : f32
    %40 = vector.broadcast %cst_18 : f32 to vector<32x32xf32>
    %41 = arith.mulf %40, %39 : vector<32x32xf32>
    %cst_19 = arith.constant 5.000000e-01 : f32
    %42 = vector.broadcast %cst_19 : f32 to vector<32x32xf32>
    %43 = arith.mulf %42, %26 : vector<32x32xf32>
    %44 = arith.addf %41, %43 : vector<32x32xf32>
    %cst_20 = arith.constant dense<0.000000e+00> : vector<32x32xf32>
    %45 = tpu.matmul %23, %44, %cst_20 {dimension_numbers = #tpu.dot_dimension_numbers<[1], [0], [0], [1], [0, 0, 1, 1], [], []>} : vector<32x32xf32>, vector<32x32xf32>, vector<32x32xf32> -> vector<32x32xf32>
    %cst_21 = arith.constant 5.000000e-01 : f32
    %46 = vector.broadcast %cst_21 : f32 to vector<32x32xf32>
    %47 = arith.mulf %46, %45 : vector<32x32xf32>
    %cst_22 = arith.constant 5.000000e-01 : f32
    %48 = vector.broadcast %cst_22 : f32 to vector<32x32xf32>
    %49 = arith.mulf %48, %26 : vector<32x32xf32>
    %50 = arith.addf %47, %49 : vector<32x32xf32>
    %cst_23 = arith.constant dense<0.000000e+00> : vector<32x32xf32>
    %51 = tpu.matmul %23, %50, %cst_23 {dimension_numbers = #tpu.dot_dimension_numbers<[1], [0], [0], [1], [0, 0, 1, 1], [], []>} : vector<32x32xf32>, vector<32x32xf32>, vector<32x32xf32> -> vector<32x32xf32>
    %cst_24 = arith.constant 5.000000e-01 : f32
    %52 = vector.broadcast %cst_24 : f32 to vector<32x32xf32>
    %53 = arith.mulf %52, %51 : vector<32x32xf32>
    %cst_25 = arith.constant 5.000000e-01 : f32
    %54 = vector.broadcast %cst_25 : f32 to vector<32x32xf32>
    %55 = arith.mulf %54, %26 : vector<32x32xf32>
    %56 = arith.addf %53, %55 : vector<32x32xf32>
    %cst_26 = arith.constant dense<0.000000e+00> : vector<32x32xf32>
    %57 = tpu.matmul %23, %56, %cst_26 {dimension_numbers = #tpu.dot_dimension_numbers<[1], [0], [0], [1], [0, 0, 1, 1], [], []>} : vector<32x32xf32>, vector<32x32xf32>, vector<32x32xf32> -> vector<32x32xf32>
    %cst_27 = arith.constant 5.000000e-01 : f32
    %58 = vector.broadcast %cst_27 : f32 to vector<32x32xf32>
    %59 = arith.mulf %58, %57 : vector<32x32xf32>
    %cst_28 = arith.constant 5.000000e-01 : f32
    %60 = vector.broadcast %cst_28 : f32 to vector<32x32xf32>
    %61 = arith.mulf %60, %26 : vector<32x32xf32>
    %62 = arith.addf %59, %61 : vector<32x32xf32>
    %cst_29 = arith.constant dense<0.000000e+00> : vector<32x32xf32>
    %63 = tpu.matmul %23, %62, %cst_29 {dimension_numbers = #tpu.dot_dimension_numbers<[1], [0], [0], [1], [0, 0, 1, 1], [], []>} : vector<32x32xf32>, vector<32x32xf32>, vector<32x32xf32> -> vector<32x32xf32>
    %cst_30 = arith.constant 5.000000e-01 : f32
    %64 = vector.broadcast %cst_30 : f32 to vector<32x32xf32>
    %65 = arith.mulf %64, %63 : vector<32x32xf32>
    %cst_31 = arith.constant 5.000000e-01 : f32
    %66 = vector.broadcast %cst_31 : f32 to vector<32x32xf32>
    %67 = arith.mulf %66, %26 : vector<32x32xf32>
    %68 = arith.addf %65, %67 : vector<32x32xf32>
    %cst_32 = arith.constant dense<0.000000e+00> : vector<32x32xf32>
    %69 = tpu.matmul %23, %68, %cst_32 {dimension_numbers = #tpu.dot_dimension_numbers<[1], [0], [0], [1], [0, 0, 1, 1], [], []>} : vector<32x32xf32>, vector<32x32xf32>, vector<32x32xf32> -> vector<32x32xf32>
    %cst_33 = arith.constant 5.000000e-01 : f32
    %70 = vector.broadcast %cst_33 : f32 to vector<32x32xf32>
    %71 = arith.mulf %70, %69 : vector<32x32xf32>
    %cst_34 = arith.constant 5.000000e-01 : f32
    %72 = vector.broadcast %cst_34 : f32 to vector<32x32xf32>
    %73 = arith.mulf %72, %26 : vector<32x32xf32>
    %74 = arith.addf %71, %73 : vector<32x32xf32>
    %cst_35 = arith.constant dense<0.000000e+00> : vector<32x32xf32>
    %75 = tpu.matmul %23, %74, %cst_35 {dimension_numbers = #tpu.dot_dimension_numbers<[1], [0], [0], [1], [0, 0, 1, 1], [], []>} : vector<32x32xf32>, vector<32x32xf32>, vector<32x32xf32> -> vector<32x32xf32>
    %cst_36 = arith.constant 5.000000e-01 : f32
    %76 = vector.broadcast %cst_36 : f32 to vector<32x32xf32>
    %77 = arith.mulf %76, %75 : vector<32x32xf32>
    %cst_37 = arith.constant 5.000000e-01 : f32
    %78 = vector.broadcast %cst_37 : f32 to vector<32x32xf32>
    %79 = arith.mulf %78, %26 : vector<32x32xf32>
    %80 = arith.addf %77, %79 : vector<32x32xf32>
    %cst_38 = arith.constant dense<0.000000e+00> : vector<32x32xf32>
    %81 = tpu.matmul %23, %80, %cst_38 {dimension_numbers = #tpu.dot_dimension_numbers<[1], [0], [0], [1], [0, 0, 1, 1], [], []>} : vector<32x32xf32>, vector<32x32xf32>, vector<32x32xf32> -> vector<32x32xf32>
    %cst_39 = arith.constant 5.000000e-01 : f32
    %82 = vector.broadcast %cst_39 : f32 to vector<32x32xf32>
    %83 = arith.mulf %82, %81 : vector<32x32xf32>
    %cst_40 = arith.constant 5.000000e-01 : f32
    %84 = vector.broadcast %cst_40 : f32 to vector<32x32xf32>
    %85 = arith.mulf %84, %26 : vector<32x32xf32>
    %86 = arith.addf %83, %85 : vector<32x32xf32>
    %c0_41 = arith.constant 0 : index
    %c0_42 = arith.constant 0 : index
    %87 = vector.load %arg5[%c0_41, %c0_42] : memref<32x32xf32, #tpu.memory_space<vmem>>, vector<32x32xf32>
    tpu.vector_store %arg5[%c0_41, %c0_42], %86 {strides = array<i32>} : memref<32x32xf32, #tpu.memory_space<vmem>>, vector<32x32xf32>,
    %cst_43 = arith.constant 0.000000e+00 : f32
    %88 = vector.broadcast %cst_43 : f32 to vector<32x32xf32>
    %89 = arith.maximumf %86, %88 : vector<32x32xf32>
    %cst_44 = arith.constant 1.000000e+00 : f32
    %90 = vector.broadcast %cst_44 : f32 to vector<32x32xf32>
    %91 = arith.subf %90, %5 : vector<32x32xf32>
    %92 = arith.mulf %0, %91 : vector<32x32xf32>
    %93 = arith.addf %92, %5 : vector<32x32xf32>
    %cst_45 = arith.constant dense<0.000000e+00> : vector<32xf32>
    %94 = vector.multi_reduction <add>, %93, %cst_45 [1] : vector<32x32xf32> to vector<32xf32>
    %95 = vector.shape_cast %94 : vector<32xf32> to vector<32x1xf32>
    %cst_46 = arith.constant dense<0.000000e+00> : vector<32xf32>
    %96 = vector.multi_reduction <add>, %93, %cst_46 [0] : vector<32x32xf32> to vector<32xf32>
    %97 = vector.shape_cast %96 : vector<32xf32> to vector<1x32xf32>
    %cst_47 = arith.constant 0.000000e+00 : f32
    %98 = vector.broadcast %cst_47 : f32 to vector<32x1xf32>
    %99 = arith.cmpf ogt, %95, %98 : vector<32x1xf32>
    %100 = math.rsqrt %95 : vector<32x1xf32>
    %cst_48 = arith.constant 0.000000e+00 : f32
    %101 = vector.broadcast %cst_48 : f32 to vector<32x1xf32>
    %102 = arith.select %99, %100, %101 : vector<32x1xi1>, vector<32x1xf32>
    %cst_49 = arith.constant 0.000000e+00 : f32
    %103 = vector.broadcast %cst_49 : f32 to vector<1x32xf32>
    %104 = arith.cmpf ogt, %97, %103 : vector<1x32xf32>
    %105 = math.rsqrt %97 : vector<1x32xf32>
    %cst_50 = arith.constant 0.000000e+00 : f32
    %106 = vector.broadcast %cst_50 : f32 to vector<1x32xf32>
    %107 = arith.select %104, %105, %106 : vector<1x32xi1>, vector<1x32xf32>
    %108 = vector.broadcast %102 : vector<32x1xf32> to vector<32x32xf32>
    %109 = arith.mulf %108, %93 : vector<32x32xf32>
    %110 = vector.broadcast %107 : vector<1x32xf32> to vector<32x32xf32>
    %111 = arith.mulf %109, %110 : vector<32x32xf32>
    %c0_51 = arith.constant 0 : index
    %c0_52 = arith.constant 0 : index
    %112 = vector.load %arg3[%c0_51, %c0_52] : memref<32x1xf32, #tpu.memory_space<vmem>>, vector<32x1xf32>
    %cst_53 = arith.constant dense<0.000000e+00> : vector<32x1xf32>
    %113 = tpu.matmul %89, %112, %cst_53 {dimension_numbers = #tpu.dot_dimension_numbers<[1], [0], [0], [1], [0, 0, 1, 1], [], []>} : vector<32x32xf32>, vector<32x1xf32>, vector<32x1xf32> -> vector<32x1xf32>
    %cst_54 = arith.constant dense<0.000000e+00> : vector<32x1xf32>
    %114 = tpu.matmul %111, %113, %cst_54 {dimension_numbers = #tpu.dot_dimension_numbers<[1], [0], [0], [1], [0, 0, 1, 1], [], []>} : vector<32x32xf32>, vector<32x1xf32>, vector<32x1xf32> -> vector<32x1xf32>
    %c0_55 = arith.constant 0 : index
    %c0_56 = arith.constant 0 : index
    %115 = vector.load %arg4[%c0_55, %c0_56] : memref<1x1xf32, #tpu.memory_space<vmem>>, vector<1x1xf32>
    %116 = vector.broadcast %115 : vector<1x1xf32> to vector<32x1xf32>
    %117 = arith.addf %114, %116 : vector<32x1xf32>
    %118 = vector.shape_cast %117 : vector<32x1xf32> to vector<32x1xf32>
    %119 = vector.broadcast %118 : vector<32x1xf32> to vector<32x128xf32>
    %c0_57 = arith.constant 0 : index
    %c0_58 = arith.constant 0 : index
    %120 = vector.load %arg6[%c0_57, %c0_58] : memref<32x128xf32, #tpu.memory_space<vmem>>, vector<32x128xf32>
    tpu.vector_store %arg6[%c0_57, %c0_58], %119 {strides = array<i32>} : memref<32x128xf32, #tpu.memory_space<vmem>>, vector<32x128xf32>,
    return
  }
}

module attributes {stable_mosaic.version = 11 : i64} {
  func.func @_stage3_kernel(%arg0: memref<24x16xf32, #tpu.memory_space<vmem>>, %arg1: memref<24x24xf32, #tpu.memory_space<vmem>>, %arg2: memref<16x32xf32, #tpu.memory_space<vmem>>, %arg3: memref<32x32xf32, #tpu.memory_space<vmem>>, %arg4: memref<28x32xf32, #tpu.memory_space<vmem>>, %arg5: memref<32x24xf32, #tpu.memory_space<vmem>>, %arg6: memref<28x24xf32, #tpu.memory_space<vmem>>, %arg7: memref<32x32xf32, #tpu.memory_space<vmem>>, %arg8: memref<32x32xf32, #tpu.memory_space<vmem>>, %arg9: memref<32x16xf32, #tpu.memory_space<vmem>>, %arg10: memref<1x16xf32, #tpu.memory_space<vmem>>, %arg11: memref<24x32xf32, #tpu.memory_space<vmem>>, %arg12: memref<24x16xf32, #tpu.memory_space<vmem>>) attributes {dimension_semantics = [], scalar_prefetch = 0 : i64, scratch_operands = 0 : i64, tpu.core_type = #tpu.core_type<tc>} {
    %c0 = arith.constant 0 : index
    %c0_0 = arith.constant 0 : index
    %0 = vector.load %arg1[%c0, %c0_0] : memref<24x24xf32, #tpu.memory_space<vmem>>, vector<24x24xf32>
    %cst = arith.constant dense<0.000000e+00> : vector<24xf32>
    %1 = vector.multi_reduction <add>, %0, %cst [1] : vector<24x24xf32> to vector<24xf32>
    %2 = vector.shape_cast %1 : vector<24xf32> to vector<24x1xf32>
    %cst_1 = arith.constant dense<0.000000e+00> : vector<24xf32>
    %3 = vector.multi_reduction <add>, %0, %cst_1 [0] : vector<24x24xf32> to vector<24xf32>
    %4 = vector.shape_cast %3 : vector<24xf32> to vector<1x24xf32>
    %cst_2 = arith.constant 0.000000e+00 : f32
    %5 = vector.broadcast %cst_2 : f32 to vector<24x1xf32>
    %6 = arith.cmpf ogt, %2, %5 : vector<24x1xf32>
    %7 = math.rsqrt %2 : vector<24x1xf32>
    %cst_3 = arith.constant 0.000000e+00 : f32
    %8 = vector.broadcast %cst_3 : f32 to vector<24x1xf32>
    %9 = arith.select %6, %7, %8 : vector<24x1xi1>, vector<24x1xf32>
    %cst_4 = arith.constant 0.000000e+00 : f32
    %10 = vector.broadcast %cst_4 : f32 to vector<1x24xf32>
    %11 = arith.cmpf ogt, %4, %10 : vector<1x24xf32>
    %12 = math.rsqrt %4 : vector<1x24xf32>
    %cst_5 = arith.constant 0.000000e+00 : f32
    %13 = vector.broadcast %cst_5 : f32 to vector<1x24xf32>
    %14 = arith.select %11, %12, %13 : vector<1x24xi1>, vector<1x24xf32>
    %15 = vector.broadcast %9 : vector<24x1xf32> to vector<24x24xf32>
    %16 = arith.mulf %15, %0 : vector<24x24xf32>
    %17 = vector.broadcast %14 : vector<1x24xf32> to vector<24x24xf32>
    %18 = arith.mulf %16, %17 : vector<24x24xf32>
    %c0_6 = arith.constant 0 : index
    %c0_7 = arith.constant 0 : index
    %19 = vector.load %arg0[%c0_6, %c0_7] : memref<24x16xf32, #tpu.memory_space<vmem>>, vector<24x16xf32>
    %c0_8 = arith.constant 0 : index
    %c0_9 = arith.constant 0 : index
    %20 = vector.load %arg2[%c0_8, %c0_9] : memref<16x32xf32, #tpu.memory_space<vmem>>, vector<16x32xf32>
    %cst_10 = arith.constant dense<0.000000e+00> : vector<24x32xf32>
    %21 = tpu.matmul %19, %20, %cst_10 {dimension_numbers = #tpu.dot_dimension_numbers<[1], [0], [0], [1], [0, 0, 1, 1], [], []>} : vector<24x16xf32>, vector<16x32xf32>, vector<24x32xf32> -> vector<24x32xf32>
    %cst_11 = arith.constant dense<0.000000e+00> : vector<24x32xf32>
    %22 = tpu.matmul %18, %21, %cst_11 {dimension_numbers = #tpu.dot_dimension_numbers<[1], [0], [0], [1], [0, 0, 1, 1], [], []>} : vector<24x24xf32>, vector<24x32xf32>, vector<24x32xf32> -> vector<24x32xf32>
    %cst_12 = arith.constant 5.000000e-01 : f32
    %23 = vector.broadcast %cst_12 : f32 to vector<24x32xf32>
    %24 = arith.mulf %23, %22 : vector<24x32xf32>
    %cst_13 = arith.constant 5.000000e-01 : f32
    %25 = vector.broadcast %cst_13 : f32 to vector<24x32xf32>
    %26 = arith.mulf %25, %21 : vector<24x32xf32>
    %27 = arith.addf %24, %26 : vector<24x32xf32>
    %cst_14 = arith.constant dense<0.000000e+00> : vector<24x32xf32>
    %28 = tpu.matmul %18, %27, %cst_14 {dimension_numbers = #tpu.dot_dimension_numbers<[1], [0], [0], [1], [0, 0, 1, 1], [], []>} : vector<24x24xf32>, vector<24x32xf32>, vector<24x32xf32> -> vector<24x32xf32>
    %cst_15 = arith.constant 5.000000e-01 : f32
    %29 = vector.broadcast %cst_15 : f32 to vector<24x32xf32>
    %30 = arith.mulf %29, %28 : vector<24x32xf32>
    %cst_16 = arith.constant 5.000000e-01 : f32
    %31 = vector.broadcast %cst_16 : f32 to vector<24x32xf32>
    %32 = arith.mulf %31, %21 : vector<24x32xf32>
    %33 = arith.addf %30, %32 : vector<24x32xf32>
    %cst_17 = arith.constant dense<0.000000e+00> : vector<24x32xf32>
    %34 = tpu.matmul %18, %33, %cst_17 {dimension_numbers = #tpu.dot_dimension_numbers<[1], [0], [0], [1], [0, 0, 1, 1], [], []>} : vector<24x24xf32>, vector<24x32xf32>, vector<24x32xf32> -> vector<24x32xf32>
    %cst_18 = arith.constant 5.000000e-01 : f32
    %35 = vector.broadcast %cst_18 : f32 to vector<24x32xf32>
    %36 = arith.mulf %35, %34 : vector<24x32xf32>
    %cst_19 = arith.constant 5.000000e-01 : f32
    %37 = vector.broadcast %cst_19 : f32 to vector<24x32xf32>
    %38 = arith.mulf %37, %21 : vector<24x32xf32>
    %39 = arith.addf %36, %38 : vector<24x32xf32>
    %cst_20 = arith.constant dense<0.000000e+00> : vector<24x32xf32>
    %40 = tpu.matmul %18, %39, %cst_20 {dimension_numbers = #tpu.dot_dimension_numbers<[1], [0], [0], [1], [0, 0, 1, 1], [], []>} : vector<24x24xf32>, vector<24x32xf32>, vector<24x32xf32> -> vector<24x32xf32>
    %cst_21 = arith.constant 5.000000e-01 : f32
    %41 = vector.broadcast %cst_21 : f32 to vector<24x32xf32>
    %42 = arith.mulf %41, %40 : vector<24x32xf32>
    %cst_22 = arith.constant 5.000000e-01 : f32
    %43 = vector.broadcast %cst_22 : f32 to vector<24x32xf32>
    %44 = arith.mulf %43, %21 : vector<24x32xf32>
    %45 = arith.addf %42, %44 : vector<24x32xf32>
    %cst_23 = arith.constant dense<0.000000e+00> : vector<24x32xf32>
    %46 = tpu.matmul %18, %45, %cst_23 {dimension_numbers = #tpu.dot_dimension_numbers<[1], [0], [0], [1], [0, 0, 1, 1], [], []>} : vector<24x24xf32>, vector<24x32xf32>, vector<24x32xf32> -> vector<24x32xf32>
    %cst_24 = arith.constant 5.000000e-01 : f32
    %47 = vector.broadcast %cst_24 : f32 to vector<24x32xf32>
    %48 = arith.mulf %47, %46 : vector<24x32xf32>
    %cst_25 = arith.constant 5.000000e-01 : f32
    %49 = vector.broadcast %cst_25 : f32 to vector<24x32xf32>
    %50 = arith.mulf %49, %21 : vector<24x32xf32>
    %51 = arith.addf %48, %50 : vector<24x32xf32>
    %cst_26 = arith.constant dense<0.000000e+00> : vector<24x32xf32>
    %52 = tpu.matmul %18, %51, %cst_26 {dimension_numbers = #tpu.dot_dimension_numbers<[1], [0], [0], [1], [0, 0, 1, 1], [], []>} : vector<24x24xf32>, vector<24x32xf32>, vector<24x32xf32> -> vector<24x32xf32>
    %cst_27 = arith.constant 5.000000e-01 : f32
    %53 = vector.broadcast %cst_27 : f32 to vector<24x32xf32>
    %54 = arith.mulf %53, %52 : vector<24x32xf32>
    %cst_28 = arith.constant 5.000000e-01 : f32
    %55 = vector.broadcast %cst_28 : f32 to vector<24x32xf32>
    %56 = arith.mulf %55, %21 : vector<24x32xf32>
    %57 = arith.addf %54, %56 : vector<24x32xf32>
    %cst_29 = arith.constant dense<0.000000e+00> : vector<24x32xf32>
    %58 = tpu.matmul %18, %57, %cst_29 {dimension_numbers = #tpu.dot_dimension_numbers<[1], [0], [0], [1], [0, 0, 1, 1], [], []>} : vector<24x24xf32>, vector<24x32xf32>, vector<24x32xf32> -> vector<24x32xf32>
    %cst_30 = arith.constant 5.000000e-01 : f32
    %59 = vector.broadcast %cst_30 : f32 to vector<24x32xf32>
    %60 = arith.mulf %59, %58 : vector<24x32xf32>
    %cst_31 = arith.constant 5.000000e-01 : f32
    %61 = vector.broadcast %cst_31 : f32 to vector<24x32xf32>
    %62 = arith.mulf %61, %21 : vector<24x32xf32>
    %63 = arith.addf %60, %62 : vector<24x32xf32>
    %cst_32 = arith.constant dense<0.000000e+00> : vector<24x32xf32>
    %64 = tpu.matmul %18, %63, %cst_32 {dimension_numbers = #tpu.dot_dimension_numbers<[1], [0], [0], [1], [0, 0, 1, 1], [], []>} : vector<24x24xf32>, vector<24x32xf32>, vector<24x32xf32> -> vector<24x32xf32>
    %cst_33 = arith.constant 5.000000e-01 : f32
    %65 = vector.broadcast %cst_33 : f32 to vector<24x32xf32>
    %66 = arith.mulf %65, %64 : vector<24x32xf32>
    %cst_34 = arith.constant 5.000000e-01 : f32
    %67 = vector.broadcast %cst_34 : f32 to vector<24x32xf32>
    %68 = arith.mulf %67, %21 : vector<24x32xf32>
    %69 = arith.addf %66, %68 : vector<24x32xf32>
    %cst_35 = arith.constant dense<0.000000e+00> : vector<24x32xf32>
    %70 = tpu.matmul %18, %69, %cst_35 {dimension_numbers = #tpu.dot_dimension_numbers<[1], [0], [0], [1], [0, 0, 1, 1], [], []>} : vector<24x24xf32>, vector<24x32xf32>, vector<24x32xf32> -> vector<24x32xf32>
    %cst_36 = arith.constant 5.000000e-01 : f32
    %71 = vector.broadcast %cst_36 : f32 to vector<24x32xf32>
    %72 = arith.mulf %71, %70 : vector<24x32xf32>
    %cst_37 = arith.constant 5.000000e-01 : f32
    %73 = vector.broadcast %cst_37 : f32 to vector<24x32xf32>
    %74 = arith.mulf %73, %21 : vector<24x32xf32>
    %75 = arith.addf %72, %74 : vector<24x32xf32>
    %cst_38 = arith.constant dense<0.000000e+00> : vector<24x32xf32>
    %76 = tpu.matmul %18, %75, %cst_38 {dimension_numbers = #tpu.dot_dimension_numbers<[1], [0], [0], [1], [0, 0, 1, 1], [], []>} : vector<24x24xf32>, vector<24x32xf32>, vector<24x32xf32> -> vector<24x32xf32>
    %cst_39 = arith.constant 5.000000e-01 : f32
    %77 = vector.broadcast %cst_39 : f32 to vector<24x32xf32>
    %78 = arith.mulf %77, %76 : vector<24x32xf32>
    %cst_40 = arith.constant 5.000000e-01 : f32
    %79 = vector.broadcast %cst_40 : f32 to vector<24x32xf32>
    %80 = arith.mulf %79, %21 : vector<24x32xf32>
    %81 = arith.addf %78, %80 : vector<24x32xf32>
    %c0_41 = arith.constant 0 : index
    %c0_42 = arith.constant 0 : index
    %82 = vector.load %arg5[%c0_41, %c0_42] : memref<32x24xf32, #tpu.memory_space<vmem>>, vector<32x24xf32>
    %c0_43 = arith.constant 0 : index
    %c0_44 = arith.constant 0 : index
    %83 = vector.load %arg3[%c0_43, %c0_44] : memref<32x32xf32, #tpu.memory_space<vmem>>, vector<32x32xf32>
    %cst_45 = arith.constant dense<0.000000e+00> : vector<24x32xf32>
    %84 = tpu.matmul %82, %83, %cst_45 {dimension_numbers = #tpu.dot_dimension_numbers<[0], [0], [1], [1], [0, 1, 1, 1], [], []>} : vector<32x24xf32>, vector<32x32xf32>, vector<24x32xf32> -> vector<24x32xf32>
    %c0_46 = arith.constant 0 : index
    %c0_47 = arith.constant 0 : index
    %85 = vector.load %arg8[%c0_46, %c0_47] : memref<32x32xf32, #tpu.memory_space<vmem>>, vector<32x32xf32>
    %cst_48 = arith.constant dense<0.000000e+00> : vector<24x32xf32>
    %86 = tpu.matmul %84, %85, %cst_48 {dimension_numbers = #tpu.dot_dimension_numbers<[1], [0], [0], [1], [0, 0, 1, 1], [], []>} : vector<24x32xf32>, vector<32x32xf32>, vector<24x32xf32> -> vector<24x32xf32>
    %c0_49 = arith.constant 0 : index
    %c0_50 = arith.constant 0 : index
    %87 = vector.load %arg6[%c0_49, %c0_50] : memref<28x24xf32, #tpu.memory_space<vmem>>, vector<28x24xf32>
    %c0_51 = arith.constant 0 : index
    %c0_52 = arith.constant 0 : index
    %88 = vector.load %arg4[%c0_51, %c0_52] : memref<28x32xf32, #tpu.memory_space<vmem>>, vector<28x32xf32>
    %cst_53 = arith.constant dense<0.000000e+00> : vector<24x32xf32>
    %89 = tpu.matmul %87, %88, %cst_53 {dimension_numbers = #tpu.dot_dimension_numbers<[0], [0], [1], [1], [0, 1, 1, 1], [], []>} : vector<28x24xf32>, vector<28x32xf32>, vector<24x32xf32> -> vector<24x32xf32>
    %c0_54 = arith.constant 0 : index
    %c0_55 = arith.constant 0 : index
    %90 = vector.load %arg7[%c0_54, %c0_55] : memref<32x32xf32, #tpu.memory_space<vmem>>, vector<32x32xf32>
    %cst_56 = arith.constant dense<0.000000e+00> : vector<24x32xf32>
    %91 = tpu.matmul %89, %90, %cst_56 {dimension_numbers = #tpu.dot_dimension_numbers<[1], [0], [0], [1], [0, 0, 1, 1], [], []>} : vector<24x32xf32>, vector<32x32xf32>, vector<24x32xf32> -> vector<24x32xf32>
    %92 = arith.addf %86, %91 : vector<24x32xf32>
    %93 = arith.addf %81, %92 : vector<24x32xf32>
    %c0_57 = arith.constant 0 : index
    %c0_58 = arith.constant 0 : index
    %94 = vector.load %arg11[%c0_57, %c0_58] : memref<24x32xf32, #tpu.memory_space<vmem>>, vector<24x32xf32>
    tpu.vector_store %arg11[%c0_57, %c0_58], %93 {strides = array<i32>} : memref<24x32xf32, #tpu.memory_space<vmem>>, vector<24x32xf32>,
    %c0_59 = arith.constant 0 : index
    %c0_60 = arith.constant 0 : index
    %95 = vector.load %arg9[%c0_59, %c0_60] : memref<32x16xf32, #tpu.memory_space<vmem>>, vector<32x16xf32>
    %cst_61 = arith.constant dense<0.000000e+00> : vector<24x16xf32>
    %96 = tpu.matmul %93, %95, %cst_61 {dimension_numbers = #tpu.dot_dimension_numbers<[1], [0], [0], [1], [0, 0, 1, 1], [], []>} : vector<24x32xf32>, vector<32x16xf32>, vector<24x16xf32> -> vector<24x16xf32>
    %c0_62 = arith.constant 0 : index
    %c0_63 = arith.constant 0 : index
    %97 = vector.load %arg10[%c0_62, %c0_63] : memref<1x16xf32, #tpu.memory_space<vmem>>, vector<1x16xf32>
    %98 = vector.broadcast %97 : vector<1x16xf32> to vector<24x16xf32>
    %99 = arith.addf %96, %98 : vector<24x16xf32>
    %c0_64 = arith.constant 0 : index
    %c0_65 = arith.constant 0 : index
    %100 = vector.load %arg12[%c0_64, %c0_65] : memref<24x16xf32, #tpu.memory_space<vmem>>, vector<24x16xf32>
    tpu.vector_store %arg12[%c0_64, %c0_65], %99 {strides = array<i32>} : memref<24x16xf32, #tpu.memory_space<vmem>>, vector<24x16xf32>,
    return
  }
}

module attributes {stable_mosaic.version = 11 : i64} {
  func.func @_stage2_kernel(%arg0: memref<32x32xf32, #tpu.memory_space<vmem>>, %arg1: memref<32x32xf32, #tpu.memory_space<vmem>>, %arg2: memref<28x32xf32, #tpu.memory_space<vmem>>, %arg3: memref<32x28xf32, #tpu.memory_space<vmem>>, %arg4: memref<32x32xf32, #tpu.memory_space<vmem>>, %arg5: memref<1x32xf32, #tpu.memory_space<vmem>>, %arg6: memref<32x32xf32, #tpu.memory_space<vmem>>, %arg7: memref<1x32xf32, #tpu.memory_space<vmem>>, %arg8: memref<32x32xf32, #tpu.memory_space<vmem>>, %arg9: memref<1x32xf32, #tpu.memory_space<vmem>>, %arg10: memref<32x24xf32, #tpu.memory_space<vmem>>, %arg11: memref<1xf32, #tpu.memory_space<smem>>, %arg12: memref<28x32xf32, #tpu.memory_space<vmem>>, %arg13: memref<28x32xf32, #tpu.memory_space<vmem>>, %arg14: memref<32x28xf32, #tpu.memory_space<vmem>>, %arg15: memref<28x24xf32, #tpu.memory_space<vmem>>) attributes {dimension_semantics = [], scalar_prefetch = 0 : i64, scratch_operands = 0 : i64, tpu.core_type = #tpu.core_type<tc>} {
    %c0 = arith.constant 0 : index
    %c0_0 = arith.constant 0 : index
    %0 = vector.load %arg0[%c0, %c0_0] : memref<32x32xf32, #tpu.memory_space<vmem>>, vector<32x32xf32>
    %c0_1 = arith.constant 0 : index
    %c0_2 = arith.constant 0 : index
    %1 = vector.load %arg2[%c0_1, %c0_2] : memref<28x32xf32, #tpu.memory_space<vmem>>, vector<28x32xf32>
    %c0_3 = arith.constant 0 : index
    %c0_4 = arith.constant 0 : index
    %2 = vector.load %arg3[%c0_3, %c0_4] : memref<32x28xf32, #tpu.memory_space<vmem>>, vector<32x28xf32>
    %3 = tpu.iota {dimensions = array<i32: 0>} : vector<32x32xi32>
    %4 = tpu.iota {dimensions = array<i32: 1>} : vector<32x32xi32>
    %5 = arith.cmpi eq, %3, %4 : vector<32x32xi32>
    %6 = arith.extui %5 : vector<32x32xi1> to vector<32x32xi32>
    %7 = arith.sitofp %6 : vector<32x32xi32> to vector<32x32xf32>
    %8 = tpu.iota {dimensions = array<i32: 0>} : vector<28x28xi32>
    %9 = tpu.iota {dimensions = array<i32: 1>} : vector<28x28xi32>
    %10 = arith.cmpi eq, %8, %9 : vector<28x28xi32>
    %11 = arith.extui %10 : vector<28x28xi1> to vector<28x28xi32>
    %12 = arith.sitofp %11 : vector<28x28xi32> to vector<28x28xf32>
    %cst = arith.constant 1.000000e+00 : f32
    %13 = vector.broadcast %cst : f32 to vector<32x32xf32>
    %14 = arith.subf %13, %7 : vector<32x32xf32>
    %15 = arith.mulf %0, %14 : vector<32x32xf32>
    %c0_5 = arith.constant 0 : index
    %c0_6 = arith.constant 0 : index
    %16 = vector.load %arg1[%c0_5, %c0_6] : memref<32x32xf32, #tpu.memory_space<vmem>>, vector<32x32xf32>
    %cst_7 = arith.constant 0.000000e+00 : f32
    %17 = vector.broadcast %cst_7 : f32 to vector<32x32xf32>
    %18 = arith.maximumf %16, %17 : vector<32x32xf32>
    %cst_8 = arith.constant dense<0.000000e+00> : vector<32xf32>
    %19 = vector.multi_reduction <add>, %2, %cst_8 [1] : vector<32x28xf32> to vector<32xf32>
    %20 = vector.shape_cast %19 : vector<32xf32> to vector<32x1xf32>
    %21 = vector.broadcast %20 : vector<32x1xf32> to vector<32x32xf32>
    %22 = arith.mulf %15, %21 : vector<32x32xf32>
    %23 = arith.addf %22, %7 : vector<32x32xf32>
    %cst_9 = arith.constant dense<0.000000e+00> : vector<32xf32>
    %24 = vector.multi_reduction <add>, %23, %cst_9 [1] : vector<32x32xf32> to vector<32xf32>
    %25 = vector.shape_cast %24 : vector<32xf32> to vector<32x1xf32>
    %cst_10 = arith.constant dense<0.000000e+00> : vector<32xf32>
    %26 = vector.multi_reduction <add>, %23, %cst_10 [0] : vector<32x32xf32> to vector<32xf32>
    %27 = vector.shape_cast %26 : vector<32xf32> to vector<1x32xf32>
    %cst_11 = arith.constant 0.000000e+00 : f32
    %28 = vector.broadcast %cst_11 : f32 to vector<32x1xf32>
    %29 = arith.cmpf ogt, %25, %28 : vector<32x1xf32>
    %30 = math.rsqrt %25 : vector<32x1xf32>
    %cst_12 = arith.constant 0.000000e+00 : f32
    %31 = vector.broadcast %cst_12 : f32 to vector<32x1xf32>
    %32 = arith.select %29, %30, %31 : vector<32x1xi1>, vector<32x1xf32>
    %cst_13 = arith.constant 0.000000e+00 : f32
    %33 = vector.broadcast %cst_13 : f32 to vector<1x32xf32>
    %34 = arith.cmpf ogt, %27, %33 : vector<1x32xf32>
    %35 = math.rsqrt %27 : vector<1x32xf32>
    %cst_14 = arith.constant 0.000000e+00 : f32
    %36 = vector.broadcast %cst_14 : f32 to vector<1x32xf32>
    %37 = arith.select %34, %35, %36 : vector<1x32xi1>, vector<1x32xf32>
    %38 = vector.broadcast %32 : vector<32x1xf32> to vector<32x32xf32>
    %39 = arith.mulf %38, %23 : vector<32x32xf32>
    %40 = vector.broadcast %37 : vector<1x32xf32> to vector<32x32xf32>
    %41 = arith.mulf %39, %40 : vector<32x32xf32>
    %c0_15 = arith.constant 0 : index
    %c0_16 = arith.constant 0 : index
    %42 = vector.load %arg4[%c0_15, %c0_16] : memref<32x32xf32, #tpu.memory_space<vmem>>, vector<32x32xf32>
    %cst_17 = arith.constant dense<0.000000e+00> : vector<32x32xf32>
    %43 = tpu.matmul %18, %42, %cst_17 {dimension_numbers = #tpu.dot_dimension_numbers<[1], [0], [0], [1], [0, 0, 1, 1], [], []>} : vector<32x32xf32>, vector<32x32xf32>, vector<32x32xf32> -> vector<32x32xf32>
    %cst_18 = arith.constant dense<0.000000e+00> : vector<32x32xf32>
    %44 = tpu.matmul %41, %43, %cst_18 {dimension_numbers = #tpu.dot_dimension_numbers<[1], [0], [0], [1], [0, 0, 1, 1], [], []>} : vector<32x32xf32>, vector<32x32xf32>, vector<32x32xf32> -> vector<32x32xf32>
    %c0_19 = arith.constant 0 : index
    %c0_20 = arith.constant 0 : index
    %45 = vector.load %arg5[%c0_19, %c0_20] : memref<1x32xf32, #tpu.memory_space<vmem>>, vector<1x32xf32>
    %46 = vector.broadcast %45 : vector<1x32xf32> to vector<32x32xf32>
    %47 = arith.addf %44, %46 : vector<32x32xf32>
    %cst_21 = arith.constant dense<0.000000e+00> : vector<28x32xf32>
    %48 = tpu.matmul %1, %47, %cst_21 {dimension_numbers = #tpu.dot_dimension_numbers<[1], [0], [0], [1], [0, 0, 1, 1], [], []>} : vector<28x32xf32>, vector<32x32xf32>, vector<28x32xf32> -> vector<28x32xf32>
    %cst_22 = arith.constant 0.000000e+00 : f32
    %49 = vector.broadcast %cst_22 : f32 to vector<28x32xf32>
    %50 = arith.maximumf %48, %49 : vector<28x32xf32>
    %cst_23 = arith.constant dense<0.000000e+00> : vector<32x28xf32>
    %51 = tpu.matmul %15, %2, %cst_23 {dimension_numbers = #tpu.dot_dimension_numbers<[0], [0], [1], [1], [0, 1, 1, 1], [], []>} : vector<32x32xf32>, vector<32x28xf32>, vector<32x28xf32> -> vector<32x28xf32>
    %52 = arith.maximumf %51, %2 : vector<32x28xf32>
    %cst_24 = arith.constant dense<0.000000e+00> : vector<32x28xf32>
    %53 = tpu.matmul %47, %50, %cst_24 {dimension_numbers = #tpu.dot_dimension_numbers<[1], [1], [0], [0], [0, 0, 1, 0], [], []>} : vector<32x32xf32>, vector<28x32xf32>, vector<32x28xf32> -> vector<32x28xf32>
    %cst_25 = arith.constant 0.000000e+00 : f32
    %54 = vector.broadcast %cst_25 : f32 to vector<32x28xf32>
    %55 = arith.cmpf ogt, %52, %54 : vector<32x28xf32>
    %56 = math.absf %53 : vector<32x28xf32>
    %cst_26 = arith.constant 0.000000e+00 : f32
    %57 = vector.broadcast %cst_26 : f32 to vector<32x28xf32>
    %58 = arith.subf %57, %56 : vector<32x28xf32>
    %59 = math.exp %58 : vector<32x28xf32>
    %cst_27 = arith.constant 1.000000e+00 : f32
    %60 = vector.broadcast %cst_27 : f32 to vector<32x28xf32>
    %61 = arith.addf %60, %59 : vector<32x28xf32>
    %62 = tpu.reciprocal %61 {approx = true} : vector<32x28xf32> -> vector<32x28xf32>
    %cst_28 = arith.constant 0.000000e+00 : f32
    %63 = vector.broadcast %cst_28 : f32 to vector<32x28xf32>
    %64 = arith.cmpf oge, %53, %63 : vector<32x28xf32>
    %cst_29 = arith.constant 1.000000e+00 : f32
    %65 = vector.broadcast %cst_29 : f32 to vector<32x28xf32>
    %66 = arith.subf %65, %62 : vector<32x28xf32>
    %67 = arith.select %64, %62, %66 : vector<32x28xi1>, vector<32x28xf32>
    %68 = arith.mulf %67, %52 : vector<32x28xf32>
    %cst_30 = arith.constant dense<0.000000e+00> : vector<32xf32>
    %69 = vector.multi_reduction <add>, %68, %cst_30 [1] : vector<32x28xf32> to vector<32xf32>
    %70 = vector.shape_cast %69 : vector<32xf32> to vector<32x1xf32>
    %cst_31 = arith.constant 0.000000e+00 : f32
    %71 = vector.broadcast %cst_31 : f32 to vector<32x1xf32>
    %72 = arith.cmpf ogt, %70, %71 : vector<32x1xf32>
    %cst_32 = arith.constant 9.99999968E-21 : f32
    %73 = vector.broadcast %cst_32 : f32 to vector<32x1xf32>
    %74 = arith.maximumf %70, %73 : vector<32x1xf32>
    %75 = tpu.reciprocal %74 {approx = true} : vector<32x1xf32> -> vector<32x1xf32>
    %76 = vector.broadcast %75 : vector<32x1xf32> to vector<32x28xf32>
    %77 = arith.mulf %68, %76 : vector<32x28xf32>
    %cst_33 = arith.constant 0.000000e+00 : f32
    %78 = vector.shape_cast %72 : vector<32x1xi1> to vector<32x1xi1>
    %79 = vector.broadcast %78 : vector<32x1xi1> to vector<32x28xi1>
    %80 = vector.broadcast %cst_33 : f32 to vector<32x28xf32>
    %81 = arith.select %79, %77, %80 : vector<32x28xi1>, vector<32x28xf32>
    %c0_34 = arith.constant 0 : index
    %82 = memref.load %arg11[%c0_34] : memref<1xf32, #tpu.memory_space<smem>>
    %cst_35 = arith.constant 9.99999968E-21 : f32
    %83 = vector.broadcast %cst_35 : f32 to vector<32x28xf32>
    %84 = arith.maximumf %81, %83 : vector<32x28xf32>
    %85 = math.log %84 : vector<32x28xf32>
    %86 = vector.broadcast %82 : f32 to vector<32x28xf32>
    %87 = arith.divf %85, %86 : vector<32x28xf32>
    %cst_36 = arith.constant -1.000000e+30 : f32
    %88 = vector.broadcast %cst_36 : f32 to vector<32x28xf32>
    %89 = arith.select %55, %87, %88 : vector<32x28xi1>, vector<32x28xf32>
    %cst_37 = arith.constant dense<0xFF800000> : vector<32xf32>
    %90 = vector.multi_reduction <maximumf>, %89, %cst_37 [1] : vector<32x28xf32> to vector<32xf32>
    %91 = vector.shape_cast %90 : vector<32xf32> to vector<32x1xf32>
    %92 = vector.broadcast %91 : vector<32x1xf32> to vector<32x28xf32>
    %93 = arith.subf %89, %92 : vector<32x28xf32>
    %94 = math.exp %93 : vector<32x28xf32>
    %cst_38 = arith.constant 0.000000e+00 : f32
    %95 = vector.broadcast %cst_38 : f32 to vector<32x28xf32>
    %96 = arith.select %55, %94, %95 : vector<32x28xi1>, vector<32x28xf32>
    %cst_39 = arith.constant dense<0.000000e+00> : vector<32xf32>
    %97 = vector.multi_reduction <add>, %96, %cst_39 [1] : vector<32x28xf32> to vector<32xf32>
    %98 = vector.shape_cast %97 : vector<32xf32> to vector<32x1xf32>
    %cst_40 = arith.constant 9.99999968E-21 : f32
    %99 = vector.broadcast %cst_40 : f32 to vector<32x1xf32>
    %100 = arith.maximumf %98, %99 : vector<32x1xf32>
    %101 = tpu.reciprocal %100 {approx = true} : vector<32x1xf32> -> vector<32x1xf32>
    %102 = vector.broadcast %101 : vector<32x1xf32> to vector<32x28xf32>
    %103 = arith.mulf %96, %102 : vector<32x28xf32>
    %cst_41 = arith.constant 0.0178571437 : f32
    %104 = vector.broadcast %cst_41 : f32 to vector<32x28xf32>
    %105 = arith.cmpf oge, %103, %104 : vector<32x28xf32>
    %cst_42 = arith.constant 0.000000e+00 : f32
    %106 = vector.broadcast %cst_42 : f32 to vector<32x28xf32>
    %107 = arith.select %105, %103, %106 : vector<32x28xi1>, vector<32x28xf32>
    %c0_43 = arith.constant 0 : index
    %c0_44 = arith.constant 0 : index
    %108 = vector.load %arg14[%c0_43, %c0_44] : memref<32x28xf32, #tpu.memory_space<vmem>>, vector<32x28xf32>
    tpu.vector_store %arg14[%c0_43, %c0_44], %107 {strides = array<i32>} : memref<32x28xf32, #tpu.memory_space<vmem>>, vector<32x28xf32>,
    %cst_45 = arith.constant dense<0.000000e+00> : vector<28x32xf32>
    %109 = tpu.matmul %107, %47, %cst_45 {dimension_numbers = #tpu.dot_dimension_numbers<[0], [0], [1], [1], [0, 1, 1, 1], [], []>} : vector<32x28xf32>, vector<32x32xf32>, vector<28x32xf32> -> vector<28x32xf32>
    %110 = arith.addf %50, %109 : vector<28x32xf32>
    %cst_46 = arith.constant 5.000000e-01 : f32
    %111 = vector.broadcast %cst_46 : f32 to vector<28x32xf32>
    %112 = arith.mulf %111, %110 : vector<28x32xf32>
    %cst_47 = arith.constant dense<0.000000e+00> : vector<28x32xf32>
    %113 = tpu.matmul %1, %15, %cst_47 {dimension_numbers = #tpu.dot_dimension_numbers<[1], [0], [0], [1], [0, 0, 1, 1], [], []>} : vector<28x32xf32>, vector<32x32xf32>, vector<28x32xf32> -> vector<28x32xf32>
    %cst_48 = arith.constant dense<0.000000e+00> : vector<28x28xf32>
    %114 = tpu.matmul %113, %1, %cst_48 {dimension_numbers = #tpu.dot_dimension_numbers<[1], [1], [0], [0], [0, 0, 1, 0], [], []>} : vector<28x32xf32>, vector<28x32xf32>, vector<28x28xf32> -> vector<28x28xf32>
    %cst_49 = arith.constant 1.000000e+00 : f32
    %115 = vector.broadcast %cst_49 : f32 to vector<28x28xf32>
    %116 = arith.subf %115, %12 : vector<28x28xf32>
    %117 = arith.mulf %114, %116 : vector<28x28xf32>
    %118 = arith.addf %117, %12 : vector<28x28xf32>
    %cst_50 = arith.constant dense<0.000000e+00> : vector<28xf32>
    %119 = vector.multi_reduction <add>, %118, %cst_50 [1] : vector<28x28xf32> to vector<28xf32>
    %120 = vector.shape_cast %119 : vector<28xf32> to vector<28x1xf32>
    %cst_51 = arith.constant dense<0.000000e+00> : vector<28xf32>
    %121 = vector.multi_reduction <add>, %118, %cst_51 [0] : vector<28x28xf32> to vector<28xf32>
    %122 = vector.shape_cast %121 : vector<28xf32> to vector<1x28xf32>
    %cst_52 = arith.constant 0.000000e+00 : f32
    %123 = vector.broadcast %cst_52 : f32 to vector<28x1xf32>
    %124 = arith.cmpf ogt, %120, %123 : vector<28x1xf32>
    %125 = math.rsqrt %120 : vector<28x1xf32>
    %cst_53 = arith.constant 0.000000e+00 : f32
    %126 = vector.broadcast %cst_53 : f32 to vector<28x1xf32>
    %127 = arith.select %124, %125, %126 : vector<28x1xi1>, vector<28x1xf32>
    %cst_54 = arith.constant 0.000000e+00 : f32
    %128 = vector.broadcast %cst_54 : f32 to vector<1x28xf32>
    %129 = arith.cmpf ogt, %122, %128 : vector<1x28xf32>
    %130 = math.rsqrt %122 : vector<1x28xf32>
    %cst_55 = arith.constant 0.000000e+00 : f32
    %131 = vector.broadcast %cst_55 : f32 to vector<1x28xf32>
    %132 = arith.select %129, %130, %131 : vector<1x28xi1>, vector<1x28xf32>
    %133 = vector.broadcast %127 : vector<28x1xf32> to vector<28x28xf32>
    %134 = arith.mulf %133, %118 : vector<28x28xf32>
    %135 = vector.broadcast %132 : vector<1x28xf32> to vector<28x28xf32>
    %136 = arith.mulf %134, %135 : vector<28x28xf32>
    %c0_56 = arith.constant 0 : index
    %c0_57 = arith.constant 0 : index
    %137 = vector.load %arg6[%c0_56, %c0_57] : memref<32x32xf32, #tpu.memory_space<vmem>>, vector<32x32xf32>
    %cst_58 = arith.constant dense<0.000000e+00> : vector<28x32xf32>
    %138 = tpu.matmul %112, %137, %cst_58 {dimension_numbers = #tpu.dot_dimension_numbers<[1], [0], [0], [1], [0, 0, 1, 1], [], []>} : vector<28x32xf32>, vector<32x32xf32>, vector<28x32xf32> -> vector<28x32xf32>
    %cst_59 = arith.constant dense<0.000000e+00> : vector<28x32xf32>
    %139 = tpu.matmul %136, %138, %cst_59 {dimension_numbers = #tpu.dot_dimension_numbers<[1], [0], [0], [1], [0, 0, 1, 1], [], []>} : vector<28x28xf32>, vector<28x32xf32>, vector<28x32xf32> -> vector<28x32xf32>
    %c0_60 = arith.constant 0 : index
    %c0_61 = arith.constant 0 : index
    %140 = vector.load %arg7[%c0_60, %c0_61] : memref<1x32xf32, #tpu.memory_space<vmem>>, vector<1x32xf32>
    %141 = vector.broadcast %140 : vector<1x32xf32> to vector<28x32xf32>
    %142 = arith.addf %139, %141 : vector<28x32xf32>
    %cst_62 = arith.constant 0.000000e+00 : f32
    %143 = vector.broadcast %cst_62 : f32 to vector<28x32xf32>
    %144 = arith.maximumf %142, %143 : vector<28x32xf32>
    %c0_63 = arith.constant 0 : index
    %c0_64 = arith.constant 0 : index
    %145 = vector.load %arg12[%c0_63, %c0_64] : memref<28x32xf32, #tpu.memory_space<vmem>>, vector<28x32xf32>
    tpu.vector_store %arg12[%c0_63, %c0_64], %144 {strides = array<i32>} : memref<28x32xf32, #tpu.memory_space<vmem>>, vector<28x32xf32>,
    %c0_65 = arith.constant 0 : index
    %c0_66 = arith.constant 0 : index
    %146 = vector.load %arg8[%c0_65, %c0_66] : memref<32x32xf32, #tpu.memory_space<vmem>>, vector<32x32xf32>
    %cst_67 = arith.constant dense<0.000000e+00> : vector<28x32xf32>
    %147 = tpu.matmul %144, %146, %cst_67 {dimension_numbers = #tpu.dot_dimension_numbers<[1], [0], [0], [1], [0, 0, 1, 1], [], []>} : vector<28x32xf32>, vector<32x32xf32>, vector<28x32xf32> -> vector<28x32xf32>
    %c0_68 = arith.constant 0 : index
    %c0_69 = arith.constant 0 : index
    %148 = vector.load %arg9[%c0_68, %c0_69] : memref<1x32xf32, #tpu.memory_space<vmem>>, vector<1x32xf32>
    %149 = vector.broadcast %148 : vector<1x32xf32> to vector<28x32xf32>
    %150 = arith.addf %147, %149 : vector<28x32xf32>
    %cst_70 = arith.constant 0.000000e+00 : f32
    %151 = vector.broadcast %cst_70 : f32 to vector<28x32xf32>
    %152 = arith.maximumf %150, %151 : vector<28x32xf32>
    %c0_71 = arith.constant 0 : index
    %c0_72 = arith.constant 0 : index
    %153 = vector.load %arg13[%c0_71, %c0_72] : memref<28x32xf32, #tpu.memory_space<vmem>>, vector<28x32xf32>
    tpu.vector_store %arg13[%c0_71, %c0_72], %152 {strides = array<i32>} : memref<28x32xf32, #tpu.memory_space<vmem>>, vector<28x32xf32>,
    %c0_73 = arith.constant 0 : index
    %c0_74 = arith.constant 0 : index
    %154 = vector.load %arg10[%c0_73, %c0_74] : memref<32x24xf32, #tpu.memory_space<vmem>>, vector<32x24xf32>
    %cst_75 = arith.constant dense<0.000000e+00> : vector<28x24xf32>
    %155 = tpu.matmul %107, %154, %cst_75 {dimension_numbers = #tpu.dot_dimension_numbers<[0], [0], [1], [1], [0, 1, 1, 1], [], []>} : vector<32x28xf32>, vector<32x24xf32>, vector<28x24xf32> -> vector<28x24xf32>
    %c0_76 = arith.constant 0 : index
    %c0_77 = arith.constant 0 : index
    %156 = vector.load %arg15[%c0_76, %c0_77] : memref<28x24xf32, #tpu.memory_space<vmem>>, vector<28x24xf32>
    tpu.vector_store %arg15[%c0_76, %c0_77], %155 {strides = array<i32>} : memref<28x24xf32, #tpu.memory_space<vmem>>, vector<28x24xf32>,
    return
  }
}

</mosaic_0001>

<bundles_post_ra>
// kernel: _lambda_.3
= control target key start
LH: loop header
LB: loop body
LE: loop exit
PB: predicated region body
PF: predicated region fallthrough
CT: control target
= control target key end

     0   :  { %vm98_vm0 = vcmask 130048   ;;  %vm47_vm1 = vcmask 261120   ;;  %s2202_s2 = inlined_call_operand.vmem [shape: f32[16,32], index: 2, kind: input, shape index: {}]   ;;  %s2203_s0 = inlined_call_operand.vmem [shape: f32[32,16], index: 0, kind: input, shape index: {}]   ;;  %s2204_s1 = inlined_call_operand.vmem [shape: f32[32,32], index: 1, kind: input, shape index: {}]   ;;  %s2205_s3 = inlined_call_operand.vmem [shape: f32[32,1], index: 3, kind: input, shape index: {}]   ;;  %s2206_s5 = inlined_call_operand.vmem [shape: f32[32,32], index: 5, kind: output, shape index: {0}]   ;;  %s2207_s4 = inlined_call_operand.<no memory space> [shape: f32[1,1], index: 4, kind: input, shape index: {}]   ;;  %s2208_s6 = inlined_call_operand.vmem [shape: f32[32,128], index: 6, kind: output, shape index: {1}]  }
   0x1   :  { %v96_v0 = vld [vmem:[%s2202_s2] sm:$0xff]  ;;  %v97_v1 = vld [vmem:[%s2202_s2 + $0x8] sm:$0xff]  ;;  %v1959_v5 = vld [vmem:[%s2204_s1 + $0x10] sm:$0xff] }
   0x2   :  { %v92_v2 = vld [vmem:[%s2203_s0] sm:$0xff]  ;;  %v1780_v3 = vpack.c.bf16 %v97_v1, %v96_v0  ;;  %v1964_v6 = vld [vmem:[%s2204_s1 + $0x8] sm:$0xff]  ;;  %v54_v8 = vsel %vm47_vm1, %v1959_v5, 0.0  ;;  %v1975_v10 = vld [vmem:[%s2204_s1 + $0x18] sm:$0xff] }
   0x3   :  { %1606 = vmatprep.mubr.msk.f32.mxu0 %vm98_vm0, %v92_v2  ;;  %v1954_v4 = vld [vmem:[%s2204_s1] sm:$0xff]  ;;  %v51_v9 = vsel %vm47_vm1, %v1964_v6, 0.0  ;;  %v93_v11 = vld [vmem:[%s2203_s0 + $0x8] sm:$0xff]  ;;  %v94_v13 = vld [vmem:[%s2203_s0 + $0x10] sm:$0xff]  ;;  %55 = vadd.xlane.f32.xlu1 %v54_v8  ;;  %v57_v14 = vsel %vm47_vm1, %v1975_v10, 0.0 }
   0x4   :  { %1781 = vmatprep.subr.bf16.mxu0 %v1780_v3  ;;  %v48_v7 = vsel %vm47_vm1, %v1954_v4, 0.0  ;;  %v95_v16 = vld [vmem:[%s2203_s0 + $0x18] sm:$0xff] }
   0x5   :  { %1783 = vmatpush3.bf16.msra.mxu0 %v1780_v3  ;;  %49 = vadd.xlane.f32.xlu0 %v48_v7  ;;  %v60_v12 = vadd.f32 %v51_v9, %v48_v7 }
   0x7   :  { %v61_v15 = vadd.f32 %v60_v12, %v54_v8  ;;  %58 = vadd.xlane.f32.xlu1 %v57_v14 }
   0x8   :  { %1607 = vmatmul.mubr.msk.f32.vlgmr.msra.gmra.mrb[0].mxu0 %vm98_vm0, %v93_v11 }
   0x9   :  { %1609 = vmatprep.mubr.msk.f32.mxu0 %vm98_vm0, %v94_v13  ;;  %52 = vadd.xlane.f32.xlu0 %v51_v9  ;;  %v62_v17 = vadd.f32 %v61_v15, %v57_v14 }
   0xb   :  { %v63_v18 = vrot.slane %v62_v17, 4 }
   0xc   :  { %1610 = vmatmul.mubr.msk.f32.gmra.mrb[2].mxu0 %vm98_vm0, %v95_v16 }
   0xd   :  { %v64_v19 = vadd.f32 %v63_v18, %v62_v17 }
   0xf   :  { %v65_v20 = vrot.slane %v64_v19, 2 }
  0x11   :  { %v66_v21 = vadd.f32 %v65_v20, %v64_v19 }
  0x13   :  { %v67_v22 = vrot.slane %v66_v21, 1 }
  0x15   :  { %v68_v23 = vadd.f32 %v67_v22, %v66_v21 }
  0x17   :  { %1884 = vrsqrt.f32 %v68_v23  ;;  %vm81_vm2 = vcmp.gt.f32.partialorder %v68_v23, 0.0 }
  0x21   :  { %v1885_v25 = vpop.eup %1884 }
  0x22   :  { %v83_v28 = vsel %vm81_vm2, %v1885_v25, 0.0 }
  0x90   :  { %v56_v31 = vpop.xlane.xlu1 %55 }
  0x91   :  { %vm71_vm5 = vcmp.gt.f32.partialorder %v56_v31, 0.0 }
  0x92   :  { %v50_v24 = vpop.xlane.xlu0 %49 }
  0x93   :  { %1886 = vrsqrt.f32 %v50_v24  ;;  %vm69_vm3 = vcmp.gt.f32.partialorder %v50_v24, 0.0 }
  0x94   :  { %v59_v33 = vpop.xlane.xlu1 %58 }
  0x95   :  { %vm72_vm6 = vcmp.gt.f32.partialorder %v59_v33, 0.0 }
  0x96   :  { %v53_v32 = vpop.xlane.xlu0 %52 }
  0x97   :  { %1888 = vrsqrt.f32 %v53_v32  ;;  %vm70_vm4 = vcmp.gt.f32.partialorder %v53_v32, 0.0 }
  0x98   :  { %1890 = vrsqrt.f32 %v56_v31 }
  0x99   :  { %1892 = vrsqrt.f32 %v59_v33 }
  0x9d   :  { %v1887_v26 = vpop.eup %1886 }
  0x9e   :  { %v77_v27 = vsel %vm69_vm3, %v1887_v26, 0.0 }
  0x9f   :  { %v84_v29 = vmul.f32 %v77_v27, %v1954_v4 }
  0xa1   :  { %v1992_v30 = vmul.f32 %v84_v29, %v83_v28  ;;  %v1889_v34 = vpop.eup %1888 }
  0xa2   :  { %v1891_v36 = vpop.eup %1890  ;;  %v78_v39 = vsel %vm70_vm4, %v1889_v34, 0.0 }
  0xa3   :  { %1620 = vmatprep.mubr.msk.f32.mxu1 %vm47_vm1, %v1992_v30  ;;  %1634 = vmatprep.mubr.msk.f32.mxu0 %vm47_vm1, %v1992_v30  ;;  %v1893_v40 = vpop.eup %1892  ;;  %v79_v41 = vsel %vm71_vm5, %v1891_v36, 0.0  ;;  %v85_v44 = vmul.f32 %v78_v39, %v1964_v6 }
  0xa4   :  { %v86_v46 = vmul.f32 %v79_v41, %v1959_v5  ;;  %v80_v47 = vsel %vm72_vm6, %v1893_v40, 0.0 }
  0xa5   :  { %v2000_v48 = vmul.f32 %v85_v44, %v83_v28  ;;  %v87_v49 = vmul.f32 %v80_v47, %v1975_v10 }
  0xa6   :  { %v2003_v50 = vmul.f32 %v86_v46, %v83_v28 }
  0xa7   :  { %v2009_v51 = vmul.f32 %v87_v49, %v83_v28 }
  0xdb   :  { %v1608_v35 = vpop.f32.mrb[0].mxu0 }
  0xdc   :  { %v177_v37 = vpop.f32.mrb[1].mxu0  ;;  %v2015_v53 = vmul.f32 0.5, %v1608_v35 }
  0xdd   :  { %v1784_v38 = vpack.c.bf16 %v1608_v35, %v177_v37  ;;  %v2017_v56 = vmul.f32 0.5, %v177_v37 }
  0xdf   :  { %v1611_v42 = vpop.f32.mrb[2].mxu0  ;;  %1785 = vmatprep.subr.bf16.mxu1 %v1784_v38 }
  0xe0   :  { %v187_v43 = vpop.f32.mrb[3].mxu0  ;;  %1787 = vmatpush3.bf16.msra.mxu1 %v1784_v38  ;;  %v2021_v61 = vmul.f32 0.5, %v1611_v42 }
  0xe1   :  { %v1788_v45 = vpack.c.bf16 %v1611_v42, %v187_v43  ;;  %v2023_v0 = vmul.f32 0.5, %v187_v43 }
  0xe3   :  { %1789 = vmatprep.subr.bf16.mxu1 %v1788_v45 }
  0xe4   :  { %1791 = vmatpush3.bf16.msra.mxu1 %v1788_v45 }
  0xe7   :  { %1621 = vmatmul.mubr.msk.f32.vlgmr.msra.gmra.mrb[0].mxu1 %vm47_vm1, %v2000_v48 }
  0xe8   :  { %1623 = vmatprep.mubr.msk.f32.mxu1 %vm47_vm1, %v2003_v50 }
  0xeb   :  { %1624 = vmatmul.mubr.msk.f32.gmra.mrb[2].mxu1 %vm47_vm1, %v2009_v51 }
  0xec   :  { %1648 = vmatprep.mubr.msk.f32.mxu1 %vm47_vm1, %v1992_v30 }
 0x1ba   :  { %v1622_v52 = vpop.f32.mrb[0].mxu1 }
 0x1bb   :  { %v294_v54 = vmul.f32 0.5, %v1622_v52  ;;  %v274_v55 = vpop.f32.mrb[1].mxu1 }
 0x1bc   :  { %v293_v57 = vmul.f32 0.5, %v274_v55 }
 0x1bd   :  { %v302_v58 = vadd.f32 %v2015_v53, %v294_v54 }
 0x1be   :  { %v301_v59 = vadd.f32 %v2017_v56, %v293_v57  ;;  %v1625_v60 = vpop.f32.mrb[2].mxu1 }
 0x1bf   :  { %v296_v62 = vmul.f32 0.5, %v1625_v60  ;;  %v284_v63 = vpop.f32.mrb[3].mxu1 }
 0x1c0   :  { %v295_v1 = vmul.f32 0.5, %v284_v63  ;;  %v1792_v2 = vpack.c.bf16 %v302_v58, %v301_v59 }
 0x1c1   :  { %v304_v3 = vadd.f32 %v2021_v61, %v296_v62 }
 0x1c2   :  { %v303_v7 = vadd.f32 %v2023_v0, %v295_v1  ;;  %1793 = vmatprep.subr.bf16.mxu0 %v1792_v2 }
 0x1c3   :  { %1795 = vmatpush3.bf16.msra.mxu0 %v1792_v2 }
 0x1c4   :  { %v1796_v8 = vpack.c.bf16 %v304_v3, %v303_v7 }
 0x1c6   :  { %1797 = vmatprep.subr.bf16.mxu0 %v1796_v8 }
 0x1c7   :  { %1799 = vmatpush3.bf16.msra.mxu0 %v1796_v8 }
 0x1ca   :  { %1635 = vmatmul.mubr.msk.f32.vlgmr.msra.gmra.mrb[4].mxu0 %vm47_vm1, %v2000_v48 }
 0x1cb   :  { %1637 = vmatprep.mubr.msk.f32.mxu0 %vm47_vm1, %v2003_v50 }
 0x1ce   :  { %1638 = vmatmul.mubr.msk.f32.gmra.mrb[6].mxu0 %vm47_vm1, %v2009_v51 }
 0x1cf   :  { %1662 = vmatprep.mubr.msk.f32.mxu0 %vm47_vm1, %v1992_v30 }
 0x29d   :  { %v1636_v9 = vpop.f32.mrb[4].mxu0 }
 0x29e   :  { %v391_v11 = vmul.f32 0.5, %v1636_v9  ;;  %v371_v12 = vpop.f32.mrb[5].mxu0 }
 0x29f   :  { %v390_v13 = vmul.f32 0.5, %v371_v12 }
 0x2a0   :  { %v395_v14 = vadd.f32 %v391_v11, %v2015_v53 }
 0x2a1   :  { %v394_v15 = vadd.f32 %v390_v13, %v2017_v56  ;;  %v1639_v16 = vpop.f32.mrb[6].mxu0 }
 0x2a2   :  { %v393_v17 = vmul.f32 0.5, %v1639_v16  ;;  %v381_v18 = vpop.f32.mrb[7].mxu0 }
 0x2a3   :  { %v392_v19 = vmul.f32 0.5, %v381_v18  ;;  %v1800_v20 = vpack.c.bf16 %v395_v14, %v394_v15 }
 0x2a4   :  { %v397_v21 = vadd.f32 %v393_v17, %v2021_v61 }
 0x2a5   :  { %v396_v22 = vadd.f32 %v392_v19, %v2023_v0  ;;  %1801 = vmatprep.subr.bf16.mxu1 %v1800_v20 }
 0x2a6   :  { %1803 = vmatpush3.bf16.msra.mxu1 %v1800_v20 }
 0x2a7   :  { %v1804_v23 = vpack.c.bf16 %v397_v21, %v396_v22 }
 0x2a9   :  { %1805 = vmatprep.subr.bf16.mxu1 %v1804_v23 }
 0x2aa   :  { %1807 = vmatpush3.bf16.msra.mxu1 %v1804_v23 }
 0x2ad   :  { %1649 = vmatmul.mubr.msk.f32.vlgmr.msra.gmra.mrb[4].mxu1 %vm47_vm1, %v2000_v48 }
 0x2ae   :  { %1651 = vmatprep.mubr.msk.f32.mxu1 %vm47_vm1, %v2003_v50 }
 0x2b1   :  { %1652 = vmatmul.mubr.msk.f32.gmra.mrb[6].mxu1 %vm47_vm1, %v2009_v51 }
 0x2b2   :  { %1676 = vmatprep.mubr.msk.f32.mxu1 %vm47_vm1, %v1992_v30 }
 0x380   :  { %v1650_v24 = vpop.f32.mrb[4].mxu1 }
 0x381   :  { %v484_v25 = vmul.f32 0.5, %v1650_v24  ;;  %v464_v26 = vpop.f32.mrb[5].mxu1 }
 0x382   :  { %v483_v27 = vmul.f32 0.5, %v464_v26 }
 0x383   :  { %v488_v28 = vadd.f32 %v484_v25, %v2015_v53 }
 0x384   :  { %v487_v29 = vadd.f32 %v483_v27, %v2017_v56  ;;  %v1653_v31 = vpop.f32.mrb[6].mxu1 }
 0x385   :  { %v486_v32 = vmul.f32 0.5, %v1653_v31  ;;  %v474_v33 = vpop.f32.mrb[7].mxu1 }
 0x386   :  { %v485_v34 = vmul.f32 0.5, %v474_v33  ;;  %v1808_v35 = vpack.c.bf16 %v488_v28, %v487_v29 }
 0x387   :  { %v490_v36 = vadd.f32 %v486_v32, %v2021_v61 }
 0x388   :  { %v489_v37 = vadd.f32 %v485_v34, %v2023_v0  ;;  %1809 = vmatprep.subr.bf16.mxu0 %v1808_v35 }
 0x389   :  { %1811 = vmatpush3.bf16.msra.mxu0 %v1808_v35 }
 0x38a   :  { %v1812_v38 = vpack.c.bf16 %v490_v36, %v489_v37 }
 0x38c   :  { %1813 = vmatprep.subr.bf16.mxu0 %v1812_v38 }
 0x38d   :  { %1815 = vmatpush3.bf16.msra.mxu0 %v1812_v38 }
 0x390   :  { %1663 = vmatmul.mubr.msk.f32.vlgmr.msra.gmra.mrb[8].mxu0 %vm47_vm1, %v2000_v48 }
 0x391   :  { %1665 = vmatprep.mubr.msk.f32.mxu0 %vm47_vm1, %v2003_v50 }
 0x394   :  { %1666 = vmatmul.mubr.msk.f32.gmra.mrb[10].mxu0 %vm47_vm1, %v2009_v51 }
 0x395   :  { %1690 = vmatprep.mubr.msk.f32.mxu0 %vm47_vm1, %v1992_v30 }
 0x463   :  { %v1664_v39 = vpop.f32.mrb[8].mxu0 }
 0x464   :  { %v577_v40 = vmul.f32 0.5, %v1664_v39  ;;  %v557_v41 = vpop.f32.mrb[9].mxu0 }
 0x465   :  { %v576_v42 = vmul.f32 0.5, %v557_v41 }
 0x466   :  { %v581_v43 = vadd.f32 %v577_v40, %v2015_v53 }
 0x467   :  { %v580_v44 = vadd.f32 %v576_v42, %v2017_v56  ;;  %v1667_v45 = vpop.f32.mrb[10].mxu0 }
 0x468   :  { %v579_v46 = vmul.f32 0.5, %v1667_v45  ;;  %v567_v47 = vpop.f32.mrb[11].mxu0 }
 0x469   :  { %v578_v49 = vmul.f32 0.5, %v567_v47  ;;  %v1816_v52 = vpack.c.bf16 %v581_v43, %v580_v44 }
 0x46a   :  { %v583_v54 = vadd.f32 %v579_v46, %v2021_v61 }
 0x46b   :  { %v582_v55 = vadd.f32 %v578_v49, %v2023_v0  ;;  %1817 = vmatprep.subr.bf16.mxu1 %v1816_v52 }
 0x46c   :  { %1819 = vmatpush3.bf16.msra.mxu1 %v1816_v52 }
 0x46d   :  { %v1820_v57 = vpack.c.bf16 %v583_v54, %v582_v55 }
 0x46f   :  { %1821 = vmatprep.subr.bf16.mxu1 %v1820_v57 }
 0x470   :  { %1823 = vmatpush3.bf16.msra.mxu1 %v1820_v57 }
 0x473   :  { %1677 = vmatmul.mubr.msk.f32.vlgmr.msra.gmra.mrb[8].mxu1 %vm47_vm1, %v2000_v48 }
 0x474   :  { %1679 = vmatprep.mubr.msk.f32.mxu1 %vm47_vm1, %v2003_v50 }
 0x477   :  { %1680 = vmatmul.mubr.msk.f32.gmra.mrb[10].mxu1 %vm47_vm1, %v2009_v51 }
 0x478   :  { %1704 = vmatprep.mubr.msk.f32.mxu1 %vm47_vm1, %v1992_v30 }
 0x546   :  { %v1678_v58 = vpop.f32.mrb[8].mxu1 }
 0x547   :  { %v670_v59 = vmul.f32 0.5, %v1678_v58  ;;  %v650_v60 = vpop.f32.mrb[9].mxu1 }
 0x548   :  { %v669_v62 = vmul.f32 0.5, %v650_v60 }
 0x549   :  { %v674_v63 = vadd.f32 %v670_v59, %v2015_v53 }
 0x54a   :  { %v673_v1 = vadd.f32 %v669_v62, %v2017_v56  ;;  %v1681_v2 = vpop.f32.mrb[10].mxu1 }
 0x54b   :  { %v672_v3 = vmul.f32 0.5, %v1681_v2  ;;  %v660_v7 = vpop.f32.mrb[11].mxu1 }
 0x54c   :  { %v671_v8 = vmul.f32 0.5, %v660_v7  ;;  %v1824_v9 = vpack.c.bf16 %v674_v63, %v673_v1 }
 0x54d   :  { %v676_v11 = vadd.f32 %v672_v3, %v2021_v61 }
 0x54e   :  { %v675_v12 = vadd.f32 %v671_v8, %v2023_v0  ;;  %1825 = vmatprep.subr.bf16.mxu0 %v1824_v9 }
 0x54f   :  { %1827 = vmatpush3.bf16.msra.mxu0 %v1824_v9 }
 0x550   :  { %v1828_v13 = vpack.c.bf16 %v676_v11, %v675_v12 }
 0x552   :  { %1829 = vmatprep.subr.bf16.mxu0 %v1828_v13 }
 0x553   :  { %1831 = vmatpush3.bf16.msra.mxu0 %v1828_v13 }
 0x556   :  { %1691 = vmatmul.mubr.msk.f32.vlgmr.msra.gmra.mrb[12].mxu0 %vm47_vm1, %v2000_v48 }
 0x557   :  { %1693 = vmatprep.mubr.msk.f32.mxu0 %vm47_vm1, %v2003_v50 }
 0x55a   :  { %1694 = vmatmul.mubr.msk.f32.gmra.mrb[14].mxu0 %vm47_vm1, %v2009_v51 }
 0x55b   :  { %1718 = vmatprep.mubr.msk.f32.mxu0 %vm47_vm1, %v1992_v30 }
 0x629   :  { %v1692_v14 = vpop.f32.mrb[12].mxu0 }
 0x62a   :  { %v763_v15 = vmul.f32 0.5, %v1692_v14  ;;  %v743_v16 = vpop.f32.mrb[13].mxu0 }
 0x62b   :  { %v762_v17 = vmul.f32 0.5, %v743_v16 }
 0x62c   :  { %v767_v18 = vadd.f32 %v763_v15, %v2015_v53 }
 0x62d   :  { %v766_v19 = vadd.f32 %v762_v17, %v2017_v56  ;;  %v1695_v20 = vpop.f32.mrb[14].mxu0  ;;  %v1206_v17 = vld [vmem:[%s2205_s3] sm:$0xff] }
 0x62e   :  { %v765_v21 = vmul.f32 0.5, %v1695_v20  ;;  %v753_v22 = vpop.f32.mrb[15].mxu0  ;;  %v28_v20 = vlaneseq }
 0x62f   :  { %v764_v23 = vmul.f32 0.5, %v753_v22  ;;  %v1832_v24 = vpack.c.bf16 %v767_v18, %v766_v19  ;;  %v1207_v18 = vld [vmem:[%s2205_s3 + $0x8] sm:$0xff] }
 0x630   :  { %v769_v25 = vadd.f32 %v765_v21, %v2021_v61  ;;  %v1864_v19 = vpack.c.bf16 %v1207_v18, %v1206_v17  ;;  %v29_v21 = vshrl.u32 %v28_v20, 7  ;;  %v34_v22 = vand.u32 127, %v28_v20 }
 0x631   :  { %v768_v26 = vadd.f32 %v764_v23, %v2023_v0  ;;  %1833 = vmatprep.subr.bf16.mxu1 %v1832_v24  ;;  %v12_v18 = vstv %s2207_s4 }
 0x632   :  { %1835 = vmatpush3.bf16.msra.mxu1 %v1832_v24  ;;  %vm35_vm7 = vcmp.eq.s32.totalorder %v29_v21, %v34_v22  ;;  %v30_v23 = vadd.s32 8, %v29_v21  ;;  %v31_v24 = vadd.s32 16, %v29_v21  ;;  %13 = vst [vmem:[#allocation2] sm:$0x1] %v12_v18 }
 0x633   :  { %v1836_v27 = vpack.c.bf16 %v769_v25, %v768_v26  ;;  %v32_v25 = vadd.s32 24, %v29_v21  ;;  %v1904_v26 = vmov 0.0  }
 0x634   :  { %vm36_vm8 = vcmp.eq.s32.totalorder %v30_v23, %v34_v22  ;;  %vm37_vm9 = vcmp.eq.s32.totalorder %v31_v24, %v34_v22 }
 0x635   :  { %1837 = vmatprep.subr.bf16.mxu1 %v1836_v27  ;;  %vm38_vm10 = vcmp.eq.s32.totalorder %v32_v25, %v34_v22 }
 0x636   :  { %1839 = vmatpush3.bf16.msra.mxu1 %v1836_v27  ;;  %v1443_v27 = vsel %vm35_vm7, 1.0, %v1904_v26 }
 0x639   :  { %1705 = vmatmul.mubr.msk.f32.vlgmr.msra.gmra.mrb[12].mxu1 %vm47_vm1, %v2000_v48 }
 0x63a   :  { %1707 = vmatprep.mubr.msk.f32.mxu1 %vm47_vm1, %v2003_v50 }
 0x63d   :  { %1708 = vmatmul.mubr.msk.f32.gmra.mrb[14].mxu1 %vm47_vm1, %v2009_v51 }
 0x63e   :  { %1732 = vmatprep.mubr.msk.f32.mxu1 %vm47_vm1, %v1992_v30 }
 0x70c   :  { %v1706_v28 = vpop.f32.mrb[12].mxu1 }
 0x70d   :  { %v856_v29 = vmul.f32 0.5, %v1706_v28  ;;  %v836_v31 = vpop.f32.mrb[13].mxu1  ;;  %v1150_v28 = vsub.f32 1.0, %v1443_v27 }
 0x70e   :  { %v855_v32 = vmul.f32 0.5, %v836_v31  ;;  %v1445_v31 = vsel %vm37_vm9, 1.0, %v1904_v26 }
 0x70f   :  { %v860_v33 = vadd.f32 %v856_v29, %v2015_v53  ;;  %v1444_v29 = vsel %vm36_vm8, 1.0, %v1904_v26 }
 0x710   :  { %v859_v34 = vadd.f32 %v855_v32, %v2017_v56  ;;  %v1709_v35 = vpop.f32.mrb[14].mxu1  ;;  %v1446_v32 = vsel %vm38_vm10, 1.0, %v1904_v26 }
 0x711   :  { %v858_v36 = vmul.f32 0.5, %v1709_v35  ;;  %v846_v37 = vpop.f32.mrb[15].mxu1  ;;  %v1152_v35 = vsub.f32 1.0, %v1445_v31 }
 0x712   :  { %v857_v38 = vmul.f32 0.5, %v846_v37  ;;  %v1840_v39 = vpack.c.bf16 %v860_v33, %v859_v34  ;;  %v1154_v33 = vmul.f32 %v1150_v28, %v1954_v4  ;;  %v1151_v34 = vsub.f32 1.0, %v1444_v29 }
 0x713   :  { %v862_v40 = vadd.f32 %v858_v36, %v2021_v61  ;;  %v1153_v36 = vsub.f32 1.0, %v1446_v32 }
 0x714   :  { %v861_v41 = vadd.f32 %v857_v38, %v2023_v0  ;;  %1841 = vmatprep.subr.bf16.mxu0 %v1840_v39  ;;  %v1158_v37 = vadd.f32 %v1443_v27, %v1154_v33  ;;  %v1155_v38 = vmul.f32 %v1151_v34, %v1964_v6 }
 0x715   :  { %1843 = vmatpush3.bf16.msra.mxu0 %v1840_v39  ;;  %v1156_v39 = vmul.f32 %v1152_v35, %v1959_v5 }
 0x716   :  { %v1844_v42 = vpack.c.bf16 %v862_v40, %v861_v41  ;;  %v1157_v40 = vmul.f32 %v1153_v36, %v1975_v10  ;;  %v1162_v41 = vsel %vm47_vm1, %v1158_v37, 0.0 }
 0x717   :  { %1163 = vadd.xlane.f32.xlu0 %v1162_v41 }
 0x718   :  { %1845 = vmatprep.subr.bf16.mxu0 %v1844_v42 }
 0x719   :  { %1847 = vmatpush3.bf16.msra.mxu0 %v1844_v42  ;;  %v2144_v42 = vadd.f32 %v1444_v29, %v1155_v38  ;;  %v1905_v38 = vmov 0  }
 0x71a   :  { %1883 = vset.pattern.permute.xlu1 %v1905_v38  ;;  %1882 = vset.pattern.permute.xlu0 %v1905_v38 }
 0x71b   :  { %v1165_v4 = vsel %vm47_vm1, %v2144_v42, 0.0 }
 0x71c   :  { %1719 = vmatmul.mubr.msk.f32.vlgmr.msra.gmra.mrb[16].mxu0 %vm47_vm1, %v2000_v48  ;;  %1166 = vadd.xlane.f32.xlu1 %v1165_v4  ;;  %v1174_v6 = vadd.f32 %v1165_v4, %v1162_v41 }
 0x71d   :  { %1721 = vmatprep.mubr.msk.f32.mxu0 %vm47_vm1, %v2003_v50 }
 0x720   :  { %1722 = vmatmul.mubr.msk.f32.gmra.mrb[18].mxu0 %vm47_vm1, %v2009_v51 }
 0x721   :  { %1746 = vmatprep.mubr.msk.f32.mxu0 %vm47_vm1, %v1992_v30 }
 0x7ef   :  { %v1720_v43 = vpop.f32.mrb[16].mxu0 }
 0x7f0   :  { %v949_v44 = vmul.f32 0.5, %v1720_v43  ;;  %v929_v45 = vpop.f32.mrb[17].mxu0  ;;  %v2146_v43 = vadd.f32 %v1445_v31, %v1156_v39  ;;  %v1495_v39 = vld [vmem:[#allocation2] ss:$0 sm:$0xff] }
 0x7f1   :  { %v948_v46 = vmul.f32 0.5, %v929_v45 }
 0x7f2   :  { %v953_v47 = vadd.f32 %v949_v44, %v2015_v53  ;;  %v2148_v44 = vadd.f32 %v1446_v32, %v1157_v40  ;;  %v1168_v45 = vsel %vm47_vm1, %v2146_v43, 0.0 }
 0x7f3   :  { %v952_v49 = vadd.f32 %v948_v46, %v2017_v56  ;;  %v1723_v52 = vpop.f32.mrb[18].mxu0  ;;  %v1175_v10 = vadd.f32 %v1174_v6, %v1168_v45  ;;  %1169 = vadd.xlane.f32.xlu0 %v1168_v45 }
 0x7f4   :  { %v951_v54 = vmul.f32 0.5, %v1723_v52  ;;  %v939_v55 = vpop.f32.mrb[19].mxu0  ;;  %v1171_v5 = vsel %vm47_vm1, %v2148_v44, 0.0 }
 0x7f5   :  { %v950_v57 = vmul.f32 0.5, %v939_v55  ;;  %v1848_v58 = vpack.c.bf16 %v953_v47, %v952_v49  ;;  %1172 = vadd.xlane.f32.xlu1 %v1171_v5  ;;  %v1176_v46 = vadd.f32 %v1175_v10, %v1171_v5 }
 0x7f6   :  { %v955_v59 = vadd.f32 %v951_v54, %v2021_v61 }
 0x7f7   :  { %v954_v60 = vadd.f32 %v950_v57, %v2023_v0  ;;  %1849 = vmatprep.subr.bf16.mxu1 %v1848_v58 }
 0x7f8   :  { %1851 = vmatpush3.bf16.msra.mxu1 %v1848_v58 }
 0x7f9   :  { %v1852_v30 = vpack.c.bf16 %v955_v59, %v954_v60 }
 0x7fb   :  { %1853 = vmatprep.subr.bf16.mxu1 %v1852_v30 }
 0x7fc   :  { %1855 = vmatpush3.bf16.msra.mxu1 %v1852_v30 }
 0x7fd   :  { %1865 = vmatprep.subr.bf16.mxu1 %v1864_v19 }
 0x7ff   :  { %1733 = vmatmul.mubr.msk.f32.vlgmr.msra.gmra.mrb[16].mxu1 %vm47_vm1, %v2000_v48 }
 0x800   :  { %1735 = vmatprep.mubr.msk.f32.mxu1 %vm47_vm1, %v2003_v50  ;;  %1867 = vmatpush3.bf16.msra.mxu1 %v1864_v19  ;;  %v1167_v19 = vpop.xlane.xlu1 %1166 }
 0x801   :  { %vm1184_vm13 = vcmp.gt.f32.partialorder %v1167_v19, 0.0 }
 0x803   :  { %1736 = vmatmul.mubr.msk.f32.gmra.mrb[18].mxu1 %vm47_vm1, %v2009_v51 }
 0x8d2   :  { %v1734_v62 = vpop.f32.mrb[16].mxu1 }
 0x8d3   :  { %v1042_v63 = vmul.f32 0.5, %v1734_v62  ;;  %v1022_v1 = vpop.f32.mrb[17].mxu1 }
 0x8d4   :  { %v1041_v2 = vmul.f32 0.5, %v1022_v1 }
 0x8d5   :  { %v1046_v3 = vadd.f32 %v1042_v63, %v2015_v53 }
 0x8d6   :  { %v1045_v7 = vadd.f32 %v1041_v2, %v2017_v56  ;;  %v1737_v8 = vpop.f32.mrb[18].mxu1 }
 0x8d7   :  { %v1044_v9 = vmul.f32 0.5, %v1737_v8  ;;  %v1032_v11 = vpop.f32.mrb[19].mxu1 }
 0x8d8   :  { %v1043_v12 = vmul.f32 0.5, %v1032_v11  ;;  %v1856_v13 = vpack.c.bf16 %v1046_v3, %v1045_v7  ;;  %v1164_v11 = vpop.xlane.xlu0 %1163 }
 0x8d9   :  { %v1048_v14 = vadd.f32 %v1044_v9, %v2021_v61  ;;  %vm1183_vm12 = vcmp.gt.f32.partialorder %v1164_v11, 0.0 }
 0x8da   :  { %v1047_v15 = vadd.f32 %v1043_v12, %v2023_v0  ;;  %1857 = vmatprep.subr.bf16.mxu0 %v1856_v13 }
 0x8db   :  { %1859 = vmatpush3.bf16.msra.mxu0 %v1856_v13 }
 0x8dc   :  { %v1860_v16 = vpack.c.bf16 %v1048_v14, %v1047_v15 }
 0x8de   :  { %1861 = vmatprep.subr.bf16.mxu0 %v1860_v16 }
 0x8df   :  { %1863 = vmatpush3.bf16.msra.mxu0 %v1860_v16 }
 0x8e2   :  { %1747 = vmatmul.mubr.msk.f32.vlgmr.msra.gmra.mrb[20].mxu0 %vm47_vm1, %v2000_v48  ;;  %v1208_v48 = vld [vmem:[%s2205_s3 + $0x10] sm:$0xff] }
 0x8e3   :  { %1749 = vmatprep.mubr.msk.f32.mxu0 %vm47_vm1, %v2003_v50  ;;  %v1209_v50 = vld [vmem:[%s2205_s3 + $0x18] sm:$0xff] }
 0x8e6   :  { %1750 = vmatmul.mubr.msk.f32.gmra.mrb[22].mxu0 %vm47_vm1, %v2009_v51  ;;  %v1868_v51 = vpack.c.bf16 %v1209_v50, %v1208_v48  ;;  %v1170_v48 = vpop.xlane.xlu0 %1169  ;;  %v1173_v50 = vpop.xlane.xlu1 %1172 }
 0x8e7   :  { %vm1185_vm14 = vcmp.gt.f32.partialorder %v1170_v48, 0.0  ;;  %vm1186_vm15 = vcmp.gt.f32.partialorder %v1173_v50, 0.0 }
 0x8e8   :  { %1869 = vmatprep.subr.bf16.mxu1 %v1868_v51 }
 0x8e9   :  { %1871 = vmatpush3.bf16.msra.mxu1 %v1868_v51 }
 0x9b5   :  { %v1748_v47 = vpop.f32.mrb[20].mxu0 }
 0x9b6   :  { %v1135_v49 = vmul.f32 0.5, %v1748_v47  ;;  %v1115_v52 = vpop.f32.mrb[21].mxu0 }
 0x9b7   :  { %v1134_v54 = vmul.f32 0.5, %v1115_v52 }
 0x9b8   :  { %v1139_v55 = vadd.f32 %v1135_v49, %v2015_v53 }
 0x9b9   :  { %v1138_v57 = vadd.f32 %v1134_v54, %v2017_v56  ;;  %v1751_v58 = vpop.f32.mrb[22].mxu0 }
 0x9ba   :  { %1143 = vst.msk [vmem:[%s2206_s5 + $0x8] sm:$0xff] %vm47_vm1, %v1139_v55  ;;  %v1137_v59 = vmul.f32 0.5, %v1751_v58  ;;  %v1125_v60 = vpop.f32.mrb[23].mxu0  ;;  %v1147_v63 = vmax.f32 %v1139_v55, 0.0 }
 0x9bb   :  { %1142 = vst.msk [vmem:[%s2206_s5] sm:$0xff] %vm47_vm1, %v1138_v57  ;;  %v1146_v30 = vmax.f32 %v1138_v57, 0.0  ;;  %v1136_v62 = vmul.f32 0.5, %v1125_v60 }
 0x9bc   :  { %v1141_v53 = vadd.f32 %v1137_v59, %v2021_v61  ;;  %v1177_v61 = vrot.slane %v1176_v46, 4 }
 0x9bd   :  { %v1140_v56 = vadd.f32 %v1136_v62, %v2023_v0  ;;  %1760 = vmatprep.mubr.msk.f32.mxu1 %vm47_vm1, %v1146_v30 }
 0x9be   :  { %1145 = vst.msk [vmem:[%s2206_s5 + $0x18] sm:$0xff] %vm47_vm1, %v1141_v53  ;;  %1761 = vmatmul.mubr.msk.f32.vlgmr.msra.gmra.mrb[20].mxu1 %vm47_vm1, %v1147_v63  ;;  %v1149_v2 = vmax.f32 %v1141_v53, 0.0  ;;  %v1178_v0 = vadd.f32 %v1177_v61, %v1176_v46 }
 0x9bf   :  { %1144 = vst.msk [vmem:[%s2206_s5 + $0x10] sm:$0xff] %vm47_vm1, %v1140_v56  ;;  %v1148_v1 = vmax.f32 %v1140_v56, 0.0 }
 0x9c0   :  { %v1179_v3 = vrot.slane %v1178_v0, 2 }
 0x9c1   :  { %1763 = vmatprep.mubr.msk.f32.mxu1 %vm47_vm1, %v1148_v1 }
 0x9c2   :  { %1764 = vmatmul.mubr.msk.f32.gmra.mrb[22].mxu1 %vm47_vm1, %v1149_v2  ;;  %v1180_v7 = vadd.f32 %v1179_v3, %v1178_v0 }
 0x9c4   :  { %v1181_v8 = vrot.slane %v1180_v7, 1 }
 0x9c6   :  { %v1182_v9 = vadd.f32 %v1181_v8, %v1180_v7 }
 0x9c8   :  { %1894 = vrsqrt.f32 %v1182_v9  ;;  %vm1195_vm11 = vcmp.gt.f32.partialorder %v1182_v9, 0.0 }
 0x9c9   :  { %1896 = vrsqrt.f32 %v1164_v11 }
 0x9ca   :  { %1898 = vrsqrt.f32 %v1167_v19 }
 0x9cb   :  { %1900 = vrsqrt.f32 %v1170_v48 }
 0x9cc   :  { %1902 = vrsqrt.f32 %v1173_v50 }
 0x9d2   :  { %v1895_v12 = vpop.eup %1894 }
 0x9d3   :  { %v1897_v13 = vpop.eup %1896  ;;  %v1197_v14 = vsel %vm1195_vm11, %v1895_v12, 0.0 }
 0x9d4   :  { %v1191_v15 = vsel %vm1183_vm12, %v1897_v13, 0.0  ;;  %v1899_v51 = vpop.eup %1898 }
 0x9d5   :  { %v1198_v16 = vmul.f32 %v1191_v15, %v1158_v37  ;;  %v1901_v21 = vpop.eup %1900  ;;  %v1192_v24 = vsel %vm1184_vm13, %v1899_v51, 0.0 }
 0x9d6   :  { %v1903_v25 = vpop.eup %1902  ;;  %v1193_v26 = vsel %vm1185_vm14, %v1901_v21, 0.0  ;;  %v1199_v29 = vmul.f32 %v1192_v24, %v2144_v42 }
 0x9d7   :  { %v1202_v17 = vmul.f32 %v1198_v16, %v1197_v14  ;;  %v1200_v32 = vmul.f32 %v1193_v26, %v2146_v43  ;;  %v1194_v33 = vsel %vm1186_vm15, %v1903_v25, 0.0 }
 0x9d8   :  { %v1203_v34 = vmul.f32 %v1199_v29, %v1197_v14  ;;  %v1201_v35 = vmul.f32 %v1194_v33, %v2148_v44 }
 0x9d9   :  { %1774 = vmatprep.mubr.msk.f32.mxu0 %vm47_vm1, %v1202_v17  ;;  %v1204_v36 = vmul.f32 %v1200_v32, %v1197_v14 }
 0x9da   :  { %v1205_v37 = vmul.f32 %v1201_v35, %v1197_v14 }
 0xa91   :  { %v1762_v20 = vpop.f32.mrb[20].mxu1 }
 0xa92   :  { %v1288_v22 = vpop.f32.mrb[21].mxu1 }
 0xa93   :  { %v1872_v23 = vpack.c.bf16 %v1762_v20, %v1288_v22 }
 0xa95   :  { %v1765_v27 = vpop.f32.mrb[22].mxu1  ;;  %1873 = vmatprep.subr.bf16.mxu0 %v1872_v23 }
 0xa96   :  { %v1298_v28 = vpop.f32.mrb[23].mxu1  ;;  %1875 = vmatpush3.bf16.msra.mxu0 %v1872_v23 }
 0xa97   :  { %v1876_v31 = vpack.c.bf16 %v1765_v27, %v1298_v28 }
 0xa99   :  { %1877 = vmatprep.subr.bf16.mxu0 %v1876_v31 }
 0xa9a   :  { %1879 = vmatpush3.bf16.msra.mxu0 %v1876_v31 }
 0xa9d   :  { %1775 = vmatmul.mubr.msk.f32.vlgmr.msra.gmra.mrb[24].mxu0 %vm47_vm1, %v1203_v34 }
 0xa9e   :  { %1777 = vmatprep.mubr.msk.f32.mxu0 %vm47_vm1, %v1204_v36 }
 0xaa1   :  { %1778 = vmatmul.mubr.msk.f32.gmra.mrb[26].mxu0 %vm47_vm1, %v1205_v37 }
 0xb70   :  { %v1776_v40 = vpop.f32.mrb[24].mxu0 }
 0xb71   :  { %v1398_v41 = vadd.f32 %v1776_v40, %v1495_v39  ;;  %v1392_v42 = vpop.f32.mrb[25].mxu0 }
 0xb72   :  { %v1393_v43 = vadd.f32 %v1495_v39, %v1392_v42 }
 0xb73   :  { %1418 = vperm.xlu1 %1883, %v1398_v41  }
 0xb74   :  { %v1779_v4 = vpop.f32.mrb[26].mxu0  ;;  %1413 = vperm.xlu0 %1882, %v1393_v43  }
 0xb75   :  { %v1402_v44 = vpop.f32.mrb[27].mxu0  ;;  %v1408_v6 = vadd.f32 %v1779_v4, %v1495_v39 }
 0xb76   :  { %v1403_v45 = vadd.f32 %v1495_v39, %v1402_v44 }
 0xb78   :  { %1423 = vperm.xlu1 %1883, %v1403_v45  }
 0xb7c   :  { %1428 = vperm.xlu1 %1883, %v1408_v6  }
 0xbf2   :  { %v1419_v5 = vpop.permute.xlu1 %1418 }
 0xbf3   :  { %1432 = vst [vmem:[%s2208_s6 + $0x8] sm:$0xff] %v1419_v5  ;;  %v1414_v10 = vpop.permute.xlu0 %1413 }
 0xbf4   :  { %1431 = vst [vmem:[%s2208_s6] sm:$0xff] %v1414_v10 }
 0xbf7   :  { %v1424_v46 = vpop.permute.xlu1 %1423 }
 0xbf8   :  { %1433 = vst [vmem:[%s2208_s6 + $0x10] sm:$0xff] %v1424_v46 }
 0xbfb   :  { %v1429_v47 = vpop.permute.xlu1 %1428 }
 0xbfc   :  { %1434 = vst [vmem:[%s2208_s6 + $0x18] sm:$0xff] %v1429_v47 }

// kernel: _lambda_.5
= control target key start
LH: loop header
LB: loop body
LE: loop exit
PB: predicated region body
PF: predicated region fallthrough
CT: control target
= control target key end

     0   :  { %v2127_v2 = vmov 0.0|0.0   ;;  %vm2128_vm0 = vmmov 0   ;;  %v2129_v4 = vmov 0.0   ;;  %vm44_vm1 = vcmask 195584   ;;  %s2588_s0 = inlined_call_operand.vmem [shape: f32[24,16], index: 0, kind: input, shape index: {}]   ;;  %s2589_s1 = inlined_call_operand.vmem [shape: f32[24,24], index: 1, kind: input, shape index: {}]   ;;  %s2590_s2 = inlined_call_operand.vmem [shape: f32[16,32], index: 2, kind: input, shape index: {}]   ;;  %s2591_s3 = inlined_call_operand.vmem [shape: f32[32,32], index: 3, kind: input, shape index: {}]   ;;  %s2592_s4 = inlined_call_operand.vmem [shape: f32[28,32], index: 4, kind: input, shape index: {}]   ;;  %s2593_s5 = inlined_call_operand.vmem [shape: f32[32,24], index: 5, kind: input, shape index: {}]   ;;  %s2594_s6 = inlined_call_operand.vmem [shape: f32[28,24], index: 6, kind: input, shape index: {}]   ;;  %s2595_s7 = inlined_call_operand.vmem [shape: f32[32,32], index: 7, kind: input, shape index: {}]   ;;  %s2596_s8 = inlined_call_operand.vmem [shape: f32[32,32], index: 8, kind: input, shape index: {}]   ;;  %s2597_s9 = inlined_call_operand.vmem [shape: f32[32,16], index: 9, kind: input, shape index: {}]   ;;  %s2598_s10 = inlined_call_operand.vmem [shape: f32[1,16], index: 10, kind: input, shape index: {}]   ;;  %s2599_s11 = inlined_call_operand.hbm [shape: f32[24,32], index: 11, kind: output, shape index: {0}]   ;;  %s2600_s12 = inlined_call_operand.vmem [shape: f32[24,16], index: 12, kind: output, shape index: {1}]  }
   0x1   :  { %v83_v0 = vld [vmem:[%s2590_s2] sm:$0xff]  ;;  %v84_v1 = vld [vmem:[%s2590_s2 + $0x8] sm:$0xff]  ;;  %2024 = vmatprep.subr.bf16.mxu0 %v2127_v2  ;;  %1780 = vmatprep.mubr.msk.f32.mxu0 %vm2128_vm0, %v2129_v4  ;;  %v2218_v8 = vld [vmem:[%s2589_s1 + $0x10] sm:$0xff] }
   0x2   :  { %v2025_v3 = vpack.c.bf16 %v84_v1, %v83_v0  ;;  %v41_v5 = vld [vmem:[%s2589_s1] sm:$0xff]  ;;  %v42_v7 = vld [vmem:[%s2589_s1 + $0x8] sm:$0xff]  ;;  %2027 = vmatprep.subr.bf16.mxu1 %v2127_v2  ;;  %1795 = vmatprep.mubr.msk.f32.mxu1 %vm2128_vm0, %v2129_v4 }
   0x3   :  { %v45_v6 = vsel %vm44_vm1, %v41_v5, 0.0 }
   0x4   :  { %18 = vsyncpa [#allocation3], 0  ;;  %2026 = vmatpush3.bf16.msra.mxu0 %v2025_v3  ;;  %v80_v9 = vld [vmem:[%s2588_s0] sm:$0xff]  ;;  %vm85_vm2 = vcmask 130048   ;;  %46 = vadd.xlane.f32.xlu0 %v45_v6  ;;  %v48_v10 = vsel %vm44_vm1, %v42_v7, 0.0  ;;  %v51_v11 = vsel %vm44_vm1, %v2218_v8, 0.0 }
   0x5   :  { %v54_v12 = vadd.f32 %v48_v10, %v45_v6  ;;  %52 = vadd.xlane.f32.xlu1 %v51_v11  ;;  %2030 = vmatprep.subr.bf16.mxu0 %v2127_v2  ;;  %v81_v14 = vld [vmem:[%s2588_s0 + $0x8] sm:$0xff]  ;;  %v82_v15 = vld [vmem:[%s2588_s0 + $0x10] sm:$0xff]  ;;  %vm1087_vm7 = vcmask 261120   ;;  %vm1231_vm8 = vcmask 1043456   ;;  %vm2130_vm9 = vmmov 1  }
   0x6   :  { %vm2068_vm10 = vmpackc.low %vm1231_vm8, %vm2130_vm9  ;;  %vm1221_vm11 = vcmask 228352  }
   0x7   :  { %1781 = vmatmul.mubr.msk.f32.vlgmr.msra.gmra.mrb[0].mxu0 %vm85_vm2, %v80_v9  ;;  %v55_v13 = vadd.f32 %v54_v12, %v51_v11 }
   0x8   :  { %1783 = vmatprep.mubr.msk.f32.mxu0 %vm2128_vm0, %v2129_v4  ;;  %49 = vadd.xlane.f32.xlu0 %v48_v10 }
   0x9   :  { %v56_v16 = vrot.slane %v55_v13, 4 }
   0xb   :  { %1784 = vmatmul.mubr.msk.f32.gmra.mrb[2].mxu0 %vm85_vm2, %v81_v14  ;;  %v57_v17 = vadd.f32 %v56_v16, %v55_v13 }
   0xc   :  { %1786 = vmatprep.mubr.msk.f32.mxu0 %vm2128_vm0, %v2129_v4 }
   0xd   :  { %v58_v18 = vrot.slane %v57_v17, 2 }
   0xf   :  { %1787 = vmatmul.mubr.msk.f32.gmra.mrb[4].mxu0 %vm85_vm2, %v82_v15  ;;  %v59_v19 = vadd.f32 %v58_v18, %v57_v17 }
  0x10   :  { %1810 = vmatprep.mubr.msk.f32.mxu0 %vm2128_vm0, %v2129_v4 }
  0x11   :  { %v60_v20 = vrot.slane %v59_v19, 1 }
  0x13   :  { %v61_v22 = vadd.f32 %v60_v20, %v59_v19 }
  0x15   :  { %vm71_vm4 = vcmp.gt.f32.partialorder %v61_v22, 0.0 }
  0x91   :  { %v47_v21 = vpop.xlane.xlu0 %46 }
  0x92   :  { %2095 = vrsqrt.f32 %v47_v21  ;;  %v53_v24 = vpop.xlane.xlu1 %52  ;;  %vm62_vm3 = vcmp.gt.f32.partialorder %v47_v21, 0.0 }
  0x93   :  { %2097 = vrsqrt.f32 %v61_v22  ;;  %vm64_vm6 = vcmp.gt.f32.partialorder %v53_v24, 0.0 }
  0x95   :  { %v50_v23 = vpop.xlane.xlu0 %49 }
  0x96   :  { %2099 = vrsqrt.f32 %v50_v23  ;;  %vm63_vm5 = vcmp.gt.f32.partialorder %v50_v23, 0.0 }
  0x97   :  { %2101 = vrsqrt.f32 %v53_v24 }
  0x9c   :  { %v2096_v25 = vpop.eup %2095 }
  0x9d   :  { %v2098_v28 = vpop.eup %2097  ;;  %v68_v29 = vsel %vm62_vm3, %v2096_v25, 0.0 }
  0x9e   :  { %v74_v34 = vmul.f32 %v68_v29, %v41_v5  ;;  %v73_v35 = vsel %vm71_vm4, %v2098_v28, 0.0 }
  0xa0   :  { %v2100_v30 = vpop.eup %2099  ;;  %v2246_v40 = vmul.f32 %v74_v34, %v73_v35 }
  0xa1   :  { %v69_v36 = vsel %vm63_vm5, %v2100_v30, 0.0  ;;  %v2102_v37 = vpop.eup %2101 }
  0xa2   :  { %v75_v41 = vmul.f32 %v69_v36, %v42_v7  ;;  %v70_v42 = vsel %vm64_vm6, %v2102_v37, 0.0 }
  0xa3   :  { %v76_v44 = vmul.f32 %v70_v42, %v2218_v8 }
  0xa4   :  { %v2253_v43 = vmul.f32 %v75_v41, %v73_v35 }
  0xa5   :  { %v2260_v45 = vmul.f32 %v76_v44, %v73_v35 }
  0xda   :  { %v161_v26 = vpop.f32.mrb[0].mxu0 }
  0xdb   :  { %v1782_v27 = vpop.f32.mrb[1].mxu0  ;;  %v2266_v50 = vmul.f32 0.5, %v161_v26 }
  0xde   :  { %v166_v31 = vpop.f32.mrb[2].mxu0 }
  0xdf   :  { %v1785_v32 = vpop.f32.mrb[3].mxu0  ;;  %v2028_v33 = vpack.c.bf16 %v166_v31, %v161_v26  ;;  %v2268_v51 = vmul.f32 0.5, %v166_v31 }
  0xe1   :  { %2029 = vmatpush3.bf16.msra.mxu1 %v2028_v33 }
  0xe2   :  { %v171_v38 = vpop.f32.mrb[4].mxu0  ;;  %1793 = vmatprep.subr.mxu1 %v2129_v4 }
  0xe3   :  { %v1788_v39 = vpop.f32.mrb[5].mxu0  ;;  %v2272_v60 = vmul.f32 0.5, %v171_v38 }
  0xe5   :  { %1794 = vmatpush3.msra.mxu1 %v171_v38 }
  0xe6   :  { %1796 = vmatmul.mubr.msk.f32.vlgmr.msra.gmra.mrb[0].mxu1 %vm44_vm1, %v2246_v40  ;;  %2033 = vmatprep.subr.bf16.mxu1 %v2127_v2 }
  0xe7   :  { %1798 = vmatprep.mubr.msk.f32.mxu1 %vm2128_vm0, %v2129_v4 }
  0xea   :  { %1799 = vmatmul.mubr.msk.f32.gmra.mrb[2].mxu1 %vm44_vm1, %v2253_v43 }
  0xeb   :  { %1801 = vmatprep.mubr.msk.f32.mxu1 %vm2128_vm0, %v2129_v4 }
  0xee   :  { %1802 = vmatmul.mubr.msk.f32.gmra.mrb[4].mxu1 %vm44_vm1, %v2260_v45 }
  0xef   :  { %1825 = vmatprep.mubr.msk.f32.mxu1 %vm2128_vm0, %v2129_v4 }
 0x1b9   :  { %v250_v46 = vpop.f32.mrb[0].mxu1 }
 0x1ba   :  { %v1797_v47 = vpop.f32.mrb[1].mxu1  ;;  %v264_v48 = vmul.f32 0.5, %v250_v46 }
 0x1bc   :  { %v270_v54 = vadd.f32 %v2266_v50, %v264_v48 }
 0x1bd   :  { %v255_v49 = vpop.f32.mrb[2].mxu1 }
 0x1be   :  { %v265_v52 = vmul.f32 0.5, %v255_v49  ;;  %v1800_v53 = vpop.f32.mrb[3].mxu1 }
 0x1c0   :  { %v271_v55 = vadd.f32 %v2268_v51, %v265_v52 }
 0x1c1   :  { %v260_v56 = vpop.f32.mrb[4].mxu1 }
 0x1c2   :  { %v2031_v57 = vpack.c.bf16 %v271_v55, %v270_v54  ;;  %v266_v58 = vmul.f32 0.5, %v260_v56  ;;  %v1803_v59 = vpop.f32.mrb[5].mxu1 }
 0x1c4   :  { %2032 = vmatpush3.bf16.msra.mxu0 %v2031_v57  ;;  %v272_v61 = vadd.f32 %v2272_v60, %v266_v58 }
 0x1c5   :  { %1808 = vmatprep.subr.mxu0 %v2129_v4 }
 0x1c8   :  { %1809 = vmatpush3.msra.mxu0 %v272_v61 }
 0x1c9   :  { %1811 = vmatmul.mubr.msk.f32.vlgmr.msra.gmra.mrb[6].mxu0 %vm44_vm1, %v2246_v40  ;;  %2036 = vmatprep.subr.bf16.mxu0 %v2127_v2 }
 0x1ca   :  { %1813 = vmatprep.mubr.msk.f32.mxu0 %vm2128_vm0, %v2129_v4 }
 0x1cd   :  { %1814 = vmatmul.mubr.msk.f32.gmra.mrb[8].mxu0 %vm44_vm1, %v2253_v43 }
 0x1ce   :  { %1816 = vmatprep.mubr.msk.f32.mxu0 %vm2128_vm0, %v2129_v4 }
 0x1d1   :  { %1817 = vmatmul.mubr.msk.f32.gmra.mrb[10].mxu0 %vm44_vm1, %v2260_v45 }
 0x1d2   :  { %1840 = vmatprep.mubr.msk.f32.mxu0 %vm2128_vm0, %v2129_v4 }
 0x29c   :  { %v339_v62 = vpop.f32.mrb[6].mxu0 }
 0x29d   :  { %v1812_v63 = vpop.f32.mrb[7].mxu0  ;;  %v353_v0 = vmul.f32 0.5, %v339_v62 }
 0x29f   :  { %v356_v6 = vadd.f32 %v353_v0, %v2266_v50 }
 0x2a0   :  { %v344_v1 = vpop.f32.mrb[8].mxu0 }
 0x2a1   :  { %v354_v3 = vmul.f32 0.5, %v344_v1  ;;  %v1815_v5 = vpop.f32.mrb[9].mxu0 }
 0x2a3   :  { %v357_v7 = vadd.f32 %v354_v3, %v2268_v51 }
 0x2a4   :  { %v349_v8 = vpop.f32.mrb[10].mxu0 }
 0x2a5   :  { %v2034_v9 = vpack.c.bf16 %v357_v7, %v356_v6  ;;  %v355_v10 = vmul.f32 0.5, %v349_v8  ;;  %v1818_v11 = vpop.f32.mrb[11].mxu0 }
 0x2a7   :  { %2035 = vmatpush3.bf16.msra.mxu1 %v2034_v9  ;;  %v358_v12 = vadd.f32 %v355_v10, %v2272_v60 }
 0x2a8   :  { %1823 = vmatprep.subr.mxu1 %v2129_v4 }
 0x2ab   :  { %1824 = vmatpush3.msra.mxu1 %v358_v12 }
 0x2ac   :  { %1826 = vmatmul.mubr.msk.f32.vlgmr.msra.gmra.mrb[6].mxu1 %vm44_vm1, %v2246_v40  ;;  %2039 = vmatprep.subr.bf16.mxu1 %v2127_v2 }
 0x2ad   :  { %1828 = vmatprep.mubr.msk.f32.mxu1 %vm2128_vm0, %v2129_v4 }
 0x2b0   :  { %1829 = vmatmul.mubr.msk.f32.gmra.mrb[8].mxu1 %vm44_vm1, %v2253_v43 }
 0x2b1   :  { %1831 = vmatprep.mubr.msk.f32.mxu1 %vm2128_vm0, %v2129_v4 }
 0x2b4   :  { %1832 = vmatmul.mubr.msk.f32.gmra.mrb[10].mxu1 %vm44_vm1, %v2260_v45 }
 0x2b5   :  { %1855 = vmatprep.mubr.msk.f32.mxu1 %vm2128_vm0, %v2129_v4 }
 0x37f   :  { %v425_v13 = vpop.f32.mrb[6].mxu1 }
 0x380   :  { %v1827_v14 = vpop.f32.mrb[7].mxu1  ;;  %v439_v15 = vmul.f32 0.5, %v425_v13 }
 0x382   :  { %v442_v19 = vadd.f32 %v439_v15, %v2266_v50 }
 0x383   :  { %v430_v16 = vpop.f32.mrb[8].mxu1 }
 0x384   :  { %v440_v17 = vmul.f32 0.5, %v430_v16  ;;  %v1830_v18 = vpop.f32.mrb[9].mxu1 }
 0x386   :  { %v443_v20 = vadd.f32 %v440_v17, %v2268_v51 }
 0x387   :  { %v435_v21 = vpop.f32.mrb[10].mxu1 }
 0x388   :  { %v2037_v22 = vpack.c.bf16 %v443_v20, %v442_v19  ;;  %v441_v23 = vmul.f32 0.5, %v435_v21  ;;  %v1833_v24 = vpop.f32.mrb[11].mxu1 }
 0x389   :  { %v1048_v24 = vld [vmem:[%s2593_s5 + $0x8] sm:$0xff] }
 0x38a   :  { %2038 = vmatpush3.bf16.msra.mxu0 %v2037_v22  ;;  %v444_v25 = vadd.f32 %v441_v23, %v2272_v60  ;;  %v1047_v22 = vld [vmem:[%s2593_s5] sm:$0xff] }
 0x38b   :  { %1838 = vmatprep.subr.mxu0 %v2129_v4  ;;  %v1181_v23 = vld [vmem:[%s2594_s6] sm:$0xff]  ;;  %1055 = vxpose.xlu1.b32.start [1/4] (short) (narrow) %v1047_v22, 24  ;;  %v1180_v22 = vld [vmem:[%s2596_s8 + $0x18] sm:$0xff] }
 0x38c   :  { %1189 = vxpose.xlu0.b32.start [1/4] (short) (narrow) %v1181_v23, 24  ;;  %v1317_v23 = vld [vmem:[%s2595_s7 + $0x10] sm:$0xff] }
 0x38e   :  { %1839 = vmatpush3.msra.mxu0 %v444_v25  ;;  %v1182_v25 = vld [vmem:[%s2594_s6 + $0x8] sm:$0xff] }
 0x38f   :  { %1841 = vmatmul.mubr.msk.f32.vlgmr.msra.gmra.mrb[12].mxu0 %vm44_vm1, %v2246_v40  ;;  %2042 = vmatprep.subr.bf16.mxu0 %v2127_v2 }
 0x390   :  { %1843 = vmatprep.mubr.msk.f32.mxu0 %vm2128_vm0, %v2129_v4  ;;  %1056 = vxpose.xlu1.b32.cont [2/4] (short) (narrow) %v1048_v24, 24  ;;  %v1318_v24 = vld [vmem:[%s2595_s7 + $0x18] sm:$0xff] }
 0x391   :  { %1190 = vxpose.xlu0.b32.cont [2/4] (short) (narrow) %v1182_v25, 24 }
 0x393   :  { %1844 = vmatmul.mubr.msk.f32.gmra.mrb[14].mxu0 %vm44_vm1, %v2253_v43 }
 0x394   :  { %1846 = vmatprep.mubr.msk.f32.mxu0 %vm2128_vm0, %v2129_v4 }
 0x397   :  { %1847 = vmatmul.mubr.msk.f32.gmra.mrb[16].mxu0 %vm44_vm1, %v2260_v45 }
 0x398   :  { %1870 = vmatprep.mubr.msk.f32.mxu0 %vm2128_vm0, %v2129_v4 }
 0x462   :  { %v511_v26 = vpop.f32.mrb[12].mxu0 }
 0x463   :  { %v1842_v27 = vpop.f32.mrb[13].mxu0  ;;  %v525_v28 = vmul.f32 0.5, %v511_v26  ;;  %v1049_v26 = vld [vmem:[%s2593_s5 + $0x10] sm:$0xff] }
 0x464   :  { %v1183_v27 = vld [vmem:[%s2594_s6 + $0x10] sm:$0xff]  ;;  %1057 = vxpose.xlu1.b32.cont [3/4] (short) (narrow) %v1049_v26, 24  ;;  %v2074_v26 = vpack.c.bf16 %v1318_v24, %v1317_v23 }
 0x465   :  { %v528_v32 = vadd.f32 %v525_v28, %v2266_v50  ;;  %1191 = vxpose.xlu0.b32.cont [3/4] (short) (narrow) %v1183_v27, 24  ;;  %v1050_v28 = vld [vmem:[%s2593_s5 + $0x18] sm:$0xff] }
 0x466   :  { %v516_v29 = vpop.f32.mrb[14].mxu0 }
 0x467   :  { %v526_v30 = vmul.f32 0.5, %v516_v29  ;;  %v1845_v31 = vpop.f32.mrb[15].mxu0  ;;  %v1184_v29 = vld [vmem:[%s2594_s6 + $0x18] sm:$0xf] }
 0x468   :  { %1058 = vxpose.xlu1.b32.end [4/4] (short) (narrow) %v1050_v28, 24 }
 0x469   :  { %v529_v33 = vadd.f32 %v526_v30, %v2268_v51  ;;  %1192 = vxpose.xlu0.b32.end [4/4] (short) (narrow) %v1184_v29, 24 }
 0x46a   :  { %v521_v34 = vpop.f32.mrb[16].mxu0 }
 0x46b   :  { %v2040_v35 = vpack.c.bf16 %v529_v33, %v528_v32  ;;  %v527_v36 = vmul.f32 0.5, %v521_v34  ;;  %v1848_v37 = vpop.f32.mrb[17].mxu0 }
 0x46d   :  { %2041 = vmatpush3.bf16.msra.mxu1 %v2040_v35  ;;  %v530_v38 = vadd.f32 %v527_v36, %v2272_v60 }
 0x46e   :  { %1853 = vmatprep.subr.mxu1 %v2129_v4 }
 0x471   :  { %1854 = vmatpush3.msra.mxu1 %v530_v38 }
 0x472   :  { %1856 = vmatmul.mubr.msk.f32.vlgmr.msra.gmra.mrb[12].mxu1 %vm44_vm1, %v2246_v40  ;;  %2045 = vmatprep.subr.bf16.mxu1 %v2127_v2 }
 0x473   :  { %1858 = vmatprep.mubr.msk.f32.mxu1 %vm2128_vm0, %v2129_v4 }
 0x476   :  { %1859 = vmatmul.mubr.msk.f32.gmra.mrb[14].mxu1 %vm44_vm1, %v2253_v43 }
 0x477   :  { %1861 = vmatprep.mubr.msk.f32.mxu1 %vm2128_vm0, %v2129_v4 }
 0x47a   :  { %1862 = vmatmul.mubr.msk.f32.gmra.mrb[16].mxu1 %vm44_vm1, %v2260_v45 }
 0x47b   :  { %1885 = vmatprep.mubr.msk.f32.mxu1 %vm2128_vm0, %v2129_v4 }
 0x545   :  { %v597_v39 = vpop.f32.mrb[12].mxu1 }
 0x546   :  { %v1857_v41 = vpop.f32.mrb[13].mxu1  ;;  %v611_v42 = vmul.f32 0.5, %v597_v39 }
 0x548   :  { %v614_v48 = vadd.f32 %v611_v42, %v2266_v50 }
 0x549   :  { %v602_v44 = vpop.f32.mrb[14].mxu1 }
 0x54a   :  { %v612_v46 = vmul.f32 0.5, %v602_v44  ;;  %v1860_v47 = vpop.f32.mrb[15].mxu1 }
 0x54b   :  { %v1052_v47 = vld [vmem:[%s2591_s3 + $0x8] sm:$0xff] }
 0x54c   :  { %v615_v49 = vadd.f32 %v612_v46, %v2268_v51  ;;  %v1051_v46 = vld [vmem:[%s2591_s3] sm:$0xff] }
 0x54d   :  { %v607_v52 = vpop.f32.mrb[16].mxu1 }
 0x54e   :  { %v2043_v53 = vpack.c.bf16 %v615_v49, %v614_v48  ;;  %v613_v54 = vmul.f32 0.5, %v607_v52  ;;  %v1863_v55 = vpop.f32.mrb[17].mxu1  ;;  %v2058_v48 = vpack.c.bf16 %v1052_v47, %v1051_v46  ;;  %v1053_v49 = vld [vmem:[%s2591_s3 + $0x10] sm:$0xff]  ;;  %v1054_v52 = vld [vmem:[%s2591_s3 + $0x18] sm:$0xff] }
 0x550   :  { %2044 = vmatpush3.bf16.msra.mxu0 %v2043_v53  ;;  %v616_v56 = vadd.f32 %v613_v54, %v2272_v60  ;;  %v2061_v53 = vpack.c.bf16 %v1054_v52, %v1053_v49  ;;  %v1071_v54 = vpop.trf.xlu1 }
 0x551   :  { %1868 = vmatprep.subr.mxu0 %v2129_v4 }
 0x554   :  { %1869 = vmatpush3.msra.mxu0 %v616_v56  ;;  %v1072_v55 = vpop.trf.xlu1 }
 0x555   :  { %1871 = vmatmul.mubr.msk.f32.vlgmr.msra.gmra.mrb[18].mxu0 %vm44_vm1, %v2246_v40  ;;  %2048 = vmatprep.subr.bf16.mxu0 %v2127_v2 }
 0x556   :  { %1873 = vmatprep.mubr.msk.f32.mxu0 %vm2128_vm0, %v2129_v4 }
 0x558   :  { %v1073_v56 = vpop.trf.xlu1 }
 0x559   :  { %1874 = vmatmul.mubr.msk.f32.gmra.mrb[20].mxu0 %vm44_vm1, %v2253_v43 }
 0x55a   :  { %1876 = vmatprep.mubr.msk.f32.mxu0 %vm2128_vm0, %v2129_v4 }
 0x55d   :  { %1877 = vmatmul.mubr.msk.f32.gmra.mrb[22].mxu0 %vm44_vm1, %v2260_v45 }
 0x55e   :  { %1900 = vmatprep.mubr.msk.f32.mxu0 %vm2128_vm0, %v2129_v4 }
 0x628   :  { %v683_v57 = vpop.f32.mrb[18].mxu0 }
 0x629   :  { %v1872_v58 = vpop.f32.mrb[19].mxu0  ;;  %v697_v59 = vmul.f32 0.5, %v683_v57 }
 0x62b   :  { %v700_v0 = vadd.f32 %v697_v59, %v2266_v50 }
 0x62c   :  { %v688_v61 = vpop.f32.mrb[20].mxu0 }
 0x62d   :  { %v698_v62 = vmul.f32 0.5, %v688_v61  ;;  %v1875_v63 = vpop.f32.mrb[21].mxu0 }
 0x62f   :  { %v701_v1 = vadd.f32 %v698_v62, %v2268_v51 }
 0x630   :  { %v693_v3 = vpop.f32.mrb[22].mxu0 }
 0x631   :  { %v2046_v5 = vpack.c.bf16 %v701_v1, %v700_v0  ;;  %v699_v6 = vmul.f32 0.5, %v693_v3  ;;  %v1878_v7 = vpop.f32.mrb[23].mxu0 }
 0x633   :  { %2047 = vmatpush3.bf16.msra.mxu1 %v2046_v5  ;;  %v702_v8 = vadd.f32 %v699_v6, %v2272_v60 }
 0x634   :  { %1883 = vmatprep.subr.mxu1 %v2129_v4 }
 0x637   :  { %1884 = vmatpush3.msra.mxu1 %v702_v8  ;;  %v1185_v8 = vld [vmem:[%s2592_s4] sm:$0xff] }
 0x638   :  { %1886 = vmatmul.mubr.msk.f32.vlgmr.msra.gmra.mrb[18].mxu1 %vm44_vm1, %v2246_v40  ;;  %2051 = vmatprep.subr.bf16.mxu1 %v2127_v2 }
 0x639   :  { %1888 = vmatprep.mubr.msk.f32.mxu1 %vm2128_vm0, %v2129_v4 }
 0x63c   :  { %1889 = vmatmul.mubr.msk.f32.gmra.mrb[20].mxu1 %vm44_vm1, %v2253_v43 }
 0x63d   :  { %1891 = vmatprep.mubr.msk.f32.mxu1 %vm2128_vm0, %v2129_v4 }
 0x640   :  { %1892 = vmatmul.mubr.msk.f32.gmra.mrb[22].mxu1 %vm44_vm1, %v2260_v45 }
 0x641   :  { %1915 = vmatprep.mubr.msk.f32.mxu1 %vm2128_vm0, %v2129_v4 }
 0x70b   :  { %v769_v9 = vpop.f32.mrb[18].mxu1 }
 0x70c   :  { %v1887_v10 = vpop.f32.mrb[19].mxu1  ;;  %v783_v11 = vmul.f32 0.5, %v769_v9  ;;  %v1186_v9 = vld [vmem:[%s2592_s4 + $0x8] sm:$0xff] }
 0x70e   :  { %v786_v15 = vadd.f32 %v783_v11, %v2266_v50  ;;  %v2064_v11 = vpack.c.bf16 %v1186_v9, %v1185_v8 }
 0x70f   :  { %v774_v12 = vpop.f32.mrb[20].mxu1 }
 0x710   :  { %v784_v13 = vmul.f32 0.5, %v774_v12  ;;  %v1890_v14 = vpop.f32.mrb[21].mxu1  ;;  %v1187_v12 = vld [vmem:[%s2592_s4 + $0x10] sm:$0xff] }
 0x712   :  { %v787_v16 = vadd.f32 %v784_v13, %v2268_v51  ;;  %v1188_v13 = vld [vmem:[%s2592_s4 + $0x18] sm:$0xf] }
 0x713   :  { %v779_v17 = vpop.f32.mrb[22].mxu1  ;;  %v2067_v14 = vpack.c.bf16 %v1188_v13, %v1187_v12 }
 0x714   :  { %v2049_v18 = vpack.c.bf16 %v787_v16, %v786_v15  ;;  %v785_v19 = vmul.f32 0.5, %v779_v17  ;;  %v1893_v20 = vpop.f32.mrb[23].mxu1  ;;  %v1205_v15 = vpop.trf.xlu0  ;;  %v1178_v16 = vld [vmem:[%s2596_s8 + $0x8] sm:$0xff]  ;;  %v1315_v17 = vld [vmem:[%s2595_s7] sm:$0xff] }
 0x716   :  { %2050 = vmatpush3.bf16.msra.mxu0 %v2049_v18  ;;  %v788_v21 = vadd.f32 %v785_v19, %v2272_v60  ;;  %v1316_v18 = vld [vmem:[%s2595_s7 + $0x8] sm:$0xff] }
 0x717   :  { %1898 = vmatprep.subr.mxu0 %v2129_v4  ;;  %v2071_v20 = vpack.c.bf16 %v1316_v18, %v1315_v17 }
 0x71a   :  { %1899 = vmatpush3.msra.mxu0 %v788_v21  ;;  %v1179_v21 = vld [vmem:[%s2596_s8 + $0x10] sm:$0xff] }
 0x71b   :  { %1901 = vmatmul.mubr.msk.f32.vlgmr.msra.gmra.mrb[24].mxu0 %vm44_vm1, %v2246_v40  ;;  %2054 = vmatprep.subr.bf16.mxu0 %v2127_v2  ;;  %v2080_v25 = vpack.c.bf16 %v1180_v22, %v1179_v21 }
 0x71c   :  { %1903 = vmatprep.mubr.msk.f32.mxu0 %vm2128_vm0, %v2129_v4 }
 0x71f   :  { %1904 = vmatmul.mubr.msk.f32.gmra.mrb[26].mxu0 %vm44_vm1, %v2253_v43 }
 0x720   :  { %1906 = vmatprep.mubr.msk.f32.mxu0 %vm2128_vm0, %v2129_v4 }
 0x723   :  { %1907 = vmatmul.mubr.msk.f32.gmra.mrb[28].mxu0 %vm44_vm1, %v2260_v45 }
 0x724   :  { %1930 = vmatprep.mubr.msk.f32.mxu0 %vm2128_vm0, %v2129_v4 }
 0x7ee   :  { %v855_v30 = vpop.f32.mrb[24].mxu0 }
 0x7ef   :  { %v1902_v31 = vpop.f32.mrb[25].mxu0  ;;  %v869_v32 = vmul.f32 0.5, %v855_v30 }
 0x7f1   :  { %v872_v36 = vadd.f32 %v869_v32, %v2266_v50 }
 0x7f2   :  { %v860_v33 = vpop.f32.mrb[26].mxu0 }
 0x7f3   :  { %v870_v34 = vmul.f32 0.5, %v860_v33  ;;  %v1905_v35 = vpop.f32.mrb[27].mxu0 }
 0x7f5   :  { %v873_v37 = vadd.f32 %v870_v34, %v2268_v51 }
 0x7f6   :  { %v865_v38 = vpop.f32.mrb[28].mxu0 }
 0x7f7   :  { %v2052_v39 = vpack.c.bf16 %v873_v37, %v872_v36  ;;  %v871_v41 = vmul.f32 0.5, %v865_v38  ;;  %v1908_v42 = vpop.f32.mrb[29].mxu0  ;;  %v1503_v37 = vld [vmem:[%s2597_s9] sm:$0xff]  ;;  %v1504_v38 = vld [vmem:[%s2597_s9 + $0x8] sm:$0xff] }
 0x7f8   :  { %v2083_v42 = vpack.c.bf16 %v1504_v38, %v1503_v37 }
 0x7f9   :  { %2053 = vmatpush3.bf16.msra.mxu1 %v2052_v39  ;;  %v874_v44 = vadd.f32 %v871_v41, %v2272_v60 }
 0x7fa   :  { %1913 = vmatprep.subr.mxu1 %v2129_v4 }
 0x7fd   :  { %1914 = vmatpush3.msra.mxu1 %v874_v44 }
 0x7fe   :  { %1916 = vmatmul.mubr.msk.f32.vlgmr.msra.gmra.mrb[24].mxu1 %vm44_vm1, %v2246_v40  ;;  %2057 = vmatprep.subr.bf16.mxu1 %v2127_v2 }
 0x7ff   :  { %1918 = vmatprep.mubr.msk.f32.mxu1 %vm2128_vm0, %v2129_v4  ;;  %2059 = vmatpush3.bf16.msra.mxu1 %v2058_v48 }
 0x800   :  { %2060 = vmatprep.subr.bf16.mxu1 %v2127_v2 }
 0x802   :  { %1919 = vmatmul.mubr.msk.f32.gmra.mrb[26].mxu1 %vm44_vm1, %v2253_v43 }
 0x803   :  { %1921 = vmatprep.mubr.msk.f32.mxu1 %vm2128_vm0, %v2129_v4  ;;  %2062 = vmatpush3.bf16.msra.mxu1 %v2061_v53 }
 0x804   :  { %2070 = vmatprep.subr.bf16.mxu1 %v2127_v2 }
 0x806   :  { %1922 = vmatmul.mubr.msk.f32.gmra.mrb[28].mxu1 %vm44_vm1, %v2260_v45 }
 0x807   :  { %1947 = vmatprep.mubr.msk.f32.mxu1 %vm2128_vm0, %v2129_v4 }
 0x80a   :  { %1948 = vmatmul.mubr.msk.f32.vlgmr.msra.gmra.mrb[30].mxu1 %vm1087_vm7, %v1071_v54  ;;  %v1505_v54 = vld [vmem:[%s2597_s9 + $0x10] sm:$0xff] }
 0x80b   :  { %1950 = vmatprep.mubr.msk.f32.mxu1 %vm2128_vm0, %v2129_v4  ;;  %2072 = vmatpush3.bf16.msra.mxu1 %v2071_v20 }
 0x80c   :  { %2073 = vmatprep.subr.bf16.mxu1 %v2127_v2 }
 0x80e   :  { %1951 = vmatmul.mubr.msk.f32.gmra.mrb[32].mxu1 %vm1087_vm7, %v1072_v55 }
 0x80f   :  { %1953 = vmatprep.mubr.msk.f32.mxu1 %vm2128_vm0, %v2129_v4  ;;  %2075 = vmatpush3.bf16.msra.mxu1 %v2074_v26 }
 0x810   :  { %2082 = vmatprep.subr.bf16.mxu1 %v2127_v2 }
 0x812   :  { %1954 = vmatmul.mubr.msk.f32.gmra.mrb[34].mxu1 %vm1087_vm7, %v1073_v56 }
 0x813   :  { %1981 = vmatprep.mubr.msk.f32.mxu1 %vm2128_vm0, %v2129_v4 }
 0x8d1   :  { %v941_v57 = vpop.f32.mrb[24].mxu1 }
 0x8d2   :  { %v1917_v58 = vpop.f32.mrb[25].mxu1  ;;  %v955_v59 = vmul.f32 0.5, %v941_v57 }
 0x8d4   :  { %v958_v0 = vadd.f32 %v955_v59, %v2266_v50 }
 0x8d5   :  { %v946_v61 = vpop.f32.mrb[26].mxu1 }
 0x8d6   :  { %v956_v62 = vmul.f32 0.5, %v946_v61  ;;  %v1920_v63 = vpop.f32.mrb[27].mxu1 }
 0x8d8   :  { %v959_v1 = vadd.f32 %v956_v62, %v2268_v51 }
 0x8d9   :  { %v951_v3 = vpop.f32.mrb[28].mxu1 }
 0x8da   :  { %v2055_v5 = vpack.c.bf16 %v959_v1, %v958_v0  ;;  %v957_v6 = vmul.f32 0.5, %v951_v3  ;;  %v1923_v7 = vpop.f32.mrb[29].mxu1 }
 0x8dc   :  { %2056 = vmatpush3.bf16.msra.mxu0 %v2055_v5  ;;  %v960_v10 = vadd.f32 %v957_v6, %v2272_v60 }
 0x8dd   :  { %1928 = vmatprep.subr.mxu0 %v2129_v4  ;;  %v1163_v27 = vpop.f32.mrb[30].mxu1 }
 0x8de   :  { %v1949_v28 = vpop.f32.mrb[31].mxu1 }
 0x8e0   :  { %1929 = vmatpush3.msra.mxu0 %v960_v10 }
 0x8e1   :  { %1931 = vmatmul.mubr.msk.f32.vlgmr.msra.gmra.mrb[30].mxu0 %vm44_vm1, %v2246_v40  ;;  %2063 = vmatprep.subr.bf16.mxu0 %v2127_v2  ;;  %v1206_v40 = vpop.trf.xlu0  ;;  %v1168_v29 = vpop.f32.mrb[32].mxu1 }
 0x8e2   :  { %1933 = vmatprep.mubr.msk.f32.mxu0 %vm2128_vm0, %v2129_v4  ;;  %2065 = vmatpush3.bf16.msra.mxu0 %v2064_v11  ;;  %v1952_v30 = vpop.f32.mrb[33].mxu1 }
 0x8e3   :  { %2066 = vmatprep.subr.bf16.mxu0 %v2127_v2 }
 0x8e5   :  { %1934 = vmatmul.mubr.msk.f32.gmra.mrb[32].mxu0 %vm44_vm1, %v2253_v43  ;;  %v1207_v43 = vpop.trf.xlu0  ;;  %v1173_v31 = vpop.f32.mrb[34].mxu1 }
 0x8e6   :  { %1936 = vmatprep.mubr.msk.f32.mxu0 %vm2128_vm0, %v2129_v4  ;;  %2069 = vmatpush3.bf16.msk.msra.mxu0 %vm2068_vm10, %v2067_v14  ;;  %v1955_v32 = vpop.f32.mrb[35].mxu1 }
 0x8e7   :  { %2076 = vmatprep.subr.bf16.mxu0 %v2127_v2 }
 0x8e9   :  { %1937 = vmatmul.mubr.msk.f32.gmra.mrb[34].mxu0 %vm44_vm1, %v2260_v45  ;;  %v1177_v45 = vld [vmem:[%s2596_s8] sm:$0xff] }
 0x8ea   :  { %1964 = vmatprep.mubr.msk.f32.mxu0 %vm2128_vm0, %v2129_v4  ;;  %v2077_v19 = vpack.c.bf16 %v1178_v16, %v1177_v45 }
 0x8ed   :  { %1965 = vmatmul.mubr.msk.f32.vlgmr.msra.gmra.mrb[36].mxu0 %vm1221_vm11, %v1205_v15 }
 0x8ee   :  { %1967 = vmatprep.mubr.msk.f32.mxu0 %vm2128_vm0, %v2129_v4  ;;  %2078 = vmatpush3.bf16.msra.mxu0 %v2077_v19 }
 0x8ef   :  { %2079 = vmatprep.subr.bf16.mxu0 %v2127_v2 }
 0x8f1   :  { %1968 = vmatmul.mubr.msk.f32.gmra.mrb[38].mxu0 %vm1221_vm11, %v1206_v40 }
 0x8f2   :  { %1970 = vmatprep.mubr.msk.f32.mxu0 %vm2128_vm0, %v2129_v4  ;;  %2081 = vmatpush3.bf16.msra.mxu0 %v2080_v25 }
 0x8f5   :  { %1971 = vmatmul.mubr.msk.f32.gmra.mrb[40].mxu0 %vm1221_vm11, %v1207_v43 }
 0x8f6   :  { %1998 = vmatprep.mubr.msk.f32.mxu0 %vm2128_vm0, %v2129_v4 }
 0x8f9   :  { %1999 = vmatmul.mubr.msk.f32.vlgmr.msra.gmra.mrb[42].mxu0 %vm1087_vm7, %v1163_v27 }
 0x8fa   :  { %2001 = vmatprep.mubr.msk.f32.mxu0 %vm2128_vm0, %v2129_v4 }
 0x8fd   :  { %2002 = vmatmul.mubr.msk.f32.gmra.mrb[44].mxu0 %vm1087_vm7, %v1168_v29 }
 0x8fe   :  { %2004 = vmatprep.mubr.msk.f32.mxu0 %vm2128_vm0, %v2129_v4 }
 0x901   :  { %2005 = vmatmul.mubr.msk.f32.gmra.mrb[46].mxu0 %vm1087_vm7, %v1173_v31 }
 0x9b4   :  { %v1027_v33 = vpop.f32.mrb[30].mxu0 }
 0x9b5   :  { %v1932_v34 = vpop.f32.mrb[31].mxu0  ;;  %v1041_v62 = vmul.f32 0.5, %v1027_v33 }
 0x9b7   :  { %v1044_v0 = vadd.f32 %v1041_v62, %v2266_v50 }
 0x9b8   :  { %v1032_v35 = vpop.f32.mrb[32].mxu0 }
 0x9b9   :  { %v1935_v36 = vpop.f32.mrb[33].mxu0  ;;  %v1042_v1 = vmul.f32 0.5, %v1032_v35 }
 0x9bb   :  { %v1045_v8 = vadd.f32 %v1042_v1, %v2268_v51 }
 0x9bc   :  { %v1037_v39 = vpop.f32.mrb[34].mxu0 }
 0x9bd   :  { %v1938_v41 = vpop.f32.mrb[35].mxu0  ;;  %v1043_v9 = vmul.f32 0.5, %v1037_v39 }
 0x9bf   :  { %v1046_v50 = vadd.f32 %v1043_v9, %v2272_v60 }
 0x9c0   :  { %v1301_v44 = vpop.f32.mrb[36].mxu0 }
 0x9c1   :  { %1982 = vmatmul.mubr.msk.f32.vlgmr.msra.gmra.mrb[36].mxu1 %vm1087_vm7, %v1301_v44  ;;  %v1966_v46 = vpop.f32.mrb[37].mxu0 }
 0x9c2   :  { %1984 = vmatprep.mubr.msk.f32.mxu1 %vm2128_vm0, %v2129_v4  ;;  %2084 = vmatpush3.bf16.msra.mxu1 %v2083_v42 }
 0x9c3   :  { %2085 = vmatprep.subr.bf16.mxu1 %v2127_v2  ;;  %v1506_v2 = vld [vmem:[%s2597_s9 + $0x18] sm:$0xff]  ;;  %s2131_s9 = smov [#allocation2]  }
 0x9c4   :  { %v1306_v47 = vpop.f32.mrb[38].mxu0  ;;  %v2086_v55 = vpack.c.bf16 %v1506_v2, %v1505_v54  ;;  %s1611_s21 = sshll.u32 %s2131_s9, 4  ;;  %s1612_s21 = int_to_ptr.vmem [resolvable:$true] %s1611_s21 }
 0x9c5   :  { %1985 = vmatmul.mubr.msk.f32.gmra.mrb[38].mxu1 %vm1087_vm7, %v1306_v47  ;;  %v1969_v48 = vpop.f32.mrb[39].mxu0  ;;  %s2103_s22 = scalar_lea.vmem %s1612_s21, 384  ;;  %p2108_p1 = scmp.lt.s32.totalorder %s1612_s21, %s1612_s21 }
 0x9c6   :  { %1987 = vmatprep.mubr.msk.f32.mxu1 %vm2128_vm0, %v2129_v4  ;;  %2087 = vmatpush3.bf16.msra.mxu1 %v2086_v55  ;;  %p2104_p0 = scmp.ne.s32.totalorder %s1612_s21, %s2103_s22  ;;  %p2109_p2 = scmp.lt.s32.totalorder %s2103_s22, %s2103_s22 }
 0x9c8   :  { %v1311_v49 = vpop.f32.mrb[40].mxu0  ;;  %p2110_p3 = por %p2109_p2, %p2108_p1 }
 0x9c9   :  { %1988 = vmatmul.mubr.msk.f32.gmra.mrb[40].mxu1 %vm1087_vm7, %v1311_v49  ;;  %v1972_v52 = vpop.f32.mrb[41].mxu0 }
 0x9ca   :  { %2015 = vmatprep.mubr.msk.f32.mxu1 %vm2128_vm0, %v2129_v4  ;;  %p2111_p4 = pnand %p2110_p3, %p2104_p0 }
 0x9cc   :  { %v1483_v53 = vpop.f32.mrb[42].mxu0 }
 0x9cd   :  { %v2000_v56 = vpop.f32.mrb[43].mxu0 }
 0x9d0   :  { %v1488_v57 = vpop.f32.mrb[44].mxu0 }
 0x9d1   :  { %v2003_v58 = vpop.f32.mrb[45].mxu0 }
 0x9d4   :  { %v1493_v59 = vpop.f32.mrb[46].mxu0 }
 0x9d5   :  { %v2006_v61 = vpop.f32.mrb[47].mxu0 }
 0xa94   :  { %v1394_v63 = vpop.f32.mrb[36].mxu1 }
 0xa95   :  { %v1484_v3 = vadd.f32 %v1483_v53, %v1394_v63  ;;  %v1983_v5 = vpop.f32.mrb[37].mxu1 }
 0xa97   :  { %v1497_v6 = vadd.f32 %v1484_v3, %v1044_v0 }
 0xa98   :  { %v1399_v7 = vpop.f32.mrb[38].mxu1 }
 0xa99   :  { %1500 = vst.msk [vmem:[#allocation2] sm:$0xff] %vm1087_vm7, %v1497_v6  ;;  %v1489_v10 = vadd.f32 %v1488_v57, %v1399_v7  ;;  %2016 = vmatmul.mubr.msk.f32.vlgmr.msra.gmra.mrb[42].mxu1 %vm1087_vm7, %v1497_v6  ;;  %v1986_v11 = vpop.f32.mrb[39].mxu1 }
 0xa9a   :  { %2018 = vmatprep.mubr.msk.f32.mxu1 %vm2128_vm0, %v2129_v4 }
 0xa9b   :  { %v1498_v12 = vadd.f32 %v1489_v10, %v1045_v8 }
 0xa9c   :  { %v1404_v13 = vpop.f32.mrb[40].mxu1 }
 0xa9d   :  { %1501 = vst.msk [vmem:[#allocation2 + $0x8] sm:$0xff] %vm1087_vm7, %v1498_v12  ;;  %v1494_v14 = vadd.f32 %v1493_v59, %v1404_v13  ;;  %2019 = vmatmul.mubr.msk.f32.gmra.mrb[44].mxu1 %vm1087_vm7, %v1498_v12  ;;  %v1989_v51 = vpop.f32.mrb[41].mxu1 }
 0xa9e   :  { %2021 = vmatprep.mubr.msk.f32.mxu1 %vm2128_vm0, %v2129_v4 }
 0xa9f   :  { %v1499_v15 = vadd.f32 %v1494_v14, %v1046_v50 }
 0xaa1   :  { %1502 = vst.msk [vmem:[#allocation2 + $0x10] sm:$0xff] %vm1087_vm7, %v1499_v15  ;;  %2022 = vmatmul.mubr.msk.f32.gmra.mrb[46].mxu1 %vm1087_vm7, %v1499_v15 }
 0xaa2   :  { %2114 = shalt.err (!%p2111_p4)
}
 0xaa3   :  { %s2115_s24 = scalar_lea.hbm %s2599_s11, 384 }
 0xaa4   :  { %p2116_p5 = scmp.ne.s32.totalorder %s2599_s11, %s2115_s24  ;;  %p2119_p6 = scmp.lt.u32.totalorder %s2115_s24, %s2599_s11 }
 0xaa6   :  { %p2121_p7 = pnand %p2119_p6, %p2116_p5 }
 0xaa8   :  { %2124 = shalt.err (!%p2121_p7)
}
 0xaa9   :  { %s2132_s2 = smov 128   ;;  %s2133_s29 = smov 8   ;;  %v1672_v4 = vld [vmem:[%s2598_s10] ss:$0 sm:$0xff] }
 0xaaa   :  { %1617 = dma.vmem_to_hbm [thread:$0]  %s1612_s21, 384, %s2599_s11, [#allocation3], %s2132_s2, %s2132_s2, %s2133_s29  }
 0xb6c   :  { %v1589_v60 = vpop.f32.mrb[42].mxu1 }
 0xb6d   :  { %v1590_v40 = vadd.f32 %v1672_v4, %v1589_v60  ;;  %v2017_v43 = vpop.f32.mrb[43].mxu1 }
 0xb6f   :  { %1603 = vst.msk [vmem:[%s2600_s12] sm:$0xff] %vm85_vm2, %v1590_v40 }
 0xb70   :  { %v1594_v45 = vpop.f32.mrb[44].mxu1 }
 0xb71   :  { %v1595_v16 = vadd.f32 %v1672_v4, %v1594_v45  ;;  %v2020_v17 = vpop.f32.mrb[45].mxu1 }
 0xb73   :  { %1604 = vst.msk [vmem:[%s2600_s12 + $0x8] sm:$0xff] %vm85_vm2, %v1595_v16 }
 0xb74   :  { %v1599_v18 = vpop.f32.mrb[46].mxu1 }
 0xb75   :  { %v1600_v19 = vadd.f32 %v1672_v4, %v1599_v18  ;;  %v2023_v20 = vpop.f32.mrb[47].mxu1 }
 0xb77   :  { %1605 = vst.msk [vmem:[%s2600_s12 + $0x10] sm:$0xff] %vm85_vm2, %v1600_v19 }
 0xb78   :  { %2125 = dma.done.wait [#allocation3], 384  }
 0xb79   :  { %2126 = vsyncadd [#allocation3], 4294966912 }
 0xb7a   :  { %1625 = vsyncpa [#allocation3], 1 }

// kernel: _lambda_.4
= control target key start
LH: loop header
LB: loop body
LE: loop exit
PB: predicated region body
PF: predicated region fallthrough
CT: control target
= control target key end

     0   :  { %vm94_vm0 = vcmask 228352   ;;  %vm115_vm1 = vcmask 261120   ;;  %s2763_s0 = inlined_call_operand.vmem [shape: f32[32,32], index: 0, kind: input, shape index: {}]   ;;  %s2764_s1 = inlined_call_operand.vmem [shape: f32[32,32], index: 1, kind: input, shape index: {}]   ;;  %s2765_s2 = inlined_call_operand.vmem [shape: f32[28,32], index: 2, kind: input, shape index: {}]   ;;  %s2766_s3 = inlined_call_operand.vmem [shape: f32[32,28], index: 3, kind: input, shape index: {}]   ;;  %s2767_s4 = inlined_call_operand.vmem [shape: f32[32,32], index: 4, kind: input, shape index: {}]   ;;  %s2768_s5 = inlined_call_operand.vmem [shape: f32[1,32], index: 5, kind: input, shape index: {}]   ;;  %s2769_s6 = inlined_call_operand.vmem [shape: f32[32,32], index: 6, kind: input, shape index: {}]   ;;  %s2770_s7 = inlined_call_operand.vmem [shape: f32[1,32], index: 7, kind: input, shape index: {}]   ;;  %s2771_s8 = inlined_call_operand.vmem [shape: f32[32,32], index: 8, kind: input, shape index: {}]   ;;  %s2772_s9 = inlined_call_operand.vmem [shape: f32[1,32], index: 9, kind: input, shape index: {}]   ;;  %s2773_s10 = inlined_call_operand.vmem [shape: f32[32,24], index: 10, kind: input, shape index: {}]   ;;  %s2774_s11 = inlined_call_operand.<no memory space> [shape: f32[1], index: 11, kind: input, shape index: {}]   ;;  %s2775_s12 = inlined_call_operand.hbm [shape: f32[28,32], index: 12, kind: output, shape index: {0}]   ;;  %s2776_s13 = inlined_call_operand.vmem [shape: f32[28,32], index: 13, kind: output, shape index: {1}]   ;;  %s2777_s14 = inlined_call_operand.vmem [shape: f32[32,28], index: 14, kind: output, shape index: {2}]   ;;  %s2778_s15 = inlined_call_operand.vmem [shape: f32[28,24], index: 15, kind: output, shape index: {3}]  }
   0x1   :  { %v2329_v0 = vld [vmem:[%s2766_s3] sm:$0xff]  ;;  %v2334_v1 = vld [vmem:[%s2766_s3 + $0x10] sm:$0xff]  ;;  %v2339_v2 = vld [vmem:[%s2766_s3 + $0x8] sm:$0xff] }
   0x2   :  { %v95_v3 = vsel %vm94_vm0, %v2329_v0, 0.0  ;;  %v101_v4 = vsel %vm94_vm0, %v2334_v1, 0.0  ;;  %v2348_v5 = vld [vmem:[%s2766_s3 + $0x18] sm:$0xff]  ;;  %v160_v6 = vld [vmem:[%s2767_s4] sm:$0xff]  ;;  %v161_v7 = vld [vmem:[%s2767_s4 + $0x8] sm:$0xff]  ;;  %v98_v12 = vsel %vm94_vm0, %v2339_v2, 0.0 }
   0x3   :  { %96 = vadd.xlane.f32.xlu0 %v95_v3  ;;  %102 = vadd.xlane.f32.xlu1 %v101_v4  ;;  %v2036_v8 = vpack.c.bf16 %v161_v7, %v160_v6  ;;  %v162_v9 = vld [vmem:[%s2767_s4 + $0x10] sm:$0xff]  ;;  %v163_v10 = vld [vmem:[%s2767_s4 + $0x18] sm:$0xff]  ;;  %v86_v11 = vld [vmem:[%s2764_s1] sm:$0xff]  ;;  %v104_v13 = vsel %vm94_vm0, %v2348_v5, 0.0 }
   0x4   :  { %v2040_v14 = vpack.c.bf16 %v163_v10, %v162_v9  ;;  %v90_v15 = vmax.f32 %v86_v11, 0.0 }
   0x5   :  { %2037 = vmatprep.subr.bf16.mxu0 %v2036_v8 }
   0x6   :  { %22 = vsyncpa [#allocation4], 0  ;;  %2039 = vmatpush3.bf16.msra.mxu0 %v2036_v8  ;;  %1876 = vmatprep.mubr.msk.f32.mxu0 %vm115_vm1, %v90_v15  ;;  %v87_v16 = vld [vmem:[%s2764_s1 + $0x8] sm:$0xff]  ;;  %v88_v17 = vld [vmem:[%s2764_s1 + $0x10] sm:$0xff]  ;;  %v59_v22 = vlaneseq  ;;  %v2241_v28 = vmov 0.0   ;;  %v2060_v10 = vpack.c.bf16 %v2339_v2, %v2329_v0  ;;  %s2243_s19 = smov [#allocation3]  }
   0x7   :  { %99 = vadd.xlane.f32.xlu0 %v98_v12  ;;  %105 = vadd.xlane.f32.xlu1 %v104_v13  ;;  %v91_v18 = vmax.f32 %v87_v16, 0.0  ;;  %v92_v19 = vmax.f32 %v88_v17, 0.0  ;;  %v89_v20 = vld [vmem:[%s2764_s1 + $0x18] sm:$0xff]  ;;  %v47_v33 = vld [vmem:[%s2763_s0] sm:$0xff]  ;;  %v49_v34 = vld [vmem:[%s2763_s0 + $0x10] sm:$0xff] }
   0x8   :  { %2041 = vmatprep.subr.bf16.mxu0 %v2040_v14  ;;  %v93_v21 = vmax.f32 %v89_v20, 0.0  ;;  %v60_v23 = vshrl.u32 %v59_v22, 7  ;;  %v65_v24 = vand.u32 127, %v59_v22  ;;  %v48_v41 = vld [vmem:[%s2763_s0 + $0x8] sm:$0xff]  ;;  %v50_v42 = vld [vmem:[%s2763_s0 + $0x18] sm:$0xff]  ;;  %vm2494_vm11 = vmpackc.low %vm115_vm1, %vm115_vm1 }
   0xa   :  { %2043 = vmatpush3.bf16.msra.mxu0 %v2040_v14  ;;  %v62_v25 = vadd.s32 16, %v60_v23  ;;  %vm66_vm2 = vcmp.eq.s32.totalorder %v60_v23, %v65_v24  ;;  %v61_v26 = vadd.s32 8, %v60_v23  ;;  %v63_v27 = vadd.s32 24, %v60_v23 }
   0xb   :  { %v2382_v29 = vsel %vm66_vm2, 1.0, %v2241_v28 }
   0xc   :  { %vm68_vm3 = vcmp.eq.s32.totalorder %v62_v25, %v65_v24  ;;  %vm67_vm4 = vcmp.eq.s32.totalorder %v61_v26, %v65_v24  ;;  %vm69_vm5 = vcmp.eq.s32.totalorder %v63_v27, %v65_v24  ;;  %v78_v31 = vsub.f32 1.0, %v2382_v29 }
   0xd   :  { %1877 = vmatmul.mubr.msk.f32.vlgmr.msra.gmra.mrb[0].mxu0 %vm115_vm1, %v91_v18  ;;  %v2384_v30 = vsel %vm68_vm3, 1.0, %v2241_v28  ;;  %v2394_v35 = vsel %vm67_vm4, 1.0, %v2241_v28  ;;  %v2396_v36 = vsel %vm69_vm5, 1.0, %v2241_v28 }
   0xe   :  { %1879 = vmatprep.mubr.msk.f32.mxu0 %vm115_vm1, %v92_v19  ;;  %v80_v32 = vsub.f32 1.0, %v2384_v30  ;;  %v2400_v37 = vmul.f32 %v78_v31, %v47_v33  ;;  %v79_v39 = vsub.f32 1.0, %v2394_v35  ;;  %v81_v40 = vsub.f32 1.0, %v2396_v36 }
  0x10   :  { %v2404_v38 = vmul.f32 %v80_v32, %v49_v34  ;;  %v2418_v47 = vmul.f32 %v79_v39, %v48_v41  ;;  %v2422_v48 = vmul.f32 %v81_v40, %v50_v42 }
  0x11   :  { %1880 = vmatmul.mubr.msk.f32.gmra.mrb[2].mxu0 %vm115_vm1, %v93_v21 }
  0x90   :  { %v97_v43 = vpop.xlane.xlu0 %96  ;;  %v103_v44 = vpop.xlane.xlu1 %102 }
  0x91   :  { %v107_v45 = vmul.f32 %v97_v43, %v2400_v37  ;;  %v109_v46 = vmul.f32 %v103_v44, %v2404_v38 }
  0x93   :  { %v111_v49 = vadd.f32 %v2382_v29, %v107_v45  ;;  %v2426_v50 = vadd.f32 %v2384_v30, %v109_v46 }
  0x94   :  { %v100_v51 = vpop.xlane.xlu0 %99  ;;  %v106_v52 = vpop.xlane.xlu1 %105 }
  0x95   :  { %v108_v53 = vmul.f32 %v100_v51, %v2418_v47  ;;  %v116_v54 = vsel %vm115_vm1, %v111_v49, 0.0  ;;  %v110_v55 = vmul.f32 %v106_v52, %v2422_v48  ;;  %v122_v57 = vsel %vm115_vm1, %v2426_v50, 0.0 }
  0x96   :  { %117 = vadd.xlane.f32.xlu0 %v116_v54  ;;  %v2064_v52 = vpack.c.bf16 %v2348_v5, %v2334_v1 }
  0x97   :  { %v112_v56 = vadd.f32 %v2394_v35, %v108_v53  ;;  %v114_v58 = vadd.f32 %v2396_v36, %v110_v55  ;;  %v1716_v55 = vld [vmem:[%s2768_s5] ss:$0 sm:$0xff] }
  0x99   :  { %v119_v59 = vsel %vm115_vm1, %v112_v56, 0.0  ;;  %v125_v61 = vsel %vm115_vm1, %v114_v58, 0.0 }
  0x9a   :  { %120 = vadd.xlane.f32.xlu1 %v119_v59  ;;  %v128_v60 = vadd.f32 %v119_v59, %v116_v54  ;;  %123 = vadd.xlane.f32.xlu0 %v122_v57  ;;  %v2455_v54 = vld [vmem:[%s2765_s2] sm:$0xff] }
  0x9b   :  { %1904 = vmatprep.mubr.msk.f32.mxu0 %vm115_vm1, %v2455_v54 }
  0x9c   :  { %v129_v62 = vadd.f32 %v128_v60, %v122_v57 }
  0x9e   :  { %126 = vadd.xlane.f32.xlu1 %v125_v61  ;;  %v130_v63 = vadd.f32 %v129_v62, %v125_v61 }
  0xa0   :  { %v131_v11 = vrot.slane %v130_v63, 4 }
  0xa2   :  { %v132_v12 = vadd.f32 %v131_v11, %v130_v63 }
  0xa4   :  { %v133_v13 = vrot.slane %v132_v12, 2 }
  0xa6   :  { %v134_v14 = vadd.f32 %v133_v13, %v132_v12 }
  0xa8   :  { %v135_v15 = vrot.slane %v134_v14, 1 }
  0xaa   :  { %v136_v16 = vadd.f32 %v135_v15, %v134_v14 }
  0xac   :  { %2147 = vrsqrt.f32 %v136_v16  ;;  %vm149_vm7 = vcmp.gt.f32.partialorder %v136_v16, 0.0 }
  0xb6   :  { %v2148_v21 = vpop.eup %2147 }
  0xb7   :  { %v151_v25 = vsel %vm149_vm7, %v2148_v21, 0.0 }
  0xc7   :  { %466 = vxpose.xlu0.b32.start [1/4] (short) (narrow) %v2400_v37, 32 }
  0xcb   :  { %467 = vxpose.xlu0.b32.cont [2/4] (short) (narrow) %v2418_v47, 32 }
  0xcf   :  { %468 = vxpose.xlu0.b32.cont [3/4] (short) (narrow) %v2404_v38, 32 }
  0xd3   :  { %469 = vxpose.xlu0.b32.end [4/4] (short) (narrow) %v2422_v48, 32 }
  0xe0   :  { %v1878_v3 = vpop.f32.mrb[0].mxu0 }
  0xe1   :  { %v242_v4 = vpop.f32.mrb[1].mxu0 }
  0xe2   :  { %v2044_v6 = vpack.c.bf16 %v1878_v3, %v242_v4 }
  0xe4   :  { %v1881_v7 = vpop.f32.mrb[2].mxu0  ;;  %2045 = vmatprep.subr.bf16.mxu1 %v2044_v6 }
  0xe5   :  { %v252_v8 = vpop.f32.mrb[3].mxu0  ;;  %2047 = vmatpush3.bf16.msra.mxu1 %v2044_v6  ;;  %v2465_v6 = vld [vmem:[%s2765_s2 + $0x8] sm:$0xff] }
  0xe6   :  { %v2048_v9 = vpack.c.bf16 %v1881_v7, %v252_v8  ;;  %v2470_v7 = vld [vmem:[%s2765_s2 + $0x10] sm:$0xff]  ;;  %v2479_v8 = vld [vmem:[%s2765_s2 + $0x18] sm:$0xf] }
  0xe8   :  { %2049 = vmatprep.subr.bf16.mxu1 %v2048_v9 }
  0xe9   :  { %2051 = vmatpush3.bf16.msra.mxu1 %v2048_v9 }
  0xea   :  { %2061 = vmatprep.subr.bf16.mxu1 %v2060_v10 }
 0x123   :  { %v118_v17 = vpop.xlane.xlu0 %117 }
 0x124   :  { %2149 = vrsqrt.f32 %v118_v17  ;;  %vm137_vm6 = vcmp.gt.f32.partialorder %v118_v17, 0.0 }
 0x127   :  { %v121_v18 = vpop.xlane.xlu1 %120  ;;  %v124_v19 = vpop.xlane.xlu0 %123 }
 0x128   :  { %2151 = vrsqrt.f32 %v121_v18  ;;  %vm138_vm8 = vcmp.gt.f32.partialorder %v121_v18, 0.0  ;;  %vm139_vm9 = vcmp.gt.f32.partialorder %v124_v19, 0.0 }
 0x129   :  { %2153 = vrsqrt.f32 %v124_v19 }
 0x12b   :  { %v127_v20 = vpop.xlane.xlu1 %126 }
 0x12c   :  { %2155 = vrsqrt.f32 %v127_v20  ;;  %vm140_vm10 = vcmp.gt.f32.partialorder %v127_v20, 0.0 }
 0x12e   :  { %v2150_v22 = vpop.eup %2149 }
 0x12f   :  { %v145_v23 = vsel %vm137_vm6, %v2150_v22, 0.0  ;;  %v2096_v22 = vpack.c.bf16 %v2465_v6, %v2455_v54 }
 0x130   :  { %v152_v24 = vmul.f32 %v145_v23, %v111_v49  ;;  %v2102_v23 = vpack.c.bf16 %v2479_v8, %v2470_v7 }
 0x132   :  { %v2152_v26 = vpop.eup %2151  ;;  %v156_v27 = vmul.f32 %v152_v24, %v151_v25 }
 0x133   :  { %v2154_v28 = vpop.eup %2153  ;;  %v146_v33 = vsel %vm138_vm8, %v2152_v26, 0.0 }
 0x134   :  { %v153_v34 = vmul.f32 %v146_v33, %v112_v56  ;;  %v147_v41 = vsel %vm139_vm9, %v2154_v28, 0.0  ;;  %1890 = vmatprep.mubr.msk.f32.mxu1 %vm115_vm1, %v156_v27 }
 0x135   :  { %v154_v42 = vmul.f32 %v147_v41, %v2426_v50 }
 0x136   :  { %v2156_v43 = vpop.eup %2155  ;;  %v157_v44 = vmul.f32 %v153_v34, %v151_v25 }
 0x137   :  { %v148_v45 = vsel %vm140_vm10, %v2156_v43, 0.0  ;;  %v158_v46 = vmul.f32 %v154_v42, %v151_v25 }
 0x138   :  { %v155_v51 = vmul.f32 %v148_v45, %v114_v58  ;;  %1891 = vmatmul.mubr.msk.f32.vlgmr.msra.gmra.mrb[0].mxu1 %vm115_vm1, %v157_v44 }
 0x139   :  { %1893 = vmatprep.mubr.msk.f32.mxu1 %vm115_vm1, %v158_v46  ;;  %2063 = vmatpush3.bf16.msra.mxu1 %v2060_v10 }
 0x13a   :  { %v159_v49 = vmul.f32 %v155_v51, %v151_v25  ;;  %2065 = vmatprep.subr.bf16.mxu1 %v2064_v52 }
 0x13c   :  { %1894 = vmatmul.mubr.msk.f32.gmra.mrb[2].mxu1 %vm115_vm1, %v159_v49 }
 0x13d   :  { %2067 = vmatpush3.bf16.msra.mxu1 %v2064_v52 }
 0x147   :  { %v482_v53 = vpop.trf.xlu0 }
 0x148   :  { %1918 = vmatprep.mubr.msk.f32.mxu1 %vm115_vm1, %v482_v53 }
 0x14b   :  { %v483_v50 = vpop.trf.xlu0 }
 0x14c   :  { %1919 = vmatmul.mubr.msk.f32.vlgmr.msra.gmra.mrb[4].mxu1 %vm115_vm1, %v483_v50 }
 0x14f   :  { %v484_v9 = vpop.trf.xlu0 }
 0x150   :  { %1921 = vmatprep.mubr.msk.f32.mxu1 %vm115_vm1, %v484_v9 }
 0x153   :  { %v485_v10 = vpop.trf.xlu0 }
 0x154   :  { %1922 = vmatmul.mubr.msk.f32.gmra.mrb[6].mxu1 %vm115_vm1, %v485_v10 }
 0x20b   :  { %v1892_v56 = vpop.f32.mrb[0].mxu1 }
 0x20c   :  { %v352_v57 = vadd.f32 %v1892_v56, %v1716_v55  ;;  %v346_v58 = vpop.f32.mrb[1].mxu1 }
 0x20d   :  { %v347_v59 = vadd.f32 %v1716_v55, %v346_v58 }
 0x20f   :  { %v2052_v60 = vpack.c.bf16 %v352_v57, %v347_v59  ;;  %v1895_v61 = vpop.f32.mrb[2].mxu1 }
 0x210   :  { %v362_v62 = vadd.f32 %v1895_v61, %v1716_v55  ;;  %v356_v63 = vpop.f32.mrb[3].mxu1 }
 0x211   :  { %v357_v3 = vadd.f32 %v1716_v55, %v356_v63  ;;  %2053 = vmatprep.subr.bf16.mxu0 %v2052_v60  ;;  %2081 = vmatprep.subr.bf16.mxu1 %v2052_v60 }
 0x212   :  { %2055 = vmatpush3.bf16.msra.mxu0 %v2052_v60  ;;  %2083 = vmatpush3.bf16.msra.mxu1 %v2052_v60 }
 0x213   :  { %v2056_v4 = vpack.c.bf16 %v362_v62, %v357_v3 }
 0x215   :  { %2057 = vmatprep.subr.bf16.mxu0 %v2056_v4  ;;  %2085 = vmatprep.subr.bf16.mxu1 %v2056_v4 }
 0x216   :  { %2059 = vmatpush3.bf16.msra.mxu0 %v2056_v4  ;;  %2087 = vmatpush3.bf16.msra.mxu1 %v2056_v4 }
 0x219   :  { %1905 = vmatmul.mubr.msk.f32.vlgmr.msra.gmra.mrb[4].mxu0 %vm115_vm1, %v2465_v6 }
 0x21a   :  { %1907 = vmatprep.mubr.msk.f32.mxu0 %vm115_vm1, %v2470_v7 }
 0x21d   :  { %1908 = vmatmul.mubr.msk.f32.gmra.mrb[6].mxu0 %vm115_vm1, %v2479_v8 }
 0x21e   :  { %1932 = vmatprep.mubr.msk.f32.mxu0 %vm115_vm1, %v347_v59 }
 0x21f   :  { %v1920_v24 = vpop.f32.mrb[4].mxu1 }
 0x220   :  { %v576_v25 = vpop.f32.mrb[5].mxu1  ;;  %v2536_v9 = vmax.f32 %v1920_v24, %v2339_v2 }
 0x222   :  { %vm709_vm6 = vcmp.gt.f32.partialorder %v2536_v9, 0.0 }
 0x227   :  { %v1923_v26 = vpop.f32.mrb[6].mxu1 }
 0x228   :  { %v586_v27 = vpop.f32.mrb[7].mxu1 }
 0x2ec   :  { %v2486_v11 = vpop.f32.mrb[4].mxu0 }
 0x2ed   :  { %v463_v12 = vmax.f32 %v2486_v11, 0.0  ;;  %v2489_v13 = vpop.f32.mrb[5].mxu0 }
 0x2ee   :  { %v462_v14 = vmax.f32 %v2489_v13, 0.0 }
 0x2f0   :  { %v2068_v16 = vpack.c.bf16 %v463_v12, %v462_v14  ;;  %v2502_v17 = vpop.f32.mrb[6].mxu0 }
 0x2f1   :  { %v465_v18 = vmax.f32 %v2502_v17, 0.0  ;;  %v2505_v19 = vpop.f32.mrb[7].mxu0 }
 0x2f2   :  { %2070 = vmatprep.subr.msk.bf16.mxu0 %vm2494_vm11, %v2068_v16  ;;  %v464_v20 = vmax.f32 %v2505_v19, 0.0 }
 0x2f3   :  { %2073 = vmatpush3.bf16.xpose.msk.msra.mxu0 %vm2494_vm11, %v2068_v16  ;;  %v2539_v16 = vmax.f32 %v576_v25, %v2329_v0 }
 0x2f4   :  { %v2074_v21 = vpack.c.bf16 %v465_v18, %v464_v20 }
 0x2f5   :  { %vm708_vm7 = vcmp.gt.f32.partialorder %v2539_v16, 0.0 }
 0x2f6   :  { %2076 = vmatprep.subr.msk.bf16.mxu0 %vm2494_vm11, %v2074_v21 }
 0x2fb   :  { %2079 = vmatpush3.bf16.xpose.msk.msra.mxu0 %vm2494_vm11, %v2074_v21 }
 0x2fc   :  { %2098 = vmatprep.subr.msk.bf16.mxu0 %vm2494_vm11, %v2096_v22 }
 0x302   :  { %1933 = vmatmul.mubr.msk.f32.vlgmr.msra.gmra.mrb[8].mxu0 %vm115_vm1, %v352_v57 }
 0x303   :  { %1935 = vmatprep.mubr.msk.f32.mxu0 %vm115_vm1, %v357_v3  ;;  %2101 = vmatpush3.bf16.xpose.msk.msra.mxu0 %vm2494_vm11, %v2096_v22 }
 0x304   :  { %2104 = vmatprep.subr.msk.bf16.mxu0 %vm2494_vm11, %v2102_v23 }
 0x306   :  { %1936 = vmatmul.mubr.msk.f32.gmra.mrb[10].mxu0 %vm115_vm1, %v362_v62 }
 0x30b   :  { %2107 = vmatpush3.bf16.xpose.msk.msra.mxu0 %vm2494_vm11, %v2102_v23 }
 0x3d5   :  { %v1934_v28 = vpop.f32.mrb[8].mxu0 }
 0x3d6   :  { %v713_v33 = vand.u32 2147483647, %v1934_v28  ;;  %v689_v34 = vpop.f32.mrb[9].mxu0  ;;  %vm737_vm12 = vcmp.ge.f32.partialorder %v1934_v28, 0.0  ;;  %v2548_v28 = vmax.f32 %v1923_v26, %v2348_v5 }
 0x3d7   :  { %v712_v41 = vand.u32 2147483647, %v689_v34  ;;  %vm736_vm13 = vcmp.ge.f32.partialorder %v689_v34, 0.0 }
 0x3d8   :  { %v717_v42 = vsub.f32 0.0, %v713_v33  ;;  %vm711_vm9 = vcmp.gt.f32.partialorder %v2548_v28, 0.0 }
 0x3d9   :  { %v716_v43 = vsub.f32 0.0, %v712_v41  ;;  %v1937_v44 = vpop.f32.mrb[10].mxu0 }
 0x3da   :  { %v722_v45 = vmul.f32 1.442695, %v717_v42  ;;  %v715_v46 = vand.u32 2147483647, %v1937_v44  ;;  %v699_v51 = vpop.f32.mrb[11].mxu0  ;;  %vm739_vm15 = vcmp.ge.f32.partialorder %v1937_v44, 0.0 }
 0x3db   :  { %v720_v49 = vmul.f32 1.442695, %v716_v43  ;;  %v714_v52 = vand.u32 2147483647, %v699_v51  ;;  %v2543_v43 = vmax.f32 %v586_v27, %v2334_v1  ;;  %vm738_vm14 = vcmp.ge.f32.partialorder %v699_v51, 0.0 }
 0x3dc   :  { %2157 = vpow2.f32 %v722_v45  ;;  %v719_v53 = vsub.f32 0.0, %v715_v46 }
 0x3dd   :  { %2159 = vpow2.f32 %v720_v49  ;;  %v718_v50 = vsub.f32 0.0, %v714_v52  ;;  %vm710_vm8 = vcmp.gt.f32.partialorder %v2543_v43, 0.0 }
 0x3de   :  { %v726_v55 = vmul.f32 1.442695, %v719_v53 }
 0x3df   :  { %v724_v56 = vmul.f32 1.442695, %v718_v50 }
 0x3e0   :  { %2161 = vpow2.f32 %v726_v55 }
 0x3e1   :  { %2163 = vpow2.f32 %v724_v56 }
 0x3e6   :  { %v2158_v57 = vpop.eup %2157 }
 0x3e7   :  { %v2160_v58 = vpop.eup %2159  ;;  %v729_v59 = vadd.f32 1.0, %v2158_v57 }
 0x3e8   :  { %v728_v60 = vadd.f32 1.0, %v2160_v58 }
 0x3e9   :  { %2165 = vrcp.f32 %v729_v59  ;;  %v805_v59 = vstv %s2774_s11 }
 0x3ea   :  { %v2162_v61 = vpop.eup %2161  ;;  %2167 = vrcp.f32 %v728_v60 }
 0x3eb   :  { %v2164_v62 = vpop.eup %2163  ;;  %v731_v63 = vadd.f32 1.0, %v2162_v61 }
 0x3ec   :  { %v730_v3 = vadd.f32 1.0, %v2164_v62 }
 0x3ed   :  { %2169 = vrcp.f32 %v731_v63 }
 0x3ee   :  { %2171 = vrcp.f32 %v730_v3 }
 0x3f3   :  { %v2166_v4 = vpop.eup %2165 }
 0x3f4   :  { %v2168_v10 = vpop.eup %2167  ;;  %v741_v15 = vsub.f32 1.0, %v2166_v4 }
 0x3f5   :  { %v740_v21 = vsub.f32 1.0, %v2168_v10 }
 0x3f6   :  { %v745_v22 = vsel %vm737_vm12, %v2166_v4, %v741_v15 }
 0x3f7   :  { %v2170_v23 = vpop.eup %2169  ;;  %v749_v33 = vmul.f32 %v745_v22, %v2536_v9  ;;  %v744_v41 = vsel %vm736_vm13, %v2168_v10, %v740_v21 }
 0x3f8   :  { %v2172_v42 = vpop.eup %2171  ;;  %v748_v24 = vmul.f32 %v744_v41, %v2539_v16  ;;  %v743_v0 = vsub.f32 1.0, %v2170_v23 }
 0x3f9   :  { %v755_v2 = vsel %vm94_vm0, %v749_v33, 0.0  ;;  %v742_v45 = vsub.f32 1.0, %v2172_v42 }
 0x3fa   :  { %756 = vadd.xlane.f32.xlu1 %v755_v2  ;;  %v752_v34 = vsel %vm94_vm0, %v748_v24, 0.0  ;;  %v747_v1 = vsel %vm739_vm15, %v2170_v23, %v743_v0  ;;  %vm2242_vm15 = vmmov 1  }
 0x3fb   :  { %v746_v25 = vsel %vm738_vm14, %v2172_v42, %v742_v45  ;;  %v751_v49 = vmul.f32 %v747_v1, %v2548_v28  ;;  %vm1371_vm14 = vcmask 1043456  }
 0x3fc   :  { %v750_v46 = vmul.f32 %v746_v25, %v2543_v43 }
 0x3fd   :  { %v761_v51 = vsel %vm94_vm0, %v751_v49, 0.0 }
 0x3fe   :  { %753 = vadd.xlane.f32.xlu1 %v752_v34  ;;  %v758_v27 = vsel %vm94_vm0, %v750_v46, 0.0 }
 0x402   :  { %759 = vadd.xlane.f32.xlu1 %v758_v27 }
 0x406   :  { %762 = vadd.xlane.f32.xlu1 %v761_v51 }
 0x487   :  { %v757_v52 = vpop.xlane.xlu1 %756 }
 0x488   :  { %v769_v53 = vmax.f32 %v757_v52, 1e-20  ;;  %vm765_vm2 = vcmp.gt.f32.partialorder %v757_v52, 0.0 }
 0x48a   :  { %2173 = vrcp.f32 %v769_v53 }
 0x48b   :  { %v754_v44 = vpop.xlane.xlu1 %753 }
 0x48c   :  { %v768_v5 = vmax.f32 %v754_v44, 1e-20  ;;  %vm764_vm3 = vcmp.gt.f32.partialorder %v754_v44, 0.0 }
 0x48e   :  { %2175 = vrcp.f32 %v768_v5 }
 0x48f   :  { %v760_v26 = vpop.xlane.xlu1 %759 }
 0x490   :  { %v770_v50 = vmax.f32 %v760_v26, 1e-20  ;;  %vm766_vm4 = vcmp.gt.f32.partialorder %v760_v26, 0.0 }
 0x492   :  { %2177 = vrcp.f32 %v770_v50 }
 0x493   :  { %v763_v55 = vpop.xlane.xlu1 %762 }
 0x494   :  { %v2174_v56 = vpop.eup %2173  ;;  %v771_v57 = vmax.f32 %v763_v55, 1e-20  ;;  %vm767_vm5 = vcmp.gt.f32.partialorder %v763_v55, 0.0 }
 0x495   :  { %v777_v58 = vmul.f32 %v2174_v56, %v749_v33 }
 0x496   :  { %2179 = vrcp.f32 %v771_v57 }
 0x497   :  { %v789_v60 = vsel %vm765_vm2, %v777_v58, 0.0  ;;  %2181 = vrcp.f32 %v805_v59  ;;  %vm2121_vm2 = vmpackc.low %vm1371_vm14, %vm2242_vm15 }
 0x498   :  { %v2176_v61 = vpop.eup %2175  ;;  %v794_v62 = vmax.f32 %v789_v60, 1e-20 }
 0x499   :  { %v776_v63 = vmul.f32 %v2176_v61, %v748_v24 }
 0x49a   :  { %2183 = vlog2.f32 %v794_v62 }
 0x49b   :  { %v788_v3 = vsel %vm764_vm3, %v776_v63, 0.0  ;;  %vm1215_vm3 = vcmask 224256  }
 0x49c   :  { %v2178_v4 = vpop.eup %2177  ;;  %v793_v10 = vmax.f32 %v788_v3, 1e-20 }
 0x49d   :  { %v778_v15 = vmul.f32 %v2178_v4, %v750_v46 }
 0x49e   :  { %2185 = vlog2.f32 %v793_v10 }
 0x49f   :  { %v790_v21 = vsel %vm766_vm4, %v778_v15, 0.0 }
 0x4a0   :  { %v2180_v22 = vpop.eup %2179  ;;  %v795_v23 = vmax.f32 %v790_v21, 1e-20 }
 0x4a1   :  { %v779_v33 = vmul.f32 %v2180_v22, %v751_v49  ;;  %v2182_v41 = vpop.eup %2181 }
 0x4a2   :  { %2187 = vlog2.f32 %v795_v23 }
 0x4a3   :  { %v791_v42 = vsel %vm767_vm5, %v779_v33, 0.0 }
 0x4a4   :  { %v2184_v2 = vpop.eup %2183  ;;  %v796_v45 = vmax.f32 %v791_v42, 1e-20 }
 0x4a5   :  { %v800_v24 = vmul.f32 0.6931472, %v2184_v2 }
 0x4a6   :  { %2189 = vlog2.f32 %v796_v45 }
 0x4a7   :  { %v808_v0 = vmul.f32 %v2182_v41, %v800_v24 }
 0x4a8   :  { %v2186_v25 = vpop.eup %2185 }
 0x4a9   :  { %v812_v34 = vsel %vm709_vm6, %v808_v0, -1e+30  ;;  %v798_v46 = vmul.f32 0.6931472, %v2186_v25 }
 0x4aa   :  { %v818_v1 = vsel %vm94_vm0, %v812_v34, -inf }
 0x4ab   :  { %819 = vmax.xlane.f32.xlu1 %v818_v1  ;;  %v807_v27 = vmul.f32 %v2182_v41, %v798_v46 }
 0x4ac   :  { %v2188_v49 = vpop.eup %2187 }
 0x4ad   :  { %v811_v51 = vsel %vm708_vm7, %v807_v27, -1e+30  ;;  %v802_v52 = vmul.f32 0.6931472, %v2188_v49 }
 0x4ae   :  { %v815_v53 = vsel %vm94_vm0, %v811_v51, -inf }
 0x4af   :  { %816 = vmax.xlane.f32.xlu1 %v815_v53  ;;  %v809_v44 = vmul.f32 %v2182_v41, %v802_v52 }
 0x4b0   :  { %v2190_v5 = vpop.eup %2189 }
 0x4b1   :  { %v813_v26 = vsel %vm710_vm8, %v809_v44, -1e+30  ;;  %v804_v50 = vmul.f32 0.6931472, %v2190_v5 }
 0x4b2   :  { %v821_v55 = vsel %vm94_vm0, %v813_v26, -inf }
 0x4b3   :  { %822 = vmax.xlane.f32.xlu1 %v821_v55  ;;  %v810_v56 = vmul.f32 %v2182_v41, %v804_v50 }
 0x4b5   :  { %v814_v57 = vsel %vm711_vm9, %v810_v56, -1e+30 }
 0x4b6   :  { %v824_v58 = vsel %vm94_vm0, %v814_v57, -inf }
 0x4b7   :  { %825 = vmax.xlane.f32.xlu1 %v824_v58 }
 0x538   :  { %v820_v59 = vpop.xlane.xlu1 %819 }
 0x539   :  { %v828_v60 = vsub.f32 %v812_v34, %v820_v59 }
 0x53b   :  { %v833_v61 = vmul.f32 1.442695, %v828_v60 }
 0x53c   :  { %v817_v62 = vpop.xlane.xlu1 %816 }
 0x53d   :  { %2191 = vpow2.f32 %v833_v61  ;;  %v827_v63 = vsub.f32 %v811_v51, %v817_v62 }
 0x53f   :  { %v831_v3 = vmul.f32 1.442695, %v827_v63  ;;  %v2088_v63 = vpack.c.bf16 %v2418_v47, %v2400_v37  ;;  %v1252_v37 = vld [vmem:[%s2769_s6 + $0x8] sm:$0xff] }
 0x540   :  { %v823_v4 = vpop.xlane.xlu1 %822 }
 0x541   :  { %2193 = vpow2.f32 %v831_v3  ;;  %v829_v10 = vsub.f32 %v813_v26, %v823_v4  ;;  %2089 = vmatprep.subr.bf16.mxu1 %v2088_v63  ;;  %v2092_v4 = vpack.c.bf16 %v2422_v48, %v2404_v38  ;;  %v1253_v48 = vld [vmem:[%s2769_s6 + $0x10] sm:$0xff] }
 0x543   :  { %v835_v15 = vmul.f32 1.442695, %v829_v10 }
 0x544   :  { %v826_v21 = vpop.xlane.xlu1 %825 }
 0x545   :  { %2195 = vpow2.f32 %v835_v15  ;;  %v830_v22 = vsub.f32 %v814_v57, %v826_v21  ;;  %v1251_v15 = vld [vmem:[%s2769_s6] sm:$0xff] }
 0x546   :  { %v2108_v47 = vpack.c.bf16 %v1252_v37, %v1251_v15 }
 0x547   :  { %v2192_v23 = vpop.eup %2191  ;;  %v837_v33 = vmul.f32 1.442695, %v830_v22  ;;  %v1254_v22 = vld [vmem:[%s2769_s6 + $0x18] sm:$0xff]  ;;  %s1685_s6 = sshll.u32 %s2243_s19, 4  ;;  %s1686_s6 = int_to_ptr.vmem [resolvable:$true] %s1685_s6 }
 0x548   :  { %v840_v41 = vsel %vm709_vm6, %v2192_v23, 0.0  ;;  %v2112_v23 = vpack.c.bf16 %v1254_v22, %v1253_v48  ;;  %s2217_s5 = scalar_lea.vmem %s1686_s6, 512  ;;  %p2222_p1 = scmp.lt.s32.totalorder %s1686_s6, %s1686_s6 }
 0x549   :  { %2197 = vpow2.f32 %v837_v33  ;;  %v846_v42 = vsel %vm94_vm0, %v840_v41, 0.0  ;;  %p2218_p0 = scmp.ne.s32.totalorder %s1686_s6, %s2217_s5  ;;  %p2223_p2 = scmp.lt.s32.totalorder %s2217_s5, %s2217_s5 }
 0x54a   :  { %847 = vadd.xlane.f32.xlu1 %v846_v42 }
 0x54b   :  { %v2194_v2 = vpop.eup %2193  ;;  %p2224_p3 = por %p2223_p2, %p2222_p1 }
 0x54c   :  { %v839_v45 = vsel %vm708_vm7, %v2194_v2, 0.0 }
 0x54d   :  { %v843_v24 = vsel %vm94_vm0, %v839_v45, 0.0  ;;  %p2225_p4 = pnand %p2224_p3, %p2218_p0 }
 0x54e   :  { %844 = vadd.xlane.f32.xlu1 %v843_v24 }
 0x54f   :  { %v2196_v0 = vpop.eup %2195 }
 0x550   :  { %v841_v25 = vsel %vm710_vm8, %v2196_v0, 0.0 }
 0x551   :  { %v849_v34 = vsel %vm94_vm0, %v841_v25, 0.0 }
 0x552   :  { %850 = vadd.xlane.f32.xlu1 %v849_v34 }
 0x553   :  { %v2198_v9 = vpop.eup %2197 }
 0x554   :  { %v842_v46 = vsel %vm711_vm9, %v2198_v9, 0.0  ;;  %vm1674_vm9 = vcmask 195584  }
 0x555   :  { %v852_v1 = vsel %vm94_vm0, %v842_v46, 0.0 }
 0x556   :  { %853 = vadd.xlane.f32.xlu1 %v852_v1 }
 0x5d7   :  { %v848_v27 = vpop.xlane.xlu1 %847 }
 0x5d8   :  { %v856_v16 = vmax.f32 %v848_v27, 1e-20 }
 0x5da   :  { %2199 = vrcp.f32 %v856_v16 }
 0x5db   :  { %v845_v49 = vpop.xlane.xlu1 %844 }
 0x5dc   :  { %v855_v51 = vmax.f32 %v845_v49, 1e-20 }
 0x5de   :  { %2201 = vrcp.f32 %v855_v51 }
 0x5df   :  { %v851_v52 = vpop.xlane.xlu1 %850 }
 0x5e0   :  { %v857_v53 = vmax.f32 %v851_v52, 1e-20 }
 0x5e2   :  { %2203 = vrcp.f32 %v857_v53 }
 0x5e3   :  { %v854_v43 = vpop.xlane.xlu1 %853 }
 0x5e4   :  { %v2200_v44 = vpop.eup %2199  ;;  %v858_v5 = vmax.f32 %v854_v43, 1e-20 }
 0x5e5   :  { %v864_v26 = vmul.f32 %v2200_v44, %v840_v41 }
 0x5e6   :  { %2205 = vrcp.f32 %v858_v5 }
 0x5e7   :  { %vm868_vm10 = vcmp.ge.f32.partialorder %v864_v26, 0.017857144 }
 0x5e8   :  { %v2202_v28 = vpop.eup %2201  ;;  %v872_v50 = vsel %vm868_vm10, %v864_v26, 0.0  ;;  %vm1678_vm10 = vcmask 191488  }
 0x5e9   :  { %v863_v55 = vmul.f32 %v2202_v28, %v839_v45  ;;  %876 = vst.msk [vmem:[%s2777_s14 + $0x8] sm:$0xff] %vm94_vm0, %v872_v50 }
 0x5eb   :  { %vm867_vm11 = vcmp.ge.f32.partialorder %v863_v55, 0.017857144 }
 0x5ec   :  { %v2204_v56 = vpop.eup %2203  ;;  %v871_v57 = vsel %vm867_vm11, %v863_v55, 0.0  ;;  %v1586_v55 = vld [vmem:[%s2773_s10 + $0x8] sm:$0xff] }
 0x5ed   :  { %879 = vxpose.xlu1.b32.start [1/4] (short) (narrow) %v871_v57, 32  ;;  %875 = vst.msk [vmem:[%s2777_s14] sm:$0xff] %vm94_vm0, %v871_v57  ;;  %v865_v58 = vmul.f32 %v2204_v56, %v841_v25  ;;  %v1470_v56 = vld [vmem:[%s2771_s8 + $0x8] sm:$0xff] }
 0x5ef   :  { %vm869_vm12 = vcmp.ge.f32.partialorder %v865_v58, 0.017857144 }
 0x5f0   :  { %v2206_v59 = vpop.eup %2205  ;;  %v873_v60 = vsel %vm869_vm12, %v865_v58, 0.0 }
 0x5f1   :  { %880 = vxpose.xlu1.b32.cont [2/4] (short) (narrow) %v872_v50, 32  ;;  %877 = vst.msk [vmem:[%s2777_s14 + $0x10] sm:$0xff] %vm94_vm0, %v873_v60  ;;  %v866_v61 = vmul.f32 %v2206_v59, %v842_v46 }
 0x5f3   :  { %vm870_vm13 = vcmp.ge.f32.partialorder %v866_v61, 0.017857144 }
 0x5f4   :  { %v874_v62 = vsel %vm870_vm13, %v866_v61, 0.0 }
 0x5f5   :  { %881 = vxpose.xlu1.b32.cont [3/4] (short) (narrow) %v873_v60, 32  ;;  %878 = vst.msk [vmem:[%s2777_s14 + $0x18] sm:$0xff] %vm94_vm0, %v874_v62 }
 0x5f9   :  { %882 = vxpose.xlu1.b32.end [4/4] (short) (narrow) %v874_v62, 32 }
 0x66d   :  { %v2604_v3 = vpop.trf.xlu1 }
 0x66e   :  { %1946 = vmatprep.mubr.msk.f32.mxu1 %vm115_vm1, %v2604_v3 }
 0x671   :  { %v2610_v10 = vpop.trf.xlu1 }
 0x672   :  { %1947 = vmatmul.mubr.msk.f32.vlgmr.msra.gmra.mrb[8].mxu1 %vm115_vm1, %v2610_v10 }
 0x673   :  { %2091 = vmatpush3.bf16.msra.mxu1 %v2088_v63 }
 0x674   :  { %2093 = vmatprep.subr.bf16.mxu1 %v2092_v4 }
 0x675   :  { %v2620_v21 = vpop.trf.xlu1 }
 0x676   :  { %1949 = vmatprep.mubr.msk.f32.mxu1 %vm115_vm1, %v2620_v21 }
 0x677   :  { %2095 = vmatpush3.bf16.msra.mxu1 %v2092_v4 }
 0x678   :  { %2109 = vmatprep.subr.bf16.mxu1 %v2108_v47 }
 0x679   :  { %v2624_v38 = vpop.trf.xlu1 }
 0x67a   :  { %1950 = vmatmul.mubr.msk.f32.gmra.mrb[10].mxu1 %vm115_vm1, %v2624_v38 }
 0x67b   :  { %1960 = vmatprep.mubr.msk.f32.mxu1 %vm115_vm1, %v2455_v54 }
 0x67e   :  { %1961 = vmatmul.mubr.msk.f32.vlgmr.msra.gmra.mrb[12].mxu1 %vm115_vm1, %v2465_v6 }
 0x67f   :  { %1963 = vmatprep.mubr.msk.f32.mxu1 %vm115_vm1, %v2470_v7  ;;  %2111 = vmatpush3.bf16.msra.mxu1 %v2108_v47 }
 0x680   :  { %2113 = vmatprep.subr.bf16.mxu1 %v2112_v23 }
 0x682   :  { %1964 = vmatmul.mubr.msk.f32.gmra.mrb[14].mxu1 %vm115_vm1, %v2479_v8 }
 0x683   :  { %2115 = vmatpush3.bf16.msra.mxu1 %v2112_v23 }
 0x745   :  { %v1948_v54 = vpop.f32.mrb[8].mxu1 }
 0x746   :  { %v1009_v6 = vadd.f32 %v1948_v54, %v463_v12  ;;  %v989_v7 = vpop.f32.mrb[9].mxu1 }
 0x747   :  { %v1008_v33 = vadd.f32 %v989_v7, %v462_v14 }
 0x748   :  { %v1013_v41 = vmul.f32 0.5, %v1009_v6 }
 0x749   :  { %v1012_v8 = vmul.f32 0.5, %v1008_v33 }
 0x74b   :  { %1988 = vmatprep.mubr.msk.f32.mxu1 %vm115_vm1, %v1012_v8  ;;  %v1587_v8 = vld [vmem:[%s2773_s10 + $0x10] sm:$0xff] }
 0x74c   :  { %1989 = vmatmul.mubr.msk.f32.vlgmr.msra.gmra.mrb[16].mxu1 %vm115_vm1, %v1013_v41  ;;  %v1588_v41 = vld [vmem:[%s2773_s10 + $0x18] sm:$0xff] }
 0x74d   :  { %v1951_v42 = vpop.f32.mrb[10].mxu1 }
 0x74e   :  { %v1011_v2 = vadd.f32 %v1951_v42, %v465_v18  ;;  %v999_v45 = vpop.f32.mrb[11].mxu1 }
 0x74f   :  { %v1010_v24 = vadd.f32 %v999_v45, %v464_v20 }
 0x750   :  { %v1015_v0 = vmul.f32 0.5, %v1011_v2 }
 0x751   :  { %v1014_v11 = vmul.f32 0.5, %v1010_v24  ;;  %v1962_v12 = vpop.f32.mrb[12].mxu1 }
 0x752   :  { %v1082_v25 = vpop.f32.mrb[13].mxu1 }
 0x753   :  { %1974 = vmatprep.mubr.msk.f32.mxu0 %vm115_vm1, %v1082_v25  ;;  %1991 = vmatprep.mubr.msk.f32.mxu1 %vm115_vm1, %v1014_v11 }
 0x754   :  { %1975 = vmatmul.mubr.msk.f32.vlgmr.msra.gmra.mrb[12].mxu0 %vm115_vm1, %v1962_v12  ;;  %1992 = vmatmul.mubr.msk.f32.gmra.mrb[18].mxu1 %vm115_vm1, %v1015_v0  ;;  %v2138_v12 = vpack.c.bf16 %v1588_v41, %v1587_v8 }
 0x755   :  { %v1965_v13 = vpop.f32.mrb[14].mxu1 }
 0x756   :  { %v1092_v14 = vpop.f32.mrb[15].mxu1 }
 0x757   :  { %1977 = vmatprep.mubr.msk.f32.mxu0 %vm115_vm1, %v1092_v14 }
 0x758   :  { %1978 = vmatmul.mubr.msk.f32.gmra.mrb[14].mxu0 %vm115_vm1, %v1965_v13 }
 0x81f   :  { %v1990_v17 = vpop.f32.mrb[16].mxu1 }
 0x820   :  { %v1333_v18 = vpop.f32.mrb[17].mxu1 }
 0x821   :  { %v2116_v19 = vpack.c.bf16 %v1990_v17, %v1333_v18 }
 0x823   :  { %2117 = vmatprep.subr.bf16.mxu1 %v2116_v19 }
 0x824   :  { %2119 = vmatpush3.bf16.msra.mxu1 %v2116_v19  ;;  %v1471_v19 = vld [vmem:[%s2771_s8 + $0x10] sm:$0xff] }
 0x827   :  { %v1976_v20 = vpop.f32.mrb[12].mxu0  ;;  %v1993_v34 = vpop.f32.mrb[18].mxu1 }
 0x828   :  { %v1199_v9 = vmul.f32 %v1976_v20, %v79_v39  ;;  %v1179_v46 = vpop.f32.mrb[13].mxu0  ;;  %v1343_v1 = vpop.f32.mrb[19].mxu1  ;;  %v1472_v20 = vld [vmem:[%s2771_s8 + $0x18] sm:$0xff] }
 0x829   :  { %v1198_v27 = vmul.f32 %v1179_v46, %v78_v31  ;;  %v2120_v16 = vpack.c.bf16 %v1993_v34, %v1343_v1  ;;  %v2130_v34 = vpack.c.bf16 %v1472_v20, %v1471_v19 }
 0x82a   :  { %v1203_v49 = vadd.f32 %v2394_v35, %v1199_v9 }
 0x82b   :  { %v1979_v51 = vpop.f32.mrb[14].mxu0  ;;  %2122 = vmatprep.subr.msk.bf16.mxu1 %vm2121_vm2, %v2120_v16  ;;  %v1202_v52 = vadd.f32 %v2382_v29, %v1198_v27 }
 0x82c   :  { %v1201_v53 = vmul.f32 %v1979_v51, %v81_v40  ;;  %v1189_v43 = vpop.f32.mrb[15].mxu0  ;;  %2125 = vmatpush3.bf16.msk.msra.mxu1 %vm2121_vm2, %v2120_v16  ;;  %v1209_v39 = vsel %vm94_vm0, %v1203_v49, 0.0 }
 0x82d   :  { %v1200_v44 = vmul.f32 %v1189_v43, %v80_v32  ;;  %1210 = vadd.xlane.f32.xlu0 %v1209_v39  ;;  %v1206_v31 = vsel %vm94_vm0, %v1202_v52, 0.0  ;;  %v1585_v32 = vld [vmem:[%s2773_s10] sm:$0xff] }
 0x82e   :  { %v1219_v5 = vadd.f32 %v1209_v39, %v1206_v31  ;;  %v1205_v26 = vadd.f32 %v2396_v36, %v1201_v53  ;;  %v1469_v36 = vld [vmem:[%s2771_s8] sm:$0xff] }
 0x82f   :  { %v1204_v35 = vadd.f32 %v2384_v30, %v1200_v44  ;;  %v2134_v30 = vpack.c.bf16 %v1586_v55, %v1585_v32  ;;  %v2126_v57 = vpack.c.bf16 %v1470_v56, %v1469_v36 }
 0x830   :  { %v1216_v28 = vsel %vm1215_vm3, %v1205_v26, 0.0 }
 0x831   :  { %1207 = vadd.xlane.f32.xlu0 %v1206_v31  ;;  %v1212_v29 = vsel %vm94_vm0, %v1204_v35, 0.0  ;;  %2135 = vmatprep.subr.bf16.mxu1 %v2134_v30 }
 0x832   :  { %v1220_v40 = vadd.f32 %v1219_v5, %v1212_v29  ;;  %2127 = vmatprep.subr.bf16.mxu0 %v2126_v57 }
 0x833   :  { %2129 = vmatpush3.bf16.msra.mxu0 %v2126_v57 }
 0x834   :  { %v1221_v50 = vadd.f32 %v1220_v40, %v1216_v28  ;;  %2131 = vmatprep.subr.bf16.mxu0 %v2130_v34 }
 0x835   :  { %1213 = vadd.xlane.f32.xlu0 %v1212_v29 }
 0x836   :  { %v1222_v58 = vrot.slane %v1221_v50, 4 }
 0x837   :  { %2133 = vmatpush3.bf16.msra.mxu0 %v2130_v34 }
 0x838   :  { %v1223_v59 = vadd.f32 %v1222_v58, %v1221_v50 }
 0x839   :  { %1217 = vadd.xlane.f32.xlu0 %v1216_v28 }
 0x83a   :  { %v1224_v60 = vrot.slane %v1223_v59, 2 }
 0x83c   :  { %v1225_v61 = vadd.f32 %v1224_v60, %v1223_v59 }
 0x83e   :  { %v1226_v62 = vrot.slane %v1225_v61, 1 }
 0x840   :  { %v1227_v63 = vadd.f32 %v1226_v62, %v1225_v61 }
 0x842   :  { %vm1240_vm6 = vcmp.gt.f32.partialorder %v1227_v63, 0.0 }
 0x8ba   :  { %v1211_v4 = vpop.xlane.xlu0 %1210 }
 0x8bb   :  { %2207 = vrsqrt.f32 %v1211_v4  ;;  %vm1229_vm4 = vcmp.gt.f32.partialorder %v1211_v4, 0.0 }
 0x8bc   :  { %2209 = vrsqrt.f32 %v1227_v63 }
 0x8be   :  { %v1208_v15 = vpop.xlane.xlu0 %1207 }
 0x8bf   :  { %2211 = vrsqrt.f32 %v1208_v15  ;;  %vm1228_vm5 = vcmp.gt.f32.partialorder %v1208_v15, 0.0 }
 0x8c2   :  { %v1214_v37 = vpop.xlane.xlu0 %1213 }
 0x8c3   :  { %2213 = vrsqrt.f32 %v1214_v37  ;;  %vm1230_vm7 = vcmp.gt.f32.partialorder %v1214_v37, 0.0 }
 0x8c5   :  { %v2208_v47 = vpop.eup %2207 }
 0x8c6   :  { %v1218_v48 = vpop.xlane.xlu0 %1217  ;;  %v1237_v22 = vsel %vm1229_vm4, %v2208_v47, 0.0  ;;  %v2210_v23 = vpop.eup %2209 }
 0x8c7   :  { %2215 = vrsqrt.f32 %v1218_v48  ;;  %v1244_v6 = vmul.f32 %v1237_v22, %v1203_v49  ;;  %v1242_v42 = vsel %vm1240_vm6, %v2210_v23, 0.0  ;;  %vm1231_vm8 = vcmp.gt.f32.partialorder %v1218_v48, 0.0 }
 0x8c9   :  { %v2212_v54 = vpop.eup %2211  ;;  %v1248_v24 = vmul.f32 %v1244_v6, %v1242_v42 }
 0x8ca   :  { %v1236_v7 = vsel %vm1228_vm5, %v2212_v54, 0.0 }
 0x8cb   :  { %v1243_v33 = vmul.f32 %v1236_v7, %v1202_v52 }
 0x8cd   :  { %v2214_v2 = vpop.eup %2213  ;;  %v1247_v45 = vmul.f32 %v1243_v33, %v1242_v42 }
 0x8ce   :  { %v1238_v11 = vsel %vm1230_vm7, %v2214_v2, 0.0 }
 0x8cf   :  { %v1245_v0 = vmul.f32 %v1238_v11, %v1204_v35  ;;  %2002 = vmatprep.mubr.msk.f32.mxu1 %vm94_vm0, %v1247_v45 }
 0x8d0   :  { %2003 = vmatmul.mubr.msk.f32.vlgmr.msra.gmra.mrb[20].mxu1 %vm94_vm0, %v1248_v24 }
 0x8d1   :  { %v2216_v25 = vpop.eup %2215  ;;  %v1249_v13 = vmul.f32 %v1245_v0, %v1242_v42  ;;  %2137 = vmatpush3.bf16.msra.mxu1 %v2134_v30 }
 0x8d2   :  { %v1239_v14 = vsel %vm1231_vm8, %v2216_v25, 0.0  ;;  %2139 = vmatprep.subr.bf16.mxu1 %v2138_v12 }
 0x8d3   :  { %v1246_v17 = vmul.f32 %v1239_v14, %v1205_v26  ;;  %2005 = vmatprep.mubr.msk.f32.mxu1 %vm94_vm0, %v1249_v13 }
 0x8d5   :  { %v1250_v18 = vmul.f32 %v1246_v17, %v1242_v42  ;;  %2141 = vmatpush3.bf16.msra.mxu1 %v2138_v12 }
 0x8d7   :  { %2006 = vmatmul.mubr.msk.f32.gmra.mrb[22].mxu1 %vm94_vm0, %v1250_v18  ;;  %vm1467_vm0 = vcmask 257024  }
 0x8d8   :  { %2030 = vmatprep.mubr.msk.f32.mxu1 %vm115_vm1, %v2604_v3  ;;  %v1757_v3 = vld [vmem:[%s2770_s7] ss:$0 sm:$0xff] }
 0x8db   :  { %2031 = vmatmul.mubr.msk.f32.vlgmr.msra.gmra.mrb[24].mxu1 %vm115_vm1, %v2610_v10 }
 0x8dc   :  { %2033 = vmatprep.mubr.msk.f32.mxu1 %vm115_vm1, %v2620_v21 }
 0x8df   :  { %2034 = vmatmul.mubr.msk.f32.gmra.mrb[26].mxu1 %vm115_vm1, %v2624_v38 }
 0x9a3   :  { %v2004_v10 = vpop.f32.mrb[20].mxu1 }
 0x9a4   :  { %v1447_v21 = vadd.f32 %v2004_v10, %v1757_v3  ;;  %v1441_v9 = vpop.f32.mrb[21].mxu1 }
 0x9a5   :  { %v1442_v46 = vadd.f32 %v1757_v3, %v1441_v9 }
 0x9a6   :  { %v1461_v38 = vmax.f32 %v1447_v21, 0.0 }
 0x9a7   :  { %v1460_v1 = vmax.f32 %v1442_v46, 0.0 }
 0x9a8   :  { %1465 = vst.msk [vmem:[#allocation3 + $0x8] sm:$0xff] %vm115_vm1, %v1461_v38 }
 0x9a9   :  { %1464 = vst.msk [vmem:[#allocation3] sm:$0xff] %vm115_vm1, %v1460_v1  ;;  %2016 = vmatprep.mubr.msk.f32.mxu0 %vm115_vm1, %v1460_v1 }
 0x9aa   :  { %v2007_v27 = vpop.f32.mrb[22].mxu1  ;;  %2017 = vmatmul.mubr.msk.f32.vlgmr.msra.gmra.mrb[16].mxu0 %vm115_vm1, %v1461_v38 }
 0x9ab   :  { %v1457_v16 = vadd.f32 %v2007_v27, %v1757_v3  ;;  %v1451_v49 = vpop.f32.mrb[23].mxu1 }
 0x9ac   :  { %v1452_v51 = vadd.f32 %v1757_v3, %v1451_v49 }
 0x9ad   :  { %v1463_v52 = vmax.f32 %v1457_v16, 0.0 }
 0x9ae   :  { %v1462_v53 = vmax.f32 %v1452_v51, 0.0  ;;  %v2032_v43 = vpop.f32.mrb[24].mxu1 }
 0x9af   :  { %1468 = vst.msk [vmem:[#allocation3 + $0x18] sm:$0xf] %vm1467_vm0, %v1463_v52  ;;  %v1655_v39 = vpop.f32.mrb[25].mxu1 }
 0x9b0   :  { %1676 = vst.msk [vmem:[%s2778_s15 + $0x8] sm:$0xff] %vm1674_vm9, %v2032_v43  ;;  %1675 = vst.msk [vmem:[%s2778_s15] sm:$0xff] %vm1674_vm9, %v1655_v39  ;;  %2019 = vmatprep.mubr.msk.f32.mxu0 %vm115_vm1, %v1462_v53 }
 0x9b1   :  { %1466 = vst.msk [vmem:[#allocation3 + $0x10] sm:$0xff] %vm115_vm1, %v1462_v53  ;;  %2020 = vmatmul.mubr.msk.f32.gmra.mrb[18].mxu0 %vm115_vm1, %v1463_v52 }
 0x9b2   :  { %v2035_v44 = vpop.f32.mrb[26].mxu1 }
 0x9b3   :  { %1679 = vst.msk [vmem:[%s2778_s15 + $0x18] sm:$0xf] %vm1678_vm10, %v2035_v44  ;;  %v1665_v31 = vpop.f32.mrb[27].mxu1 }
 0x9b4   :  { %1677 = vst.msk [vmem:[%s2778_s15 + $0x10] sm:$0xff] %vm1674_vm9, %v1665_v31 }
 0x9b5   :  { %2228 = shalt.err (!%p2225_p4)
}
 0x9b6   :  { %s2229_s21 = scalar_lea.hbm %s2775_s12, 512 }
 0x9b7   :  { %p2230_p5 = scmp.ne.s32.totalorder %s2775_s12, %s2229_s21  ;;  %p2233_p6 = scmp.lt.u32.totalorder %s2229_s21, %s2775_s12 }
 0x9b9   :  { %p2235_p7 = pnand %p2233_p6, %p2230_p5 }
 0x9bb   :  { %2238 = shalt.err (!%p2235_p7)
}
 0x9bc   :  { %s2244_s11 = smov 128   ;;  %s2245_s24 = smov 8   ;;  %v1763_v5 = vld [vmem:[%s2772_s9] ss:$0 sm:$0xff] }
 0x9bd   :  { %1691 = dma.vmem_to_hbm [thread:$0]  %s1686_s6, 512, %s2775_s12, [#allocation4], %s2244_s11, %s2244_s11, %s2245_s24  }
 0xa7d   :  { %v2018_v35 = vpop.f32.mrb[16].mxu0 }
 0xa7e   :  { %v1564_v26 = vadd.f32 %v2018_v35, %v1763_v5  ;;  %v1558_v29 = vpop.f32.mrb[17].mxu0 }
 0xa7f   :  { %v1559_v40 = vadd.f32 %v1763_v5, %v1558_v29 }
 0xa80   :  { %v1578_v28 = vmax.f32 %v1564_v26, 0.0 }
 0xa81   :  { %v1577_v50 = vmax.f32 %v1559_v40, 0.0 }
 0xa82   :  { %1582 = vst.msk [vmem:[%s2776_s13 + $0x8] sm:$0xff] %vm115_vm1, %v1578_v28 }
 0xa83   :  { %1581 = vst.msk [vmem:[%s2776_s13] sm:$0xff] %vm115_vm1, %v1577_v50 }
 0xa84   :  { %v2021_v32 = vpop.f32.mrb[18].mxu0 }
 0xa85   :  { %v1574_v55 = vadd.f32 %v2021_v32, %v1763_v5  ;;  %v1568_v30 = vpop.f32.mrb[19].mxu0 }
 0xa86   :  { %v1569_v36 = vadd.f32 %v1763_v5, %v1568_v30 }
 0xa87   :  { %v1580_v56 = vmax.f32 %v1574_v55, 0.0 }
 0xa88   :  { %v1579_v57 = vmax.f32 %v1569_v36, 0.0 }
 0xa89   :  { %1584 = vst.msk [vmem:[%s2776_s13 + $0x18] sm:$0xf] %vm1467_vm0, %v1580_v56 }
 0xa8a   :  { %1583 = vst.msk [vmem:[%s2776_s13 + $0x10] sm:$0xff] %vm115_vm1, %v1579_v57 }
 0xa8b   :  { %2239 = dma.done.wait [#allocation4], 512  }
 0xa8c   :  { %2240 = vsyncadd [#allocation4], 4294966784 }
 0xa8d   :  { %1707 = vsyncpa [#allocation4], 1 }

</bundles_post_ra>
